<compile_context>
chip_gen: v7x
topology: tpu7x:2x2x1
jax: 0.10.0
libtpu: 0.0.40
codegen_flags: <defaults>
</compile_context>

<pallas_src>
import functools

import jax
import jax.numpy as jnp
from jax.experimental import pallas as pl
from jax.experimental.pallas import tpu as pltpu


_VMEM = pl.BlockSpec(memory_space=pltpu.MemorySpace.VMEM)
_BN_EPS = 1e-5  # nn.BatchNorm1d default


def _round_up(x, m):
    return ((x + m - 1) // m) * m


def _vmem_limit_bytes():
    # v5e/v6e: 128 MiB VMEM per core, v7x: 64 MiB. Leave ~24 MiB headroom for Mosaic
    # internals and cap at 100 MiB (-> ~40 MiB on v7x, ~100 MiB on v5e/v6e).
    try:
        cap = int(getattr(pltpu.get_tpu_info(), "vmem_capacity_bytes", 64 * 1024 * 1024))
    except Exception:
        cap = 64 * 1024 * 1024
    return max(32 * 1024 * 1024, min(cap - 24 * 1024 * 1024, 100 * 1024 * 1024))


_VMEM_LIMIT = _vmem_limit_bytes()


def _pick_tile(m, want):
    """Row-tile size: as big as requested, multiple of 8, and >=2 grid steps when
    possible so both v7x TensorCores get work (harmless on single-TC v5e/v6e)."""
    t = min(want, _round_up(m, 8))
    if m >= 16 and _round_up(m, t) // t < 2:
        t = _round_up(pl.cdiv(m, 2), 8)
    return t


def _const_spec(shape):
    """Constant-index-map BlockSpec: the block never changes across the grid, so the
    pipeline never re-DMAs it (weights stay VMEM-resident).
    TODO(synk): single-buffer these via pipeline_mode=pl.Buffered(1) once verified to
    lower on all target jax versions; until then they cost 2x their size in VMEM."""
    zeros = (0,) * len(shape)
    return pl.BlockSpec(shape, lambda i: zeros)


# --------------------------- in-kernel math helpers --------------------------

def _erf(x):
    # Abramowitz & Stegun 7.1.26 polynomial erf (|err| <= 1.5e-7); the divide is an
    # EUP approx-reciprocal so it stays off the VALU.
    p = 0.3275911
    a1, a2, a3, a4, a5 = 0.254829592, -0.284496736, 1.421413741, -1.453152027, 1.061405429
    sign = jnp.where(x < 0.0, -1.0, 1.0)
    ax = jnp.abs(x)
    t = pl.reciprocal(1.0 + p * ax, approx=True)
    poly = t * (a1 + t * (a2 + t * (a3 + t * (a4 + t * a5))))
    return sign * (1.0 - poly * jnp.exp(-ax * ax))


def _gelu_exact(x):
    return 0.5 * x * (1.0 + _erf(x * 0.7071067811865476))


def _layer_norm(x, gamma, beta, eps):
    mean = jnp.mean(x, axis=-1, keepdims=True)
    var = jnp.mean(jnp.square(x - mean), axis=-1, keepdims=True)
    return (x - mean) * jax.lax.rsqrt(var + eps) * gamma + beta


# ----------------------- patch-embed matmul kernel ---------------------------

def _matmul_kernel(x_ref, w_ref, b_ref, o_ref, *, act):
    y = jnp.dot(x_ref[...], w_ref[...], preferred_element_type=jnp.float32) + b_ref[...]
    if act == "relu":
        y = jnp.maximum(y, 0.0)
    o_ref[...] = y.astype(o_ref.dtype)


def linear(x, w, b, act=None, *, tm=512):
    """y = act(x @ w + b): bf16 MXU operands, f32 accumulator. The (K, N) weight is
    small (patch embed), so it is VMEM-resident (constant index map) and the grid only
    tiles the token dimension. K/N are padded only to the next multiple of 128."""
    lead = x.shape[:-1]
    K = x.shape[-1]
    N = w.shape[1]
    M = 1
    for d in lead:
        M *= d
    x2 = x.reshape(M, K)

    Kp, Np = _round_up(K, 128), _round_up(N, 128)
    tm = _pick_tile(M, tm)
    Mp = _round_up(M, tm)

    x_p = jnp.pad(x2, ((0, Mp - M), (0, Kp - K))).astype(jnp.bfloat16)
    w_p = jnp.pad(w.astype(jnp.bfloat16), ((0, Kp - K), (0, Np - N)))
    b_p = jnp.pad(b, (0, Np - N)).reshape(1, Np)

    out = pl.pallas_call(
        functools.partial(_matmul_kernel, act=act),
        out_shape=jax.ShapeDtypeStruct((Mp, Np), jnp.float32),
        grid_spec=pltpu.PrefetchScalarGridSpec(
            num_scalar_prefetch=0,
            grid=(Mp // tm,),
            in_specs=[
                pl.BlockSpec((tm, Kp), lambda i: (i, 0)),
                _const_spec((Kp, Np)),
                _const_spec((1, Np)),
            ],
            out_specs=pl.BlockSpec((tm, Np), lambda i: (i, 0)),
        ),
        compiler_params=pltpu.CompilerParams(
            dimension_semantics=("parallel",), vmem_limit_bytes=_VMEM_LIMIT),
    )(x_p, w_p, b_p)
    return out[:M, :N].reshape(lead + (N,))


# ------------------ fused divided-attention kernel (LN+MHA+proj) -------------

def _attention_kernel(x_ref, g_ref, b_ref, wqkv_ref, bqkv_ref, wo_ref, bo_ref, *rest,
                      num_heads, scale, eps, fuse_dense):
    if fuse_dense:
        wd_ref, bd_ref, o_ref = rest
    else:
        (o_ref,) = rest

    nb, S, D = x_ref.shape
    H = num_heads
    Dh = D // H

    # Flatten the block to (nb*S, D) so LayerNorm / QKV / out-proj run full-width.
    xf = x_ref[...].astype(jnp.float32).reshape(nb * S, D)
    xl = _layer_norm(xf, g_ref[...], b_ref[...], eps).astype(jnp.bfloat16)

    # ONE (nb*S, D) x (D, 3D) QKV projection.
    qkv = jnp.dot(xl, wqkv_ref[...], preferred_element_type=jnp.float32) + bqkv_ref[...]
    qkv = qkv.reshape(nb, S, 3 * D)

    # Per-head S x S scores / context are inherently (S, Dh)-sized matmuls; they are
    # batched over the nb sequences and the big matmuls stay outside this loop.
    ctx = []
    for h in range(H):
        q = (qkv[:, :, h * Dh:(h + 1) * Dh] * scale).astype(jnp.bfloat16)
        k = qkv[:, :, D + h * Dh:D + (h + 1) * Dh].astype(jnp.bfloat16)
        v = qkv[:, :, 2 * D + h * Dh:2 * D + (h + 1) * Dh].astype(jnp.bfloat16)
        s = jnp.einsum("bqd,bkd->bqk", q, k, preferred_element_type=jnp.float32)
        s = s - jnp.max(s, axis=-1, keepdims=True)
        pr = jnp.exp(s)
        pr = pr * pl.reciprocal(jnp.sum(pr, axis=-1, keepdims=True), approx=True)
        ctx.append(jnp.einsum("bqk,bkd->bqd", pr.astype(jnp.bfloat16), v,
                              preferred_element_type=jnp.float32))
    ctx = jnp.concatenate(ctx, axis=-1).reshape(nb * S, D).astype(jnp.bfloat16)

    # ONE (nb*S, D) x (D, D) output projection.
    y = jnp.dot(ctx, wo_ref[...], preferred_element_type=jnp.float32) + bo_ref[...]
    if fuse_dense:                       # temporal branch: temporal_dense + residual
        y = jnp.dot(y.astype(jnp.bfloat16), wd_ref[...],
                    preferred_element_type=jnp.float32) + bd_ref[...]
        y = y + xf
    o_ref[...] = y.reshape(nb, S, D).astype(o_ref.dtype)


def divided_attention(x, ln_g, ln_b, qkv_w, qkv_b, proj_w, proj_b, num_heads, eps,
                      dense_w=None, dense_b=None, seq_block=8):
    """Fused LN + multi-head attention + output projection (+ optional temporal dense
    + residual). Grid over blocks of sequences ('parallel' for megacore); all weights
    have constant index maps and stay VMEM-resident. I/O blocks are bf16."""
    Bq, S, D = x.shape
    fuse_dense = dense_w is not None

    nb = Bq if Bq < 2 else max(1, min(seq_block, Bq // 2))
    Bp = _round_up(Bq, nb)
    x_p = jnp.pad(x, ((0, Bp - Bq), (0, 0), (0, 0))) if Bp != Bq else x

    args = [x_p, ln_g, ln_b, qkv_w, qkv_b, proj_w, proj_b]
    in_specs = [
        pl.BlockSpec((nb, S, D), lambda i: (i, 0, 0)),
        _const_spec((1, D)), _const_spec((1, D)),
        _const_spec((D, 3 * D)), _const_spec((1, 3 * D)),
        _const_spec((D, D)), _const_spec((1, D)),
    ]
    if fuse_dense:
        args += [dense_w, dense_b]
        in_specs += [_const_spec((D, D)), _const_spec((1, D))]

    out = pl.pallas_call(
        functools.partial(_attention_kernel, num_heads=num_heads,
                          scale=float(D // num_heads) ** -0.5, eps=float(eps),
                          fuse_dense=fuse_dense),
        out_shape=jax.ShapeDtypeStruct((Bp, S, D), x.dtype),
        grid_spec=pltpu.PrefetchScalarGridSpec(
            num_scalar_prefetch=0,
            grid=(Bp // nb,),
            in_specs=in_specs,
            out_specs=pl.BlockSpec((nb, S, D), lambda i: (i, 0, 0)),
        ),
        compiler_params=pltpu.CompilerParams(
            dimension_semantics=("parallel",), vmem_limit_bytes=_VMEM_LIMIT),
    )(*args)
    return out[:Bq]


# -------------------- fused MLP kernel (LN + fc1 + GELU + fc2 + res) ---------

def _mlp_kernel(x_ref, g_ref, b_ref, w1_ref, b1_ref, w2_ref, b2_ref, o_ref, *, eps):
    xf = x_ref[...].astype(jnp.float32)
    xl = _layer_norm(xf, g_ref[...], b_ref[...], eps).astype(jnp.bfloat16)
    h = jnp.dot(xl, w1_ref[...], preferred_element_type=jnp.float32) + b1_ref[...]
    h = _gelu_exact(h).astype(jnp.bfloat16)
    y = jnp.dot(h, w2_ref[...], preferred_element_type=jnp.float32) + b2_ref[...]
    o_ref[...] = (y + xf).astype(o_ref.dtype)


def fused_mlp(hidden, ln_g, ln_b, w1, b1, w2, b2, eps, *, tm=256):
    """layernorm_after + fc1 + exact GELU + fc2 + residual in one kernel; the
    (tm, intermediate) tensor never leaves VMEM. bf16 I/O blocks, f32 math inside."""
    B, S, D = hidden.shape
    I = w1.shape[1]
    M = B * S
    x2 = hidden.reshape(M, D)
    tm = _pick_tile(M, tm)
    Mp = _round_up(M, tm)
    x_p = jnp.pad(x2, ((0, Mp - M), (0, 0))) if Mp != M else x2

    out = pl.pallas_call(
        functools.partial(_mlp_kernel, eps=float(eps)),
        out_shape=jax.ShapeDtypeStruct((Mp, D), hidden.dtype),
        grid_spec=pltpu.PrefetchScalarGridSpec(
            num_scalar_prefetch=0,
            grid=(Mp // tm,),
            in_specs=[
                pl.BlockSpec((tm, D), lambda i: (i, 0)),
                _const_spec((1, D)), _const_spec((1, D)),
                _const_spec((D, I)), _const_spec((1, I)),
                _const_spec((I, D)), _const_spec((1, D)),
            ],
            out_specs=pl.BlockSpec((tm, D), lambda i: (i, 0)),
        ),
        compiler_params=pltpu.CompilerParams(
            dimension_semantics=("parallel",), vmem_limit_bytes=_VMEM_LIMIT),
    )(x_p, ln_g, ln_b, w1, b1, w2, b2)
    return out[:M].reshape(B, S, D)


# ------------------- fused classifier head (final LN + 5 linears) ------------

def _head_kernel(x_ref, g_ref, b_ref, w0, b0, w1, b1, w2, b2, w3, b3, w4, b4,
                 o_ref, *, eps):
    x = _layer_norm(x_ref[...].astype(jnp.float32), g_ref[...], b_ref[...], eps)
    for w_ref, bias_ref in ((w0, b0), (w1, b1), (w2, b2), (w3, b3)):
        x = jnp.dot(x.astype(jnp.bfloat16), w_ref[...],
                    preferred_element_type=jnp.float32) + bias_ref[...]
        x = jnp.maximum(x, 0.0)                 # BatchNorm1d(eval) folded into w/b
    y = jnp.dot(x.astype(jnp.bfloat16), w4[...],
                preferred_element_type=jnp.float32) + b4[...]
    o_ref[...] = y.astype(o_ref.dtype)


def fused_head(pooled, ln_g, ln_b, head_w, head_b, eps, num_classes):
    """Final encoder LayerNorm (only the CLS row is consumed) + 4x(Linear+BN+ReLU)
    + classifier in one kernel; every hidden width (and the class dim) is padded to a
    multiple of 128 lanes at fold time for lane-dense matmuls/stores."""
    B = pooled.shape[0]
    ncp = head_w[-1].shape[1]
    args = [pooled, ln_g, ln_b]
    for w, b in zip(head_w, head_b):
        args += [w, b]
    out = pl.pallas_call(
        functools.partial(_head_kernel, eps=float(eps)),
        out_shape=jax.ShapeDtypeStruct((B, ncp), jnp.float32),
        in_specs=[_VMEM] * len(args),
        out_specs=_VMEM,
        compiler_params=pltpu.CompilerParams(vmem_limit_bytes=_VMEM_LIMIT),
    )(*args)
    return out[:, :num_classes]


# ------------------------------ Timesformer ---------------------------------

def timesformer_layer(lp, hidden, cfg, B, T, Hp, Wp):
    D = cfg["hidden_size"]
    nh = cfg["num_attention_heads"]
    eps = cfg["layer_norm_eps"]
    P = Hp * Wp

    # divided temporal attention: LN + MHA + temporal_dense + residual, fully fused
    temporal = hidden[:, 1:, :].reshape(B * P, T, D)
    temporal_embedding = divided_attention(
        temporal, lp["t_ln_g"], lp["t_ln_b"], lp["t_qkv_w"], lp["t_qkv_b"],
        lp["t_proj_w"], lp["t_proj_b"], nh, eps,
        dense_w=lp["t_dense_w"], dense_b=lp["t_dense_b"],
        seq_block=16).reshape(B, P * T, D)

    # divided spatial attention: LN + MHA + output projection, fully fused
    # TODO(synk): the temporal<->spatial token relayouts (transposes below) stay in XLA;
    # they could be folded into strided BlockSpec views over a (B, P, T, D) layout.
    init_cls = hidden[:, 0, :][:, None, :]                              # (B, 1, D)
    cls_tok = jnp.tile(init_cls, (1, T, 1)).reshape(B * T, 1, D)
    spatial = (temporal_embedding.reshape(B, Hp, Wp, T, D)
               .transpose(0, 3, 1, 2, 4).reshape(B * T, P, D))
    spatial = jnp.concatenate([cls_tok, spatial], axis=1)               # (B*T, 1+P, D)
    s_attn = divided_attention(
        spatial, lp["ln1_g"], lp["ln1_b"], lp["s_qkv_w"], lp["s_qkv_b"],
        lp["s_proj_w"], lp["s_proj_b"], nh, eps, seq_block=4)

    cls_res = jnp.mean(s_attn[:, 0, :].astype(jnp.float32).reshape(B, T, D),
                       axis=1, keepdims=True).astype(hidden.dtype)
    res_s = (s_attn[:, 1:, :].reshape(B, T, Hp, Wp, D)
             .transpose(0, 2, 3, 1, 4).reshape(B, P * T, D))
    hidden_states = (jnp.concatenate([init_cls, temporal_embedding], axis=1)
                     + jnp.concatenate([cls_res, res_s], axis=1))       # (B, 1+P*T, D)

    # MLP: LN + fc1 + exact GELU + fc2 + residual, fully fused
    return fused_mlp(hidden_states, lp["ln2_g"], lp["ln2_b"],
                     lp["fc1_w"], lp["fc1_b"], lp["fc2_w"], lp["fc2_b"], eps)


def timesformer_forward(prep, pixel_values, cfg):
    B, T, C, H, W = pixel_values.shape
    p = cfg["patch_size"]
    D = cfg["hidden_size"]
    Hp, Wp = H // p, W // p
    P = Hp * Wp

    # Patch embedding: Conv2d(kernel=stride=patch) == im2col + Pallas matmul.
    # TODO(synk): the im2col gather stays in XLA — p x p patch blocks violate the (8,128)
    # BlockSpec lane constraint, so it cannot be expressed as a DMA index_map gather.
    x = pixel_values.reshape(B * T, C, Hp, p, Wp, p)
    x = jnp.transpose(x, (0, 2, 4, 1, 3, 5)).reshape(B * T * P, C * p * p)
    emb = linear(x, prep["patch_w"], prep["patch_b"]).reshape(B * T, P, D)

    cls = jnp.broadcast_to(prep["cls_token"], (B * T, 1, D))
    emb = jnp.concatenate([cls, emb], axis=1) + prep["pos_emb"]         # (B*T, 1+P, D)

    # time embeddings (divided space-time)
    cls_tokens = emb[:B, 0, :][:, None, :]                              # (B, 1, D)
    emb = emb[:, 1:, :].reshape(B, T, P, D).transpose(0, 2, 1, 3).reshape(B * P, T, D)
    emb = emb + prep["time_emb"]
    emb = emb.reshape(B, P * T, D)
    hidden = jnp.concatenate([cls_tokens, emb], axis=1)                 # (B, 1+P*T, D)

    # Activations travel between kernels in bf16; LN/softmax/accumulation are f32 inside.
    hidden = hidden.astype(jnp.bfloat16)
    for lp in prep["layers"]:
        hidden = timesformer_layer(lp, hidden, cfg, B, T, Hp, Wp)
    # final LayerNorm is fused into the head (only the CLS row is consumed downstream)
    return hidden


def eden_forward(prep, pixel_values, cfg):
    hidden = timesformer_forward(prep, pixel_values, cfg)
    pooled = hidden[:, 0, :]                                            # CLS token
    return fused_head(pooled, prep["ln_f_g"], prep["ln_f_b"],
                      prep["head_w"], prep["head_b"],
                      cfg["layer_norm_eps"], cfg["num_classes"])


# ------------------------------- parameters ----------------------------------

def init_params(key, cfg):
    D = cfg["hidden_size"]
    I = cfg["intermediate_size"]
    C = cfg["num_channels"]
    p = cfg["patch_size"]
    T = cfg["num_frames"]
    P = (cfg["image_size"] // p) ** 2
    nc = cfg["num_classes"]

    keys = iter(jax.random.split(key, 512))

    def nrm(shape, std=0.02):
        return std * jax.random.normal(next(keys), shape, dtype=jnp.float32)

    def zeros(n):
        return jnp.zeros((n,), jnp.float32)

    def ones(n):
        return jnp.ones((n,), jnp.float32)

    params = {
        # Conv2d weight (D, C, p, p) rearranged to im2col matmul form (C*p*p, D)
        "patch_w": nrm((D, C, p, p)).reshape(D, C * p * p).T,
        "patch_b": zeros(D),
        "cls_token": nrm((1, 1, D)),
        "pos_emb": nrm((1, P + 1, D)),
        "time_emb": nrm((1, T, D)),
        "ln_f_g": ones(D),
        "ln_f_b": zeros(D),
        "layers": [],
    }
    for _ in range(cfg["num_hidden_layers"]):
        params["layers"].append({
            "t_ln_g": ones(D), "t_ln_b": zeros(D),
            "t_qkv_w": nrm((D, 3 * D)), "t_qkv_b": zeros(3 * D),
            "t_proj_w": nrm((D, D)), "t_proj_b": zeros(D),
            "t_dense_w": nrm((D, D)), "t_dense_b": zeros(D),
            "ln1_g": ones(D), "ln1_b": zeros(D),
            "s_qkv_w": nrm((D, 3 * D)), "s_qkv_b": zeros(3 * D),
            "s_proj_w": nrm((D, D)), "s_proj_b": zeros(D),
            "ln2_g": ones(D), "ln2_b": zeros(D),
            "fc1_w": nrm((D, I)), "fc1_b": zeros(I),
            "fc2_w": nrm((I, D)), "fc2_b": zeros(D),
        })

    dims = [D, D // 2, D // 4, D // 8, D // 16, nc]
    head = {}
    for i in range(5):
        head[f"fc{i}_w"] = nrm((dims[i], dims[i + 1]))
        head[f"fc{i}_b"] = zeros(dims[i + 1])
        if i < 4:
            head[f"bn{i}_g"] = ones(dims[i + 1])
            head[f"bn{i}_b"] = zeros(dims[i + 1])
            head[f"bn{i}_m"] = zeros(dims[i + 1])   # running_mean
            head[f"bn{i}_v"] = ones(dims[i + 1])    # running_var
    params["head"] = head
    return params


def prepare_params(params, cfg):
    """One-time weight prep: bf16 casts, bias reshapes, BN folding and 128-lane padding
    of the classifier head. Done once at load time, never per forward."""
    D = cfg["hidden_size"]
    prep = {
        "patch_w": params["patch_w"].astype(jnp.bfloat16),
        "patch_b": params["patch_b"],
        "cls_token": params["cls_token"],
        "pos_emb": params["pos_emb"],
        "time_emb": params["time_emb"],
        "ln_f_g": params["ln_f_g"].reshape(1, D),
        "ln_f_b": params["ln_f_b"].reshape(1, D),
        "layers": [],
    }
    for lp in params["layers"]:
        prep["layers"].append({
            "t_ln_g": lp["t_ln_g"].reshape(1, D), "t_ln_b": lp["t_ln_b"].reshape(1, D),
            "t_qkv_w": lp["t_qkv_w"].astype(jnp.bfloat16),
            "t_qkv_b": lp["t_qkv_b"].reshape(1, -1),
            "t_proj_w": lp["t_proj_w"].astype(jnp.bfloat16),
            "t_proj_b": lp["t_proj_b"].reshape(1, D),
            "t_dense_w": lp["t_dense_w"].astype(jnp.bfloat16),
            "t_dense_b": lp["t_dense_b"].reshape(1, D),
            "ln1_g": lp["ln1_g"].reshape(1, D), "ln1_b": lp["ln1_b"].reshape(1, D),
            "s_qkv_w": lp["s_qkv_w"].astype(jnp.bfloat16),
            "s_qkv_b": lp["s_qkv_b"].reshape(1, -1),
            "s_proj_w": lp["s_proj_w"].astype(jnp.bfloat16),
            "s_proj_b": lp["s_proj_b"].reshape(1, D),
            "ln2_g": lp["ln2_g"].reshape(1, D), "ln2_b": lp["ln2_b"].reshape(1, D),
            "fc1_w": lp["fc1_w"].astype(jnp.bfloat16), "fc1_b": lp["fc1_b"].reshape(1, -1),
            "fc2_w": lp["fc2_w"].astype(jnp.bfloat16), "fc2_b": lp["fc2_b"].reshape(1, D),
        })

    head = params["head"]
    head_w, head_b = [], []
    prev_pad = 0
    for i in range(4):
        scale = head[f"bn{i}_g"] * jax.lax.rsqrt(head[f"bn{i}_v"] + _BN_EPS)
        wf = head[f"fc{i}_w"] * scale[None, :]
        bf = (head[f"fc{i}_b"] - head[f"bn{i}_m"]) * scale + head[f"bn{i}_b"]
        out_dim = wf.shape[1]
        out_pad = _round_up(out_dim, 128) - out_dim
        wf = jnp.pad(wf, ((0, prev_pad), (0, out_pad)))
        bf = jnp.pad(bf, (0, out_pad))
        head_w.append(wf.astype(jnp.bfloat16))
        head_b.append(bf.reshape(1, -1))
        prev_pad = out_pad
    nc = head["fc4_w"].shape[1]
    ncp = _round_up(nc, 128)
    head_w.append(jnp.pad(head["fc4_w"],
                          ((0, prev_pad), (0, ncp - nc))).astype(jnp.bfloat16))
    head_b.append(jnp.pad(head["fc4_b"], (0, ncp - nc)).reshape(1, ncp))
    prep["head_w"] = head_w
    prep["head_b"] = head_b
    return prep


# ----------------------------------- main ------------------------------------

if __name__ == "__main__":
    cfg = dict(
        image_size=16,
        patch_size=8,
        num_channels=3,
        num_frames=2,
        hidden_size=32,
        num_hidden_layers=2,
        num_attention_heads=4,
        intermediate_size=64,
        layer_norm_eps=1e-6,
        num_classes=13,
    )
    key = jax.random.PRNGKey(0)
    kp, kx = jax.random.split(key)
    params = init_params(kp, cfg)
    prep = prepare_params(params, cfg)
    pixel_values = jax.random.normal(
        kx, (2, cfg["num_frames"], cfg["num_channels"],
             cfg["image_size"], cfg["image_size"]), dtype=jnp.float32)

    forward = jax.jit(functools.partial(eden_forward, cfg=cfg))
    logits = jax.block_until_ready(forward(prep, pixel_values))
    assert logits.shape == (2, cfg["num_classes"]), logits.shape
    assert bool(jnp.all(jnp.isfinite(logits)))
    print("KERNEL_OK")
</pallas_src>

<mosaic_0001>
module attributes {stable_mosaic.version = 11 : i64} {
  func.func @_matmul_kernel(%arg0: i32, %arg1: memref<8x256xbf16, #tpu.memory_space<vmem>>, %arg2: memref<256x128xbf16, #tpu.memory_space<vmem>>, %arg3: memref<1x128xf32, #tpu.memory_space<vmem>>, %arg4: memref<8x128xf32, #tpu.memory_space<vmem>>) attributes {dimension_semantics = [#tpu.dimension_semantics<parallel>], iteration_bounds = array<i64: 2>, scalar_prefetch = 0 : i64, scratch_operands = 0 : i64, tpu.core_type = #tpu.core_type<tc>, window_params = [{transform_indices = @transform_0, window_bounds = array<i64: 8, 256>}, {pipeline_mode = #tpu.pipeline_mode<synchronous>, transform_indices = @transform_1, window_bounds = array<i64: 256, 128>}, {pipeline_mode = #tpu.pipeline_mode<synchronous>, transform_indices = @transform_2, window_bounds = array<i64: 1, 128>}, {transform_indices = @transform_3, window_bounds = array<i64: 8, 128>}]} {
    %c0 = arith.constant 0 : index
    %c0_0 = arith.constant 0 : index
    %0 = vector.load %arg1[%c0, %c0_0] : memref<8x256xbf16, #tpu.memory_space<vmem>>, vector<8x256xbf16>
    %c0_1 = arith.constant 0 : index
    %c0_2 = arith.constant 0 : index
    %1 = vector.load %arg2[%c0_1, %c0_2] : memref<256x128xbf16, #tpu.memory_space<vmem>>, vector<256x128xbf16>
    %cst = arith.constant dense<0.000000e+00> : vector<8x128xf32>
    %2 = tpu.matmul %0, %1, %cst {dimension_numbers = #tpu.dot_dimension_numbers<[1], [0], [0], [1], [0, 0, 1, 1], [], []>} : vector<8x256xbf16>, vector<256x128xbf16>, vector<8x128xf32> -> vector<8x128xf32>
    %c0_3 = arith.constant 0 : index
    %c0_4 = arith.constant 0 : index
    %3 = vector.load %arg3[%c0_3, %c0_4] : memref<1x128xf32, #tpu.memory_space<vmem>>, vector<1x128xf32>
    %4 = vector.broadcast %3 : vector<1x128xf32> to vector<8x128xf32>
    %5 = arith.addf %2, %4 : vector<8x128xf32>
    %c0_5 = arith.constant 0 : index
    %c0_6 = arith.constant 0 : index
    %6 = vector.load %arg4[%c0_5, %c0_6] : memref<8x128xf32, #tpu.memory_space<vmem>>, vector<8x128xf32>
    tpu.vector_store %arg4[%c0_5, %c0_6], %5 {strides = array<i32>} : memref<8x128xf32, #tpu.memory_space<vmem>>, vector<8x128xf32>,
    return
  }
  func.func @transform_0(%arg0: i32) -> (i32, i32) {
    %c0_i32 = arith.constant 0 : i32
    %c0_i32_0 = arith.constant 0 : i32
    return %arg0, %c0_i32 : i32, i32
  }
  func.func @transform_1(%arg0: i32) -> (i32, i32) {
    %c0_i32 = arith.constant 0 : i32
    %c0_i32_0 = arith.constant 0 : i32
    %c0_i32_1 = arith.constant 0 : i32
    return %c0_i32, %c0_i32_0 : i32, i32
  }
  func.func @transform_2(%arg0: i32) -> (i32, i32) {
    %c0_i32 = arith.constant 0 : i32
    %c0_i32_0 = arith.constant 0 : i32
    %c0_i32_1 = arith.constant 0 : i32
    return %c0_i32, %c0_i32_0 : i32, i32
  }
  func.func @transform_3(%arg0: i32) -> (i32, i32) {
    %c0_i32 = arith.constant 0 : i32
    %c0_i32_0 = arith.constant 0 : i32
    return %arg0, %c0_i32 : i32, i32
  }
}

module attributes {stable_mosaic.version = 11 : i64} {
  func.func @_attention_kernel(%arg0: i32, %arg1: memref<4x2x32xbf16, #tpu.memory_space<vmem>>, %arg2: memref<1x32xf32, #tpu.memory_space<vmem>>, %arg3: memref<1x32xf32, #tpu.memory_space<vmem>>, %arg4: memref<32x96xbf16, #tpu.memory_space<vmem>>, %arg5: memref<1x96xf32, #tpu.memory_space<vmem>>, %arg6: memref<32x32xbf16, #tpu.memory_space<vmem>>, %arg7: memref<1x32xf32, #tpu.memory_space<vmem>>, %arg8: memref<32x32xbf16, #tpu.memory_space<vmem>>, %arg9: memref<1x32xf32, #tpu.memory_space<vmem>>, %arg10: memref<4x2x32xbf16, #tpu.memory_space<vmem>>) attributes {dimension_semantics = [#tpu.dimension_semantics<parallel>], iteration_bounds = array<i64: 2>, scalar_prefetch = 0 : i64, scratch_operands = 0 : i64, tpu.core_type = #tpu.core_type<tc>, window_params = [{transform_indices = @transform_0, window_bounds = array<i64: 4, 2, 32>}, {pipeline_mode = #tpu.pipeline_mode<synchronous>, transform_indices = @transform_1, window_bounds = array<i64: 1, 32>}, {pipeline_mode = #tpu.pipeline_mode<synchronous>, transform_indices = @transform_2, window_bounds = array<i64: 1, 32>}, {pipeline_mode = #tpu.pipeline_mode<synchronous>, transform_indices = @transform_3, window_bounds = array<i64: 32, 96>}, {pipeline_mode = #tpu.pipeline_mode<synchronous>, transform_indices = @transform_4, window_bounds = array<i64: 1, 96>}, {pipeline_mode = #tpu.pipeline_mode<synchronous>, transform_indices = @transform_5, window_bounds = array<i64: 32, 32>}, {pipeline_mode = #tpu.pipeline_mode<synchronous>, transform_indices = @transform_6, window_bounds = array<i64: 1, 32>}, {pipeline_mode = #tpu.pipeline_mode<synchronous>, transform_indices = @transform_7, window_bounds = array<i64: 32, 32>}, {pipeline_mode = #tpu.pipeline_mode<synchronous>, transform_indices = @transform_8, window_bounds = array<i64: 1, 32>}, {transform_indices = @transform_9, window_bounds = array<i64: 4, 2, 32>}]} {
    %c0 = arith.constant 0 : index
    %c0_0 = arith.constant 0 : index
    %c0_1 = arith.constant 0 : index
    %0 = vector.load %arg1[%c0, %c0_0, %c0_1] : memref<4x2x32xbf16, #tpu.memory_space<vmem>>, vector<4x2x32xbf16>
    %1 = arith.extf %0 : vector<4x2x32xbf16> to vector<4x2x32xf32>
    %2 = vector.shape_cast %1 : vector<4x2x32xf32> to vector<8x32xf32>
    %c0_2 = arith.constant 0 : index
    %c0_3 = arith.constant 0 : index
    %3 = vector.load %arg2[%c0_2, %c0_3] : memref<1x32xf32, #tpu.memory_space<vmem>>, vector<1x32xf32>
    %c0_4 = arith.constant 0 : index
    %c0_5 = arith.constant 0 : index
    %4 = vector.load %arg3[%c0_4, %c0_5] : memref<1x32xf32, #tpu.memory_space<vmem>>, vector<1x32xf32>
    %cst = arith.constant dense<0.000000e+00> : vector<8xf32>
    %5 = vector.multi_reduction <add>, %2, %cst [1] : vector<8x32xf32> to vector<8xf32>
    %6 = vector.shape_cast %5 : vector<8xf32> to vector<8x1xf32>
    %cst_6 = arith.constant 3.200000e+01 : f32
    %7 = vector.broadcast %cst_6 : f32 to vector<8x1xf32>
    %8 = arith.divf %6, %7 : vector<8x1xf32>
    %9 = vector.broadcast %8 : vector<8x1xf32> to vector<8x32xf32>
    %10 = arith.subf %2, %9 : vector<8x32xf32>
    %11 = arith.mulf %10, %10 : vector<8x32xf32>
    %cst_7 = arith.constant dense<0.000000e+00> : vector<8xf32>
    %12 = vector.multi_reduction <add>, %11, %cst_7 [1] : vector<8x32xf32> to vector<8xf32>
    %13 = vector.shape_cast %12 : vector<8xf32> to vector<8x1xf32>
    %cst_8 = arith.constant 3.200000e+01 : f32
    %14 = vector.broadcast %cst_8 : f32 to vector<8x1xf32>
    %15 = arith.divf %13, %14 : vector<8x1xf32>
    %16 = vector.broadcast %8 : vector<8x1xf32> to vector<8x32xf32>
    %17 = arith.subf %2, %16 : vector<8x32xf32>
    %cst_9 = arith.constant 9.99999997E-7 : f32
    %18 = vector.broadcast %cst_9 : f32 to vector<8x1xf32>
    %19 = arith.addf %15, %18 : vector<8x1xf32>
    %20 = math.rsqrt %19 : vector<8x1xf32>
    %21 = vector.broadcast %20 : vector<8x1xf32> to vector<8x32xf32>
    %22 = arith.mulf %17, %21 : vector<8x32xf32>
    %23 = vector.broadcast %3 : vector<1x32xf32> to vector<8x32xf32>
    %24 = arith.mulf %22, %23 : vector<8x32xf32>
    %25 = vector.broadcast %4 : vector<1x32xf32> to vector<8x32xf32>
    %26 = arith.addf %24, %25 : vector<8x32xf32>
    %27 = arith.truncf %26 : vector<8x32xf32> to vector<8x32xbf16>
    %c0_10 = arith.constant 0 : index
    %c0_11 = arith.constant 0 : index
    %28 = vector.load %arg4[%c0_10, %c0_11] : memref<32x96xbf16, #tpu.memory_space<vmem>>, vector<32x96xbf16>
    %cst_12 = arith.constant dense<0.000000e+00> : vector<8x96xf32>
    %29 = tpu.matmul %27, %28, %cst_12 {dimension_numbers = #tpu.dot_dimension_numbers<[1], [0], [0], [1], [0, 0, 1, 1], [], []>} : vector<8x32xbf16>, vector<32x96xbf16>, vector<8x96xf32> -> vector<8x96xf32>
    %c0_13 = arith.constant 0 : index
    %c0_14 = arith.constant 0 : index
    %30 = vector.load %arg5[%c0_13, %c0_14] : memref<1x96xf32, #tpu.memory_space<vmem>>, vector<1x96xf32>
    %31 = vector.broadcast %30 : vector<1x96xf32> to vector<8x96xf32>
    %32 = arith.addf %29, %31 : vector<8x96xf32>
    %33 = vector.shape_cast %32 : vector<8x96xf32> to vector<4x2x96xf32>
    %34 = vector.extract_strided_slice %33 {offsets = [0, 0, 0], sizes = [4, 2, 8], strides = [1, 1, 1]} : vector<4x2x96xf32> to vector<4x2x8xf32>
    %cst_15 = arith.constant 0.353553385 : f32
    %35 = vector.broadcast %cst_15 : f32 to vector<4x2x8xf32>
    %36 = arith.mulf %34, %35 : vector<4x2x8xf32>
    %37 = arith.truncf %36 : vector<4x2x8xf32> to vector<4x2x8xbf16>
    %38 = vector.extract_strided_slice %33 {offsets = [0, 0, 32], sizes = [4, 2, 8], strides = [1, 1, 1]} : vector<4x2x96xf32> to vector<4x2x8xf32>
    %39 = arith.truncf %38 : vector<4x2x8xf32> to vector<4x2x8xbf16>
    %40 = vector.extract_strided_slice %33 {offsets = [0, 0, 64], sizes = [4, 2, 8], strides = [1, 1, 1]} : vector<4x2x96xf32> to vector<4x2x8xf32>
    %41 = arith.truncf %40 : vector<4x2x8xf32> to vector<4x2x8xbf16>
    "tpu.trace_start"() <{level = 10 : i32, message = "bqd,bkd->bqk"}> : () -> ()
    %cst_16 = arith.constant dense<0.000000e+00> : vector<4x2x2xf32>
    %42 = tpu.matmul %37, %39, %cst_16 {dimension_numbers = #tpu.dot_dimension_numbers<[2], [2], [1], [1], [0, 0, 0, 1, 1, 1], [0], [0]>} : vector<4x2x8xbf16>, vector<4x2x8xbf16>, vector<4x2x2xf32> -> vector<4x2x2xf32>
    "tpu.trace_stop"() : () -> ()
    %cst_17 = arith.constant dense<0xFF800000> : vector<4x2xf32>
    %43 = vector.multi_reduction <maximumf>, %42, %cst_17 [2] : vector<4x2x2xf32> to vector<4x2xf32>
    %44 = vector.shape_cast %43 : vector<4x2xf32> to vector<4x2x1xf32>
    %45 = vector.broadcast %44 : vector<4x2x1xf32> to vector<4x2x2xf32>
    %46 = arith.subf %42, %45 : vector<4x2x2xf32>
    %47 = math.exp %46 : vector<4x2x2xf32>
    %cst_18 = arith.constant dense<0.000000e+00> : vector<4x2xf32>
    %48 = vector.multi_reduction <add>, %47, %cst_18 [2] : vector<4x2x2xf32> to vector<4x2xf32>
    %49 = vector.shape_cast %48 : vector<4x2xf32> to vector<4x2x1xf32>
    %50 = tpu.reciprocal %49 {approx = true} : vector<4x2x1xf32> -> vector<4x2x1xf32>
    %51 = vector.broadcast %50 : vector<4x2x1xf32> to vector<4x2x2xf32>
    %52 = arith.mulf %47, %51 : vector<4x2x2xf32>
    %53 = arith.truncf %52 : vector<4x2x2xf32> to vector<4x2x2xbf16>
    "tpu.trace_start"() <{level = 10 : i32, message = "bqk,bkd->bqd"}> : () -> ()
    %cst_19 = arith.constant dense<0.000000e+00> : vector<4x2x8xf32>
    %54 = tpu.matmul %53, %41, %cst_19 {dimension_numbers = #tpu.dot_dimension_numbers<[2], [1], [1], [2], [0, 0, 0, 1, 1, 2], [0], [0]>} : vector<4x2x2xbf16>, vector<4x2x8xbf16>, vector<4x2x8xf32> -> vector<4x2x8xf32>
    "tpu.trace_stop"() : () -> ()
    %55 = vector.extract_strided_slice %33 {offsets = [0, 0, 8], sizes = [4, 2, 8], strides = [1, 1, 1]} : vector<4x2x96xf32> to vector<4x2x8xf32>
    %cst_20 = arith.constant 0.353553385 : f32
    %56 = vector.broadcast %cst_20 : f32 to vector<4x2x8xf32>
    %57 = arith.mulf %55, %56 : vector<4x2x8xf32>
    %58 = arith.truncf %57 : vector<4x2x8xf32> to vector<4x2x8xbf16>
    %59 = vector.extract_strided_slice %33 {offsets = [0, 0, 40], sizes = [4, 2, 8], strides = [1, 1, 1]} : vector<4x2x96xf32> to vector<4x2x8xf32>
    %60 = arith.truncf %59 : vector<4x2x8xf32> to vector<4x2x8xbf16>
    %61 = vector.extract_strided_slice %33 {offsets = [0, 0, 72], sizes = [4, 2, 8], strides = [1, 1, 1]} : vector<4x2x96xf32> to vector<4x2x8xf32>
    %62 = arith.truncf %61 : vector<4x2x8xf32> to vector<4x2x8xbf16>
    "tpu.trace_start"() <{level = 10 : i32, message = "bqd,bkd->bqk"}> : () -> ()
    %cst_21 = arith.constant dense<0.000000e+00> : vector<4x2x2xf32>
    %63 = tpu.matmul %58, %60, %cst_21 {dimension_numbers = #tpu.dot_dimension_numbers<[2], [2], [1], [1], [0, 0, 0, 1, 1, 1], [0], [0]>} : vector<4x2x8xbf16>, vector<4x2x8xbf16>, vector<4x2x2xf32> -> vector<4x2x2xf32>
    "tpu.trace_stop"() : () -> ()
    %cst_22 = arith.constant dense<0xFF800000> : vector<4x2xf32>
    %64 = vector.multi_reduction <maximumf>, %63, %cst_22 [2] : vector<4x2x2xf32> to vector<4x2xf32>
    %65 = vector.shape_cast %64 : vector<4x2xf32> to vector<4x2x1xf32>
    %66 = vector.broadcast %65 : vector<4x2x1xf32> to vector<4x2x2xf32>
    %67 = arith.subf %63, %66 : vector<4x2x2xf32>
    %68 = math.exp %67 : vector<4x2x2xf32>
    %cst_23 = arith.constant dense<0.000000e+00> : vector<4x2xf32>
    %69 = vector.multi_reduction <add>, %68, %cst_23 [2] : vector<4x2x2xf32> to vector<4x2xf32>
    %70 = vector.shape_cast %69 : vector<4x2xf32> to vector<4x2x1xf32>
    %71 = tpu.reciprocal %70 {approx = true} : vector<4x2x1xf32> -> vector<4x2x1xf32>
    %72 = vector.broadcast %71 : vector<4x2x1xf32> to vector<4x2x2xf32>
    %73 = arith.mulf %68, %72 : vector<4x2x2xf32>
    %74 = arith.truncf %73 : vector<4x2x2xf32> to vector<4x2x2xbf16>
    "tpu.trace_start"() <{level = 10 : i32, message = "bqk,bkd->bqd"}> : () -> ()
    %cst_24 = arith.constant dense<0.000000e+00> : vector<4x2x8xf32>
    %75 = tpu.matmul %74, %62, %cst_24 {dimension_numbers = #tpu.dot_dimension_numbers<[2], [1], [1], [2], [0, 0, 0, 1, 1, 2], [0], [0]>} : vector<4x2x2xbf16>, vector<4x2x8xbf16>, vector<4x2x8xf32> -> vector<4x2x8xf32>
    "tpu.trace_stop"() : () -> ()
    %76 = vector.extract_strided_slice %33 {offsets = [0, 0, 16], sizes = [4, 2, 8], strides = [1, 1, 1]} : vector<4x2x96xf32> to vector<4x2x8xf32>
    %cst_25 = arith.constant 0.353553385 : f32
    %77 = vector.broadcast %cst_25 : f32 to vector<4x2x8xf32>
    %78 = arith.mulf %76, %77 : vector<4x2x8xf32>
    %79 = arith.truncf %78 : vector<4x2x8xf32> to vector<4x2x8xbf16>
    %80 = vector.extract_strided_slice %33 {offsets = [0, 0, 48], sizes = [4, 2, 8], strides = [1, 1, 1]} : vector<4x2x96xf32> to vector<4x2x8xf32>
    %81 = arith.truncf %80 : vector<4x2x8xf32> to vector<4x2x8xbf16>
    %82 = vector.extract_strided_slice %33 {offsets = [0, 0, 80], sizes = [4, 2, 8], strides = [1, 1, 1]} : vector<4x2x96xf32> to vector<4x2x8xf32>
    %83 = arith.truncf %82 : vector<4x2x8xf32> to vector<4x2x8xbf16>
    "tpu.trace_start"() <{level = 10 : i32, message = "bqd,bkd->bqk"}> : () -> ()
    %cst_26 = arith.constant dense<0.000000e+00> : vector<4x2x2xf32>
    %84 = tpu.matmul %79, %81, %cst_26 {dimension_numbers = #tpu.dot_dimension_numbers<[2], [2], [1], [1], [0, 0, 0, 1, 1, 1], [0], [0]>} : vector<4x2x8xbf16>, vector<4x2x8xbf16>, vector<4x2x2xf32> -> vector<4x2x2xf32>
    "tpu.trace_stop"() : () -> ()
    %cst_27 = arith.constant dense<0xFF800000> : vector<4x2xf32>
    %85 = vector.multi_reduction <maximumf>, %84, %cst_27 [2] : vector<4x2x2xf32> to vector<4x2xf32>
    %86 = vector.shape_cast %85 : vector<4x2xf32> to vector<4x2x1xf32>
    %87 = vector.broadcast %86 : vector<4x2x1xf32> to vector<4x2x2xf32>
    %88 = arith.subf %84, %87 : vector<4x2x2xf32>
    %89 = math.exp %88 : vector<4x2x2xf32>
    %cst_28 = arith.constant dense<0.000000e+00> : vector<4x2xf32>
    %90 = vector.multi_reduction <add>, %89, %cst_28 [2] : vector<4x2x2xf32> to vector<4x2xf32>
    %91 = vector.shape_cast %90 : vector<4x2xf32> to vector<4x2x1xf32>
    %92 = tpu.reciprocal %91 {approx = true} : vector<4x2x1xf32> -> vector<4x2x1xf32>
    %93 = vector.broadcast %92 : vector<4x2x1xf32> to vector<4x2x2xf32>
    %94 = arith.mulf %89, %93 : vector<4x2x2xf32>
    %95 = arith.truncf %94 : vector<4x2x2xf32> to vector<4x2x2xbf16>
    "tpu.trace_start"() <{level = 10 : i32, message = "bqk,bkd->bqd"}> : () -> ()
    %cst_29 = arith.constant dense<0.000000e+00> : vector<4x2x8xf32>
    %96 = tpu.matmul %95, %83, %cst_29 {dimension_numbers = #tpu.dot_dimension_numbers<[2], [1], [1], [2], [0, 0, 0, 1, 1, 2], [0], [0]>} : vector<4x2x2xbf16>, vector<4x2x8xbf16>, vector<4x2x8xf32> -> vector<4x2x8xf32>
    "tpu.trace_stop"() : () -> ()
    %97 = vector.extract_strided_slice %33 {offsets = [0, 0, 24], sizes = [4, 2, 8], strides = [1, 1, 1]} : vector<4x2x96xf32> to vector<4x2x8xf32>
    %cst_30 = arith.constant 0.353553385 : f32
    %98 = vector.broadcast %cst_30 : f32 to vector<4x2x8xf32>
    %99 = arith.mulf %97, %98 : vector<4x2x8xf32>
    %100 = arith.truncf %99 : vector<4x2x8xf32> to vector<4x2x8xbf16>
    %101 = vector.extract_strided_slice %33 {offsets = [0, 0, 56], sizes = [4, 2, 8], strides = [1, 1, 1]} : vector<4x2x96xf32> to vector<4x2x8xf32>
    %102 = arith.truncf %101 : vector<4x2x8xf32> to vector<4x2x8xbf16>
    %103 = vector.extract_strided_slice %33 {offsets = [0, 0, 88], sizes = [4, 2, 8], strides = [1, 1, 1]} : vector<4x2x96xf32> to vector<4x2x8xf32>
    %104 = arith.truncf %103 : vector<4x2x8xf32> to vector<4x2x8xbf16>
    "tpu.trace_start"() <{level = 10 : i32, message = "bqd,bkd->bqk"}> : () -> ()
    %cst_31 = arith.constant dense<0.000000e+00> : vector<4x2x2xf32>
    %105 = tpu.matmul %100, %102, %cst_31 {dimension_numbers = #tpu.dot_dimension_numbers<[2], [2], [1], [1], [0, 0, 0, 1, 1, 1], [0], [0]>} : vector<4x2x8xbf16>, vector<4x2x8xbf16>, vector<4x2x2xf32> -> vector<4x2x2xf32>
    "tpu.trace_stop"() : () -> ()
    %cst_32 = arith.constant dense<0xFF800000> : vector<4x2xf32>
    %106 = vector.multi_reduction <maximumf>, %105, %cst_32 [2] : vector<4x2x2xf32> to vector<4x2xf32>
    %107 = vector.shape_cast %106 : vector<4x2xf32> to vector<4x2x1xf32>
    %108 = vector.broadcast %107 : vector<4x2x1xf32> to vector<4x2x2xf32>
    %109 = arith.subf %105, %108 : vector<4x2x2xf32>
    %110 = math.exp %109 : vector<4x2x2xf32>
    %cst_33 = arith.constant dense<0.000000e+00> : vector<4x2xf32>
    %111 = vector.multi_reduction <add>, %110, %cst_33 [2] : vector<4x2x2xf32> to vector<4x2xf32>
    %112 = vector.shape_cast %111 : vector<4x2xf32> to vector<4x2x1xf32>
    %113 = tpu.reciprocal %112 {approx = true} : vector<4x2x1xf32> -> vector<4x2x1xf32>
    %114 = vector.broadcast %113 : vector<4x2x1xf32> to vector<4x2x2xf32>
    %115 = arith.mulf %110, %114 : vector<4x2x2xf32>
    %116 = arith.truncf %115 : vector<4x2x2xf32> to vector<4x2x2xbf16>
    "tpu.trace_start"() <{level = 10 : i32, message = "bqk,bkd->bqd"}> : () -> ()
    %cst_34 = arith.constant dense<0.000000e+00> : vector<4x2x8xf32>
    %117 = tpu.matmul %116, %104, %cst_34 {dimension_numbers = #tpu.dot_dimension_numbers<[2], [1], [1], [2], [0, 0, 0, 1, 1, 2], [0], [0]>} : vector<4x2x2xbf16>, vector<4x2x8xbf16>, vector<4x2x8xf32> -> vector<4x2x8xf32>
    "tpu.trace_stop"() : () -> ()
    %118 = tpu.concatenate %54, %75, %96, %117 in 2 : vector<4x2x8xf32>, vector<4x2x8xf32>, vector<4x2x8xf32>, vector<4x2x8xf32> -> vector<4x2x32xf32>
    %119 = vector.shape_cast %118 : vector<4x2x32xf32> to vector<8x32xf32>
    %120 = arith.truncf %119 : vector<8x32xf32> to vector<8x32xbf16>
    %c0_35 = arith.constant 0 : index
    %c0_36 = arith.constant 0 : index
    %121 = vector.load %arg6[%c0_35, %c0_36] : memref<32x32xbf16, #tpu.memory_space<vmem>>, vector<32x32xbf16>
    %cst_37 = arith.constant dense<0.000000e+00> : vector<8x32xf32>
    %122 = tpu.matmul %120, %121, %cst_37 {dimension_numbers = #tpu.dot_dimension_numbers<[1], [0], [0], [1], [0, 0, 1, 1], [], []>} : vector<8x32xbf16>, vector<32x32xbf16>, vector<8x32xf32> -> vector<8x32xf32>
    %c0_38 = arith.constant 0 : index
    %c0_39 = arith.constant 0 : index
    %123 = vector.load %arg7[%c0_38, %c0_39] : memref<1x32xf32, #tpu.memory_space<vmem>>, vector<1x32xf32>
    %124 = vector.broadcast %123 : vector<1x32xf32> to vector<8x32xf32>
    %125 = arith.addf %122, %124 : vector<8x32xf32>
    %126 = arith.truncf %125 : vector<8x32xf32> to vector<8x32xbf16>
    %c0_40 = arith.constant 0 : index
    %c0_41 = arith.constant 0 : index
    %127 = vector.load %arg8[%c0_40, %c0_41] : memref<32x32xbf16, #tpu.memory_space<vmem>>, vector<32x32xbf16>
    %cst_42 = arith.constant dense<0.000000e+00> : vector<8x32xf32>
    %128 = tpu.matmul %126, %127, %cst_42 {dimension_numbers = #tpu.dot_dimension_numbers<[1], [0], [0], [1], [0, 0, 1, 1], [], []>} : vector<8x32xbf16>, vector<32x32xbf16>, vector<8x32xf32> -> vector<8x32xf32>
    %c0_43 = arith.constant 0 : index
    %c0_44 = arith.constant 0 : index
    %129 = vector.load %arg9[%c0_43, %c0_44] : memref<1x32xf32, #tpu.memory_space<vmem>>, vector<1x32xf32>
    %130 = vector.broadcast %129 : vector<1x32xf32> to vector<8x32xf32>
    %131 = arith.addf %128, %130 : vector<8x32xf32>
    %132 = arith.addf %131, %2 : vector<8x32xf32>
    %133 = vector.shape_cast %132 : vector<8x32xf32> to vector<4x2x32xf32>
    %134 = arith.truncf %133 : vector<4x2x32xf32> to vector<4x2x32xbf16>
    %c0_45 = arith.constant 0 : index
    %c0_46 = arith.constant 0 : index
    %c0_47 = arith.constant 0 : index
    %135 = vector.load %arg10[%c0_45, %c0_46, %c0_47] : memref<4x2x32xbf16, #tpu.memory_space<vmem>>, vector<4x2x32xbf16>
    tpu.vector_store %arg10[%c0_45, %c0_46, %c0_47], %134 {strides = array<i32>} : memref<4x2x32xbf16, #tpu.memory_space<vmem>>, vector<4x2x32xbf16>,
    return
  }
  func.func @transform_0(%arg0: i32) -> (i32, i32, i32) {
    %c0_i32 = arith.constant 0 : i32
    %c0_i32_0 = arith.constant 0 : i32
    %c0_i32_1 = arith.constant 0 : i32
    return %arg0, %c0_i32, %c0_i32_0 : i32, i32, i32
  }
  func.func @transform_1(%arg0: i32) -> (i32, i32) {
    %c0_i32 = arith.constant 0 : i32
    %c0_i32_0 = arith.constant 0 : i32
    %c0_i32_1 = arith.constant 0 : i32
    return %c0_i32, %c0_i32_0 : i32, i32
  }
  func.func @transform_2(%arg0: i32) -> (i32, i32) {
    %c0_i32 = arith.constant 0 : i32
    %c0_i32_0 = arith.constant 0 : i32
    %c0_i32_1 = arith.constant 0 : i32
    return %c0_i32, %c0_i32_0 : i32, i32
  }
  func.func @transform_3(%arg0: i32) -> (i32, i32) {
    %c0_i32 = arith.constant 0 : i32
    %c0_i32_0 = arith.constant 0 : i32
    %c0_i32_1 = arith.constant 0 : i32
    return %c0_i32, %c0_i32_0 : i32, i32
  }
  func.func @transform_4(%arg0: i32) -> (i32, i32) {
    %c0_i32 = arith.constant 0 : i32
    %c0_i32_0 = arith.constant 0 : i32
    %c0_i32_1 = arith.constant 0 : i32
    return %c0_i32, %c0_i32_0 : i32, i32
  }
  func.func @transform_5(%arg0: i32) -> (i32, i32) {
    %c0_i32 = arith.constant 0 : i32
    %c0_i32_0 = arith.constant 0 : i32
    %c0_i32_1 = arith.constant 0 : i32
    return %c0_i32, %c0_i32_0 : i32, i32
  }
  func.func @transform_6(%arg0: i32) -> (i32, i32) {
    %c0_i32 = arith.constant 0 : i32
    %c0_i32_0 = arith.constant 0 : i32
    %c0_i32_1 = arith.constant 0 : i32
    return %c0_i32, %c0_i32_0 : i32, i32
  }
  func.func @transform_7(%arg0: i32) -> (i32, i32) {
    %c0_i32 = arith.constant 0 : i32
    %c0_i32_0 = arith.constant 0 : i32
    %c0_i32_1 = arith.constant 0 : i32
    return %c0_i32, %c0_i32_0 : i32, i32
  }
  func.func @transform_8(%arg0: i32) -> (i32, i32) {
    %c0_i32 = arith.constant 0 : i32
    %c0_i32_0 = arith.constant 0 : i32
    %c0_i32_1 = arith.constant 0 : i32
    return %c0_i32, %c0_i32_0 : i32, i32
  }
  func.func @transform_9(%arg0: i32) -> (i32, i32, i32) {
    %c0_i32 = arith.constant 0 : i32
    %c0_i32_0 = arith.constant 0 : i32
    %c0_i32_1 = arith.constant 0 : i32
    return %arg0, %c0_i32, %c0_i32_0 : i32, i32, i32
  }
}

module attributes {stable_mosaic.version = 11 : i64} {
  func.func @_attention_kernel(%arg0: i32, %arg1: memref<2x5x32xbf16, #tpu.memory_space<vmem>>, %arg2: memref<1x32xf32, #tpu.memory_space<vmem>>, %arg3: memref<1x32xf32, #tpu.memory_space<vmem>>, %arg4: memref<32x96xbf16, #tpu.memory_space<vmem>>, %arg5: memref<1x96xf32, #tpu.memory_space<vmem>>, %arg6: memref<32x32xbf16, #tpu.memory_space<vmem>>, %arg7: memref<1x32xf32, #tpu.memory_space<vmem>>, %arg8: memref<2x5x32xbf16, #tpu.memory_space<vmem>>) attributes {dimension_semantics = [#tpu.dimension_semantics<parallel>], iteration_bounds = array<i64: 2>, scalar_prefetch = 0 : i64, scratch_operands = 0 : i64, tpu.core_type = #tpu.core_type<tc>, window_params = [{transform_indices = @transform_0, window_bounds = array<i64: 2, 5, 32>}, {pipeline_mode = #tpu.pipeline_mode<synchronous>, transform_indices = @transform_1, window_bounds = array<i64: 1, 32>}, {pipeline_mode = #tpu.pipeline_mode<synchronous>, transform_indices = @transform_2, window_bounds = array<i64: 1, 32>}, {pipeline_mode = #tpu.pipeline_mode<synchronous>, transform_indices = @transform_3, window_bounds = array<i64: 32, 96>}, {pipeline_mode = #tpu.pipeline_mode<synchronous>, transform_indices = @transform_4, window_bounds = array<i64: 1, 96>}, {pipeline_mode = #tpu.pipeline_mode<synchronous>, transform_indices = @transform_5, window_bounds = array<i64: 32, 32>}, {pipeline_mode = #tpu.pipeline_mode<synchronous>, transform_indices = @transform_6, window_bounds = array<i64: 1, 32>}, {transform_indices = @transform_7, window_bounds = array<i64: 2, 5, 32>}]} {
    %c0 = arith.constant 0 : index
    %c0_0 = arith.constant 0 : index
    %c0_1 = arith.constant 0 : index
    %0 = vector.load %arg1[%c0, %c0_0, %c0_1] : memref<2x5x32xbf16, #tpu.memory_space<vmem>>, vector<2x5x32xbf16>
    %1 = arith.extf %0 : vector<2x5x32xbf16> to vector<2x5x32xf32>
    %2 = vector.shape_cast %1 : vector<2x5x32xf32> to vector<10x32xf32>
    %c0_2 = arith.constant 0 : index
    %c0_3 = arith.constant 0 : index
    %3 = vector.load %arg2[%c0_2, %c0_3] : memref<1x32xf32, #tpu.memory_space<vmem>>, vector<1x32xf32>
    %c0_4 = arith.constant 0 : index
    %c0_5 = arith.constant 0 : index
    %4 = vector.load %arg3[%c0_4, %c0_5] : memref<1x32xf32, #tpu.memory_space<vmem>>, vector<1x32xf32>
    %cst = arith.constant dense<0.000000e+00> : vector<10xf32>
    %5 = vector.multi_reduction <add>, %2, %cst [1] : vector<10x32xf32> to vector<10xf32>
    %6 = vector.shape_cast %5 : vector<10xf32> to vector<10x1xf32>
    %cst_6 = arith.constant 3.200000e+01 : f32
    %7 = vector.broadcast %cst_6 : f32 to vector<10x1xf32>
    %8 = arith.divf %6, %7 : vector<10x1xf32>
    %9 = vector.broadcast %8 : vector<10x1xf32> to vector<10x32xf32>
    %10 = arith.subf %2, %9 : vector<10x32xf32>
    %11 = arith.mulf %10, %10 : vector<10x32xf32>
    %cst_7 = arith.constant dense<0.000000e+00> : vector<10xf32>
    %12 = vector.multi_reduction <add>, %11, %cst_7 [1] : vector<10x32xf32> to vector<10xf32>
    %13 = vector.shape_cast %12 : vector<10xf32> to vector<10x1xf32>
    %cst_8 = arith.constant 3.200000e+01 : f32
    %14 = vector.broadcast %cst_8 : f32 to vector<10x1xf32>
    %15 = arith.divf %13, %14 : vector<10x1xf32>
    %16 = vector.broadcast %8 : vector<10x1xf32> to vector<10x32xf32>
    %17 = arith.subf %2, %16 : vector<10x32xf32>
    %cst_9 = arith.constant 9.99999997E-7 : f32
    %18 = vector.broadcast %cst_9 : f32 to vector<10x1xf32>
    %19 = arith.addf %15, %18 : vector<10x1xf32>
    %20 = math.rsqrt %19 : vector<10x1xf32>
    %21 = vector.broadcast %20 : vector<10x1xf32> to vector<10x32xf32>
    %22 = arith.mulf %17, %21 : vector<10x32xf32>
    %23 = vector.broadcast %3 : vector<1x32xf32> to vector<10x32xf32>
    %24 = arith.mulf %22, %23 : vector<10x32xf32>
    %25 = vector.broadcast %4 : vector<1x32xf32> to vector<10x32xf32>
    %26 = arith.addf %24, %25 : vector<10x32xf32>
    %27 = arith.truncf %26 : vector<10x32xf32> to vector<10x32xbf16>
    %c0_10 = arith.constant 0 : index
    %c0_11 = arith.constant 0 : index
    %28 = vector.load %arg4[%c0_10, %c0_11] : memref<32x96xbf16, #tpu.memory_space<vmem>>, vector<32x96xbf16>
    %cst_12 = arith.constant dense<0.000000e+00> : vector<10x96xf32>
    %29 = tpu.matmul %27, %28, %cst_12 {dimension_numbers = #tpu.dot_dimension_numbers<[1], [0], [0], [1], [0, 0, 1, 1], [], []>} : vector<10x32xbf16>, vector<32x96xbf16>, vector<10x96xf32> -> vector<10x96xf32>
    %c0_13 = arith.constant 0 : index
    %c0_14 = arith.constant 0 : index
    %30 = vector.load %arg5[%c0_13, %c0_14] : memref<1x96xf32, #tpu.memory_space<vmem>>, vector<1x96xf32>
    %31 = vector.broadcast %30 : vector<1x96xf32> to vector<10x96xf32>
    %32 = arith.addf %29, %31 : vector<10x96xf32>
    %33 = vector.shape_cast %32 : vector<10x96xf32> to vector<2x5x96xf32>
    %34 = vector.extract_strided_slice %33 {offsets = [0, 0, 0], sizes = [2, 5, 8], strides = [1, 1, 1]} : vector<2x5x96xf32> to vector<2x5x8xf32>
    %cst_15 = arith.constant 0.353553385 : f32
    %35 = vector.broadcast %cst_15 : f32 to vector<2x5x8xf32>
    %36 = arith.mulf %34, %35 : vector<2x5x8xf32>
    %37 = arith.truncf %36 : vector<2x5x8xf32> to vector<2x5x8xbf16>
    %38 = vector.extract_strided_slice %33 {offsets = [0, 0, 32], sizes = [2, 5, 8], strides = [1, 1, 1]} : vector<2x5x96xf32> to vector<2x5x8xf32>
    %39 = arith.truncf %38 : vector<2x5x8xf32> to vector<2x5x8xbf16>
    %40 = vector.extract_strided_slice %33 {offsets = [0, 0, 64], sizes = [2, 5, 8], strides = [1, 1, 1]} : vector<2x5x96xf32> to vector<2x5x8xf32>
    %41 = arith.truncf %40 : vector<2x5x8xf32> to vector<2x5x8xbf16>
    "tpu.trace_start"() <{level = 10 : i32, message = "bqd,bkd->bqk"}> : () -> ()
    %cst_16 = arith.constant dense<0.000000e+00> : vector<2x5x5xf32>
    %42 = tpu.matmul %37, %39, %cst_16 {dimension_numbers = #tpu.dot_dimension_numbers<[2], [2], [1], [1], [0, 0, 0, 1, 1, 1], [0], [0]>} : vector<2x5x8xbf16>, vector<2x5x8xbf16>, vector<2x5x5xf32> -> vector<2x5x5xf32>
    "tpu.trace_stop"() : () -> ()
    %cst_17 = arith.constant dense<0xFF800000> : vector<2x5xf32>
    %43 = vector.multi_reduction <maximumf>, %42, %cst_17 [2] : vector<2x5x5xf32> to vector<2x5xf32>
    %44 = vector.shape_cast %43 : vector<2x5xf32> to vector<2x5x1xf32>
    %45 = vector.broadcast %44 : vector<2x5x1xf32> to vector<2x5x5xf32>
    %46 = arith.subf %42, %45 : vector<2x5x5xf32>
    %47 = math.exp %46 : vector<2x5x5xf32>
    %cst_18 = arith.constant dense<0.000000e+00> : vector<2x5xf32>
    %48 = vector.multi_reduction <add>, %47, %cst_18 [2] : vector<2x5x5xf32> to vector<2x5xf32>
    %49 = vector.shape_cast %48 : vector<2x5xf32> to vector<2x5x1xf32>
    %50 = tpu.reciprocal %49 {approx = true} : vector<2x5x1xf32> -> vector<2x5x1xf32>
    %51 = vector.broadcast %50 : vector<2x5x1xf32> to vector<2x5x5xf32>
    %52 = arith.mulf %47, %51 : vector<2x5x5xf32>
    %53 = arith.truncf %52 : vector<2x5x5xf32> to vector<2x5x5xbf16>
    "tpu.trace_start"() <{level = 10 : i32, message = "bqk,bkd->bqd"}> : () -> ()
    %cst_19 = arith.constant dense<0.000000e+00> : vector<2x5x8xf32>
    %54 = tpu.matmul %53, %41, %cst_19 {dimension_numbers = #tpu.dot_dimension_numbers<[2], [1], [1], [2], [0, 0, 0, 1, 1, 2], [0], [0]>} : vector<2x5x5xbf16>, vector<2x5x8xbf16>, vector<2x5x8xf32> -> vector<2x5x8xf32>
    "tpu.trace_stop"() : () -> ()
    %55 = vector.extract_strided_slice %33 {offsets = [0, 0, 8], sizes = [2, 5, 8], strides = [1, 1, 1]} : vector<2x5x96xf32> to vector<2x5x8xf32>
    %cst_20 = arith.constant 0.353553385 : f32
    %56 = vector.broadcast %cst_20 : f32 to vector<2x5x8xf32>
    %57 = arith.mulf %55, %56 : vector<2x5x8xf32>
    %58 = arith.truncf %57 : vector<2x5x8xf32> to vector<2x5x8xbf16>
    %59 = vector.extract_strided_slice %33 {offsets = [0, 0, 40], sizes = [2, 5, 8], strides = [1, 1, 1]} : vector<2x5x96xf32> to vector<2x5x8xf32>
    %60 = arith.truncf %59 : vector<2x5x8xf32> to vector<2x5x8xbf16>
    %61 = vector.extract_strided_slice %33 {offsets = [0, 0, 72], sizes = [2, 5, 8], strides = [1, 1, 1]} : vector<2x5x96xf32> to vector<2x5x8xf32>
    %62 = arith.truncf %61 : vector<2x5x8xf32> to vector<2x5x8xbf16>
    "tpu.trace_start"() <{level = 10 : i32, message = "bqd,bkd->bqk"}> : () -> ()
    %cst_21 = arith.constant dense<0.000000e+00> : vector<2x5x5xf32>
    %63 = tpu.matmul %58, %60, %cst_21 {dimension_numbers = #tpu.dot_dimension_numbers<[2], [2], [1], [1], [0, 0, 0, 1, 1, 1], [0], [0]>} : vector<2x5x8xbf16>, vector<2x5x8xbf16>, vector<2x5x5xf32> -> vector<2x5x5xf32>
    "tpu.trace_stop"() : () -> ()
    %cst_22 = arith.constant dense<0xFF800000> : vector<2x5xf32>
    %64 = vector.multi_reduction <maximumf>, %63, %cst_22 [2] : vector<2x5x5xf32> to vector<2x5xf32>
    %65 = vector.shape_cast %64 : vector<2x5xf32> to vector<2x5x1xf32>
    %66 = vector.broadcast %65 : vector<2x5x1xf32> to vector<2x5x5xf32>
    %67 = arith.subf %63, %66 : vector<2x5x5xf32>
    %68 = math.exp %67 : vector<2x5x5xf32>
    %cst_23 = arith.constant dense<0.000000e+00> : vector<2x5xf32>
    %69 = vector.multi_reduction <add>, %68, %cst_23 [2] : vector<2x5x5xf32> to vector<2x5xf32>
    %70 = vector.shape_cast %69 : vector<2x5xf32> to vector<2x5x1xf32>
    %71 = tpu.reciprocal %70 {approx = true} : vector<2x5x1xf32> -> vector<2x5x1xf32>
    %72 = vector.broadcast %71 : vector<2x5x1xf32> to vector<2x5x5xf32>
    %73 = arith.mulf %68, %72 : vector<2x5x5xf32>
    %74 = arith.truncf %73 : vector<2x5x5xf32> to vector<2x5x5xbf16>
    "tpu.trace_start"() <{level = 10 : i32, message = "bqk,bkd->bqd"}> : () -> ()
    %cst_24 = arith.constant dense<0.000000e+00> : vector<2x5x8xf32>
    %75 = tpu.matmul %74, %62, %cst_24 {dimension_numbers = #tpu.dot_dimension_numbers<[2], [1], [1], [2], [0, 0, 0, 1, 1, 2], [0], [0]>} : vector<2x5x5xbf16>, vector<2x5x8xbf16>, vector<2x5x8xf32> -> vector<2x5x8xf32>
    "tpu.trace_stop"() : () -> ()
    %76 = vector.extract_strided_slice %33 {offsets = [0, 0, 16], sizes = [2, 5, 8], strides = [1, 1, 1]} : vector<2x5x96xf32> to vector<2x5x8xf32>
    %cst_25 = arith.constant 0.353553385 : f32
    %77 = vector.broadcast %cst_25 : f32 to vector<2x5x8xf32>
    %78 = arith.mulf %76, %77 : vector<2x5x8xf32>
    %79 = arith.truncf %78 : vector<2x5x8xf32> to vector<2x5x8xbf16>
    %80 = vector.extract_strided_slice %33 {offsets = [0, 0, 48], sizes = [2, 5, 8], strides = [1, 1, 1]} : vector<2x5x96xf32> to vector<2x5x8xf32>
    %81 = arith.truncf %80 : vector<2x5x8xf32> to vector<2x5x8xbf16>
    %82 = vector.extract_strided_slice %33 {offsets = [0, 0, 80], sizes = [2, 5, 8], strides = [1, 1, 1]} : vector<2x5x96xf32> to vector<2x5x8xf32>
    %83 = arith.truncf %82 : vector<2x5x8xf32> to vector<2x5x8xbf16>
    "tpu.trace_start"() <{level = 10 : i32, message = "bqd,bkd->bqk"}> : () -> ()
    %cst_26 = arith.constant dense<0.000000e+00> : vector<2x5x5xf32>
    %84 = tpu.matmul %79, %81, %cst_26 {dimension_numbers = #tpu.dot_dimension_numbers<[2], [2], [1], [1], [0, 0, 0, 1, 1, 1], [0], [0]>} : vector<2x5x8xbf16>, vector<2x5x8xbf16>, vector<2x5x5xf32> -> vector<2x5x5xf32>
    "tpu.trace_stop"() : () -> ()
    %cst_27 = arith.constant dense<0xFF800000> : vector<2x5xf32>
    %85 = vector.multi_reduction <maximumf>, %84, %cst_27 [2] : vector<2x5x5xf32> to vector<2x5xf32>
    %86 = vector.shape_cast %85 : vector<2x5xf32> to vector<2x5x1xf32>
    %87 = vector.broadcast %86 : vector<2x5x1xf32> to vector<2x5x5xf32>
    %88 = arith.subf %84, %87 : vector<2x5x5xf32>
    %89 = math.exp %88 : vector<2x5x5xf32>
    %cst_28 = arith.constant dense<0.000000e+00> : vector<2x5xf32>
    %90 = vector.multi_reduction <add>, %89, %cst_28 [2] : vector<2x5x5xf32> to vector<2x5xf32>
    %91 = vector.shape_cast %90 : vector<2x5xf32> to vector<2x5x1xf32>
    %92 = tpu.reciprocal %91 {approx = true} : vector<2x5x1xf32> -> vector<2x5x1xf32>
    %93 = vector.broadcast %92 : vector<2x5x1xf32> to vector<2x5x5xf32>
    %94 = arith.mulf %89, %93 : vector<2x5x5xf32>
    %95 = arith.truncf %94 : vector<2x5x5xf32> to vector<2x5x5xbf16>
    "tpu.trace_start"() <{level = 10 : i32, message = "bqk,bkd->bqd"}> : () -> ()
    %cst_29 = arith.constant dense<0.000000e+00> : vector<2x5x8xf32>
    %96 = tpu.matmul %95, %83, %cst_29 {dimension_numbers = #tpu.dot_dimension_numbers<[2], [1], [1], [2], [0, 0, 0, 1, 1, 2], [0], [0]>} : vector<2x5x5xbf16>, vector<2x5x8xbf16>, vector<2x5x8xf32> -> vector<2x5x8xf32>
    "tpu.trace_stop"() : () -> ()
    %97 = vector.extract_strided_slice %33 {offsets = [0, 0, 24], sizes = [2, 5, 8], strides = [1, 1, 1]} : vector<2x5x96xf32> to vector<2x5x8xf32>
    %cst_30 = arith.constant 0.353553385 : f32
    %98 = vector.broadcast %cst_30 : f32 to vector<2x5x8xf32>
    %99 = arith.mulf %97, %98 : vector<2x5x8xf32>
    %100 = arith.truncf %99 : vector<2x5x8xf32> to vector<2x5x8xbf16>
    %101 = vector.extract_strided_slice %33 {offsets = [0, 0, 56], sizes = [2, 5, 8], strides = [1, 1, 1]} : vector<2x5x96xf32> to vector<2x5x8xf32>
    %102 = arith.truncf %101 : vector<2x5x8xf32> to vector<2x5x8xbf16>
    %103 = vector.extract_strided_slice %33 {offsets = [0, 0, 88], sizes = [2, 5, 8], strides = [1, 1, 1]} : vector<2x5x96xf32> to vector<2x5x8xf32>
    %104 = arith.truncf %103 : vector<2x5x8xf32> to vector<2x5x8xbf16>
    "tpu.trace_start"() <{level = 10 : i32, message = "bqd,bkd->bqk"}> : () -> ()
    %cst_31 = arith.constant dense<0.000000e+00> : vector<2x5x5xf32>
    %105 = tpu.matmul %100, %102, %cst_31 {dimension_numbers = #tpu.dot_dimension_numbers<[2], [2], [1], [1], [0, 0, 0, 1, 1, 1], [0], [0]>} : vector<2x5x8xbf16>, vector<2x5x8xbf16>, vector<2x5x5xf32> -> vector<2x5x5xf32>
    "tpu.trace_stop"() : () -> ()
    %cst_32 = arith.constant dense<0xFF800000> : vector<2x5xf32>
    %106 = vector.multi_reduction <maximumf>, %105, %cst_32 [2] : vector<2x5x5xf32> to vector<2x5xf32>
    %107 = vector.shape_cast %106 : vector<2x5xf32> to vector<2x5x1xf32>
    %108 = vector.broadcast %107 : vector<2x5x1xf32> to vector<2x5x5xf32>
    %109 = arith.subf %105, %108 : vector<2x5x5xf32>
    %110 = math.exp %109 : vector<2x5x5xf32>
    %cst_33 = arith.constant dense<0.000000e+00> : vector<2x5xf32>
    %111 = vector.multi_reduction <add>, %110, %cst_33 [2] : vector<2x5x5xf32> to vector<2x5xf32>
    %112 = vector.shape_cast %111 : vector<2x5xf32> to vector<2x5x1xf32>
    %113 = tpu.reciprocal %112 {approx = true} : vector<2x5x1xf32> -> vector<2x5x1xf32>
    %114 = vector.broadcast %113 : vector<2x5x1xf32> to vector<2x5x5xf32>
    %115 = arith.mulf %110, %114 : vector<2x5x5xf32>
    %116 = arith.truncf %115 : vector<2x5x5xf32> to vector<2x5x5xbf16>
    "tpu.trace_start"() <{level = 10 : i32, message = "bqk,bkd->bqd"}> : () -> ()
    %cst_34 = arith.constant dense<0.000000e+00> : vector<2x5x8xf32>
    %117 = tpu.matmul %116, %104, %cst_34 {dimension_numbers = #tpu.dot_dimension_numbers<[2], [1], [1], [2], [0, 0, 0, 1, 1, 2], [0], [0]>} : vector<2x5x5xbf16>, vector<2x5x8xbf16>, vector<2x5x8xf32> -> vector<2x5x8xf32>
    "tpu.trace_stop"() : () -> ()
    %118 = tpu.concatenate %54, %75, %96, %117 in 2 : vector<2x5x8xf32>, vector<2x5x8xf32>, vector<2x5x8xf32>, vector<2x5x8xf32> -> vector<2x5x32xf32>
    %119 = vector.shape_cast %118 : vector<2x5x32xf32> to vector<10x32xf32>
    %120 = arith.truncf %119 : vector<10x32xf32> to vector<10x32xbf16>
    %c0_35 = arith.constant 0 : index
    %c0_36 = arith.constant 0 : index
    %121 = vector.load %arg6[%c0_35, %c0_36] : memref<32x32xbf16, #tpu.memory_space<vmem>>, vector<32x32xbf16>
    %cst_37 = arith.constant dense<0.000000e+00> : vector<10x32xf32>
    %122 = tpu.matmul %120, %121, %cst_37 {dimension_numbers = #tpu.dot_dimension_numbers<[1], [0], [0], [1], [0, 0, 1, 1], [], []>} : vector<10x32xbf16>, vector<32x32xbf16>, vector<10x32xf32> -> vector<10x32xf32>
    %c0_38 = arith.constant 0 : index
    %c0_39 = arith.constant 0 : index
    %123 = vector.load %arg7[%c0_38, %c0_39] : memref<1x32xf32, #tpu.memory_space<vmem>>, vector<1x32xf32>
    %124 = vector.broadcast %123 : vector<1x32xf32> to vector<10x32xf32>
    %125 = arith.addf %122, %124 : vector<10x32xf32>
    %126 = vector.shape_cast %125 : vector<10x32xf32> to vector<2x5x32xf32>
    %127 = arith.truncf %126 : vector<2x5x32xf32> to vector<2x5x32xbf16>
    %c0_40 = arith.constant 0 : index
    %c0_41 = arith.constant 0 : index
    %c0_42 = arith.constant 0 : index
    %128 = vector.load %arg8[%c0_40, %c0_41, %c0_42] : memref<2x5x32xbf16, #tpu.memory_space<vmem>>, vector<2x5x32xbf16>
    tpu.vector_store %arg8[%c0_40, %c0_41, %c0_42], %127 {strides = array<i32>} : memref<2x5x32xbf16, #tpu.memory_space<vmem>>, vector<2x5x32xbf16>,
    return
  }
  func.func @transform_0(%arg0: i32) -> (i32, i32, i32) {
    %c0_i32 = arith.constant 0 : i32
    %c0_i32_0 = arith.constant 0 : i32
    %c0_i32_1 = arith.constant 0 : i32
    return %arg0, %c0_i32, %c0_i32_0 : i32, i32, i32
  }
  func.func @transform_1(%arg0: i32) -> (i32, i32) {
    %c0_i32 = arith.constant 0 : i32
    %c0_i32_0 = arith.constant 0 : i32
    %c0_i32_1 = arith.constant 0 : i32
    return %c0_i32, %c0_i32_0 : i32, i32
  }
  func.func @transform_2(%arg0: i32) -> (i32, i32) {
    %c0_i32 = arith.constant 0 : i32
    %c0_i32_0 = arith.constant 0 : i32
    %c0_i32_1 = arith.constant 0 : i32
    return %c0_i32, %c0_i32_0 : i32, i32
  }
  func.func @transform_3(%arg0: i32) -> (i32, i32) {
    %c0_i32 = arith.constant 0 : i32
    %c0_i32_0 = arith.constant 0 : i32
    %c0_i32_1 = arith.constant 0 : i32
    return %c0_i32, %c0_i32_0 : i32, i32
  }
  func.func @transform_4(%arg0: i32) -> (i32, i32) {
    %c0_i32 = arith.constant 0 : i32
    %c0_i32_0 = arith.constant 0 : i32
    %c0_i32_1 = arith.constant 0 : i32
    return %c0_i32, %c0_i32_0 : i32, i32
  }
  func.func @transform_5(%arg0: i32) -> (i32, i32) {
    %c0_i32 = arith.constant 0 : i32
    %c0_i32_0 = arith.constant 0 : i32
    %c0_i32_1 = arith.constant 0 : i32
    return %c0_i32, %c0_i32_0 : i32, i32
  }
  func.func @transform_6(%arg0: i32) -> (i32, i32) {
    %c0_i32 = arith.constant 0 : i32
    %c0_i32_0 = arith.constant 0 : i32
    %c0_i32_1 = arith.constant 0 : i32
    return %c0_i32, %c0_i32_0 : i32, i32
  }
  func.func @transform_7(%arg0: i32) -> (i32, i32, i32) {
    %c0_i32 = arith.constant 0 : i32
    %c0_i32_0 = arith.constant 0 : i32
    %c0_i32_1 = arith.constant 0 : i32
    return %arg0, %c0_i32, %c0_i32_0 : i32, i32, i32
  }
}

module attributes {stable_mosaic.version = 11 : i64} {
  func.func @_mlp_kernel(%arg0: i32, %arg1: memref<16x32xbf16, #tpu.memory_space<vmem>>, %arg2: memref<1x32xf32, #tpu.memory_space<vmem>>, %arg3: memref<1x32xf32, #tpu.memory_space<vmem>>, %arg4: memref<32x64xbf16, #tpu.memory_space<vmem>>, %arg5: memref<1x64xf32, #tpu.memory_space<vmem>>, %arg6: memref<64x32xbf16, #tpu.memory_space<vmem>>, %arg7: memref<1x32xf32, #tpu.memory_space<vmem>>, %arg8: memref<16x32xbf16, #tpu.memory_space<vmem>>) attributes {dimension_semantics = [#tpu.dimension_semantics<parallel>], iteration_bounds = array<i64: 2>, scalar_prefetch = 0 : i64, scratch_operands = 0 : i64, tpu.core_type = #tpu.core_type<tc>, window_params = [{transform_indices = @transform_0, window_bounds = array<i64: 16, 32>}, {pipeline_mode = #tpu.pipeline_mode<synchronous>, transform_indices = @transform_1, window_bounds = array<i64: 1, 32>}, {pipeline_mode = #tpu.pipeline_mode<synchronous>, transform_indices = @transform_2, window_bounds = array<i64: 1, 32>}, {pipeline_mode = #tpu.pipeline_mode<synchronous>, transform_indices = @transform_3, window_bounds = array<i64: 32, 64>}, {pipeline_mode = #tpu.pipeline_mode<synchronous>, transform_indices = @transform_4, window_bounds = array<i64: 1, 64>}, {pipeline_mode = #tpu.pipeline_mode<synchronous>, transform_indices = @transform_5, window_bounds = array<i64: 64, 32>}, {pipeline_mode = #tpu.pipeline_mode<synchronous>, transform_indices = @transform_6, window_bounds = array<i64: 1, 32>}, {transform_indices = @transform_7, window_bounds = array<i64: 16, 32>}]} {
    %c0 = arith.constant 0 : index
    %c0_0 = arith.constant 0 : index
    %0 = vector.load %arg1[%c0, %c0_0] : memref<16x32xbf16, #tpu.memory_space<vmem>>, vector<16x32xbf16>
    %1 = arith.extf %0 : vector<16x32xbf16> to vector<16x32xf32>
    %c0_1 = arith.constant 0 : index
    %c0_2 = arith.constant 0 : index
    %2 = vector.load %arg2[%c0_1, %c0_2] : memref<1x32xf32, #tpu.memory_space<vmem>>, vector<1x32xf32>
    %c0_3 = arith.constant 0 : index
    %c0_4 = arith.constant 0 : index
    %3 = vector.load %arg3[%c0_3, %c0_4] : memref<1x32xf32, #tpu.memory_space<vmem>>, vector<1x32xf32>
    %cst = arith.constant dense<0.000000e+00> : vector<16xf32>
    %4 = vector.multi_reduction <add>, %1, %cst [1] : vector<16x32xf32> to vector<16xf32>
    %5 = vector.shape_cast %4 : vector<16xf32> to vector<16x1xf32>
    %cst_5 = arith.constant 3.200000e+01 : f32
    %6 = vector.broadcast %cst_5 : f32 to vector<16x1xf32>
    %7 = arith.divf %5, %6 : vector<16x1xf32>
    %8 = vector.broadcast %7 : vector<16x1xf32> to vector<16x32xf32>
    %9 = arith.subf %1, %8 : vector<16x32xf32>
    %10 = arith.mulf %9, %9 : vector<16x32xf32>
    %cst_6 = arith.constant dense<0.000000e+00> : vector<16xf32>
    %11 = vector.multi_reduction <add>, %10, %cst_6 [1] : vector<16x32xf32> to vector<16xf32>
    %12 = vector.shape_cast %11 : vector<16xf32> to vector<16x1xf32>
    %cst_7 = arith.constant 3.200000e+01 : f32
    %13 = vector.broadcast %cst_7 : f32 to vector<16x1xf32>
    %14 = arith.divf %12, %13 : vector<16x1xf32>
    %15 = vector.broadcast %7 : vector<16x1xf32> to vector<16x32xf32>
    %16 = arith.subf %1, %15 : vector<16x32xf32>
    %cst_8 = arith.constant 9.99999997E-7 : f32
    %17 = vector.broadcast %cst_8 : f32 to vector<16x1xf32>
    %18 = arith.addf %14, %17 : vector<16x1xf32>
    %19 = math.rsqrt %18 : vector<16x1xf32>
    %20 = vector.broadcast %19 : vector<16x1xf32> to vector<16x32xf32>
    %21 = arith.mulf %16, %20 : vector<16x32xf32>
    %22 = vector.broadcast %2 : vector<1x32xf32> to vector<16x32xf32>
    %23 = arith.mulf %21, %22 : vector<16x32xf32>
    %24 = vector.broadcast %3 : vector<1x32xf32> to vector<16x32xf32>
    %25 = arith.addf %23, %24 : vector<16x32xf32>
    %26 = arith.truncf %25 : vector<16x32xf32> to vector<16x32xbf16>
    %c0_9 = arith.constant 0 : index
    %c0_10 = arith.constant 0 : index
    %27 = vector.load %arg4[%c0_9, %c0_10] : memref<32x64xbf16, #tpu.memory_space<vmem>>, vector<32x64xbf16>
    %cst_11 = arith.constant dense<0.000000e+00> : vector<16x64xf32>
    %28 = tpu.matmul %26, %27, %cst_11 {dimension_numbers = #tpu.dot_dimension_numbers<[1], [0], [0], [1], [0, 0, 1, 1], [], []>} : vector<16x32xbf16>, vector<32x64xbf16>, vector<16x64xf32> -> vector<16x64xf32>
    %c0_12 = arith.constant 0 : index
    %c0_13 = arith.constant 0 : index
    %29 = vector.load %arg5[%c0_12, %c0_13] : memref<1x64xf32, #tpu.memory_space<vmem>>, vector<1x64xf32>
    %30 = vector.broadcast %29 : vector<1x64xf32> to vector<16x64xf32>
    %31 = arith.addf %28, %30 : vector<16x64xf32>
    %cst_14 = arith.constant 5.000000e-01 : f32
    %32 = vector.broadcast %cst_14 : f32 to vector<16x64xf32>
    %33 = arith.mulf %32, %31 : vector<16x64xf32>
    %cst_15 = arith.constant 0.707106769 : f32
    %34 = vector.broadcast %cst_15 : f32 to vector<16x64xf32>
    %35 = arith.mulf %31, %34 : vector<16x64xf32>
    %cst_16 = arith.constant 0.000000e+00 : f32
    %36 = vector.broadcast %cst_16 : f32 to vector<16x64xf32>
    %37 = arith.cmpf olt, %35, %36 : vector<16x64xf32>
    %cst_17 = arith.constant -1.000000e+00 : f32
    %cst_18 = arith.constant 1.000000e+00 : f32
    %38 = vector.broadcast %cst_17 : f32 to vector<16x64xf32>
    %39 = vector.broadcast %cst_18 : f32 to vector<16x64xf32>
    %40 = arith.select %37, %38, %39 : vector<16x64xi1>, vector<16x64xf32>
    %41 = math.absf %35 : vector<16x64xf32>
    %cst_19 = arith.constant 0.327591091 : f32
    %42 = vector.broadcast %cst_19 : f32 to vector<16x64xf32>
    %43 = arith.mulf %42, %41 : vector<16x64xf32>
    %cst_20 = arith.constant 1.000000e+00 : f32
    %44 = vector.broadcast %cst_20 : f32 to vector<16x64xf32>
    %45 = arith.addf %44, %43 : vector<16x64xf32>
    %46 = tpu.reciprocal %45 {approx = true} : vector<16x64xf32> -> vector<16x64xf32>
    %cst_21 = arith.constant 1.06140542 : f32
    %47 = vector.broadcast %cst_21 : f32 to vector<16x64xf32>
    %48 = arith.mulf %46, %47 : vector<16x64xf32>
    %cst_22 = arith.constant -1.45315206 : f32
    %49 = vector.broadcast %cst_22 : f32 to vector<16x64xf32>
    %50 = arith.addf %49, %48 : vector<16x64xf32>
    %51 = arith.mulf %46, %50 : vector<16x64xf32>
    %cst_23 = arith.constant 1.42141378 : f32
    %52 = vector.broadcast %cst_23 : f32 to vector<16x64xf32>
    %53 = arith.addf %52, %51 : vector<16x64xf32>
    %54 = arith.mulf %46, %53 : vector<16x64xf32>
    %cst_24 = arith.constant -0.284496725 : f32
    %55 = vector.broadcast %cst_24 : f32 to vector<16x64xf32>
    %56 = arith.addf %55, %54 : vector<16x64xf32>
    %57 = arith.mulf %46, %56 : vector<16x64xf32>
    %cst_25 = arith.constant 0.254829586 : f32
    %58 = vector.broadcast %cst_25 : f32 to vector<16x64xf32>
    %59 = arith.addf %58, %57 : vector<16x64xf32>
    %60 = arith.mulf %46, %59 : vector<16x64xf32>
    %cst_26 = arith.constant 0.000000e+00 : f32
    %61 = vector.broadcast %cst_26 : f32 to vector<16x64xf32>
    %62 = arith.subf %61, %41 : vector<16x64xf32>
    %63 = arith.mulf %62, %41 : vector<16x64xf32>
    %64 = math.exp %63 : vector<16x64xf32>
    %65 = arith.mulf %60, %64 : vector<16x64xf32>
    %cst_27 = arith.constant 1.000000e+00 : f32
    %66 = vector.broadcast %cst_27 : f32 to vector<16x64xf32>
    %67 = arith.subf %66, %65 : vector<16x64xf32>
    %68 = arith.mulf %40, %67 : vector<16x64xf32>
    %cst_28 = arith.constant 1.000000e+00 : f32
    %69 = vector.broadcast %cst_28 : f32 to vector<16x64xf32>
    %70 = arith.addf %69, %68 : vector<16x64xf32>
    %71 = arith.mulf %33, %70 : vector<16x64xf32>
    %72 = arith.truncf %71 : vector<16x64xf32> to vector<16x64xbf16>
    %c0_29 = arith.constant 0 : index
    %c0_30 = arith.constant 0 : index
    %73 = vector.load %arg6[%c0_29, %c0_30] : memref<64x32xbf16, #tpu.memory_space<vmem>>, vector<64x32xbf16>
    %cst_31 = arith.constant dense<0.000000e+00> : vector<16x32xf32>
    %74 = tpu.matmul %72, %73, %cst_31 {dimension_numbers = #tpu.dot_dimension_numbers<[1], [0], [0], [1], [0, 0, 1, 1], [], []>} : vector<16x64xbf16>, vector<64x32xbf16>, vector<16x32xf32> -> vector<16x32xf32>
    %c0_32 = arith.constant 0 : index
    %c0_33 = arith.constant 0 : index
    %75 = vector.load %arg7[%c0_32, %c0_33] : memref<1x32xf32, #tpu.memory_space<vmem>>, vector<1x32xf32>
    %76 = vector.broadcast %75 : vector<1x32xf32> to vector<16x32xf32>
    %77 = arith.addf %74, %76 : vector<16x32xf32>
    %78 = arith.addf %77, %1 : vector<16x32xf32>
    %79 = arith.truncf %78 : vector<16x32xf32> to vector<16x32xbf16>
    %c0_34 = arith.constant 0 : index
    %c0_35 = arith.constant 0 : index
    %80 = vector.load %arg8[%c0_34, %c0_35] : memref<16x32xbf16, #tpu.memory_space<vmem>>, vector<16x32xbf16>
    tpu.vector_store %arg8[%c0_34, %c0_35], %79 {strides = array<i32>} : memref<16x32xbf16, #tpu.memory_space<vmem>>, vector<16x32xbf16>,
    return
  }
  func.func @transform_0(%arg0: i32) -> (i32, i32) {
    %c0_i32 = arith.constant 0 : i32
    %c0_i32_0 = arith.constant 0 : i32
    return %arg0, %c0_i32 : i32, i32
  }
  func.func @transform_1(%arg0: i32) -> (i32, i32) {
    %c0_i32 = arith.constant 0 : i32
    %c0_i32_0 = arith.constant 0 : i32
    %c0_i32_1 = arith.constant 0 : i32
    return %c0_i32, %c0_i32_0 : i32, i32
  }
  func.func @transform_2(%arg0: i32) -> (i32, i32) {
    %c0_i32 = arith.constant 0 : i32
    %c0_i32_0 = arith.constant 0 : i32
    %c0_i32_1 = arith.constant 0 : i32
    return %c0_i32, %c0_i32_0 : i32, i32
  }
  func.func @transform_3(%arg0: i32) -> (i32, i32) {
    %c0_i32 = arith.constant 0 : i32
    %c0_i32_0 = arith.constant 0 : i32
    %c0_i32_1 = arith.constant 0 : i32
    return %c0_i32, %c0_i32_0 : i32, i32
  }
  func.func @transform_4(%arg0: i32) -> (i32, i32) {
    %c0_i32 = arith.constant 0 : i32
    %c0_i32_0 = arith.constant 0 : i32
    %c0_i32_1 = arith.constant 0 : i32
    return %c0_i32, %c0_i32_0 : i32, i32
  }
  func.func @transform_5(%arg0: i32) -> (i32, i32) {
    %c0_i32 = arith.constant 0 : i32
    %c0_i32_0 = arith.constant 0 : i32
    %c0_i32_1 = arith.constant 0 : i32
    return %c0_i32, %c0_i32_0 : i32, i32
  }
  func.func @transform_6(%arg0: i32) -> (i32, i32) {
    %c0_i32 = arith.constant 0 : i32
    %c0_i32_0 = arith.constant 0 : i32
    %c0_i32_1 = arith.constant 0 : i32
    return %c0_i32, %c0_i32_0 : i32, i32
  }
  func.func @transform_7(%arg0: i32) -> (i32, i32) {
    %c0_i32 = arith.constant 0 : i32
    %c0_i32_0 = arith.constant 0 : i32
    return %arg0, %c0_i32 : i32, i32
  }
}

module attributes {stable_mosaic.version = 11 : i64} {
  func.func @_head_kernel(%arg0: memref<2x32xbf16, #tpu.memory_space<vmem>>, %arg1: memref<1x32xf32, #tpu.memory_space<vmem>>, %arg2: memref<1x32xf32, #tpu.memory_space<vmem>>, %arg3: memref<32x128xbf16, #tpu.memory_space<vmem>>, %arg4: memref<1x128xf32, #tpu.memory_space<vmem>>, %arg5: memref<128x128xbf16, #tpu.memory_space<vmem>>, %arg6: memref<1x128xf32, #tpu.memory_space<vmem>>, %arg7: memref<128x128xbf16, #tpu.memory_space<vmem>>, %arg8: memref<1x128xf32, #tpu.memory_space<vmem>>, %arg9: memref<128x128xbf16, #tpu.memory_space<vmem>>, %arg10: memref<1x128xf32, #tpu.memory_space<vmem>>, %arg11: memref<128x128xbf16, #tpu.memory_space<vmem>>, %arg12: memref<1x128xf32, #tpu.memory_space<vmem>>, %arg13: memref<2x128xf32, #tpu.memory_space<vmem>>) attributes {dimension_semantics = [], scalar_prefetch = 0 : i64, scratch_operands = 0 : i64, tpu.core_type = #tpu.core_type<tc>} {
    %c0 = arith.constant 0 : index
    %c0_0 = arith.constant 0 : index
    %0 = vector.load %arg0[%c0, %c0_0] : memref<2x32xbf16, #tpu.memory_space<vmem>>, vector<2x32xbf16>
    %1 = arith.extf %0 : vector<2x32xbf16> to vector<2x32xf32>
    %c0_1 = arith.constant 0 : index
    %c0_2 = arith.constant 0 : index
    %2 = vector.load %arg1[%c0_1, %c0_2] : memref<1x32xf32, #tpu.memory_space<vmem>>, vector<1x32xf32>
    %c0_3 = arith.constant 0 : index
    %c0_4 = arith.constant 0 : index
    %3 = vector.load %arg2[%c0_3, %c0_4] : memref<1x32xf32, #tpu.memory_space<vmem>>, vector<1x32xf32>
    %cst = arith.constant dense<0.000000e+00> : vector<2xf32>
    %4 = vector.multi_reduction <add>, %1, %cst [1] : vector<2x32xf32> to vector<2xf32>
    %5 = vector.shape_cast %4 : vector<2xf32> to vector<2x1xf32>
    %cst_5 = arith.constant 3.200000e+01 : f32
    %6 = vector.broadcast %cst_5 : f32 to vector<2x1xf32>
    %7 = arith.divf %5, %6 : vector<2x1xf32>
    %8 = vector.broadcast %7 : vector<2x1xf32> to vector<2x32xf32>
    %9 = arith.subf %1, %8 : vector<2x32xf32>
    %10 = arith.mulf %9, %9 : vector<2x32xf32>
    %cst_6 = arith.constant dense<0.000000e+00> : vector<2xf32>
    %11 = vector.multi_reduction <add>, %10, %cst_6 [1] : vector<2x32xf32> to vector<2xf32>
    %12 = vector.shape_cast %11 : vector<2xf32> to vector<2x1xf32>
    %cst_7 = arith.constant 3.200000e+01 : f32
    %13 = vector.broadcast %cst_7 : f32 to vector<2x1xf32>
    %14 = arith.divf %12, %13 : vector<2x1xf32>
    %15 = vector.broadcast %7 : vector<2x1xf32> to vector<2x32xf32>
    %16 = arith.subf %1, %15 : vector<2x32xf32>
    %cst_8 = arith.constant 9.99999997E-7 : f32
    %17 = vector.broadcast %cst_8 : f32 to vector<2x1xf32>
    %18 = arith.addf %14, %17 : vector<2x1xf32>
    %19 = math.rsqrt %18 : vector<2x1xf32>
    %20 = vector.broadcast %19 : vector<2x1xf32> to vector<2x32xf32>
    %21 = arith.mulf %16, %20 : vector<2x32xf32>
    %22 = vector.broadcast %2 : vector<1x32xf32> to vector<2x32xf32>
    %23 = arith.mulf %21, %22 : vector<2x32xf32>
    %24 = vector.broadcast %3 : vector<1x32xf32> to vector<2x32xf32>
    %25 = arith.addf %23, %24 : vector<2x32xf32>
    %26 = arith.truncf %25 : vector<2x32xf32> to vector<2x32xbf16>
    %c0_9 = arith.constant 0 : index
    %c0_10 = arith.constant 0 : index
    %27 = vector.load %arg3[%c0_9, %c0_10] : memref<32x128xbf16, #tpu.memory_space<vmem>>, vector<32x128xbf16>
    %cst_11 = arith.constant dense<0.000000e+00> : vector<2x128xf32>
    %28 = tpu.matmul %26, %27, %cst_11 {dimension_numbers = #tpu.dot_dimension_numbers<[1], [0], [0], [1], [0, 0, 1, 1], [], []>} : vector<2x32xbf16>, vector<32x128xbf16>, vector<2x128xf32> -> vector<2x128xf32>
    %c0_12 = arith.constant 0 : index
    %c0_13 = arith.constant 0 : index
    %29 = vector.load %arg4[%c0_12, %c0_13] : memref<1x128xf32, #tpu.memory_space<vmem>>, vector<1x128xf32>
    %30 = vector.broadcast %29 : vector<1x128xf32> to vector<2x128xf32>
    %31 = arith.addf %28, %30 : vector<2x128xf32>
    %cst_14 = arith.constant 0.000000e+00 : f32
    %32 = vector.broadcast %cst_14 : f32 to vector<2x128xf32>
    %33 = arith.maximumf %31, %32 : vector<2x128xf32>
    %34 = arith.truncf %33 : vector<2x128xf32> to vector<2x128xbf16>
    %c0_15 = arith.constant 0 : index
    %c0_16 = arith.constant 0 : index
    %35 = vector.load %arg5[%c0_15, %c0_16] : memref<128x128xbf16, #tpu.memory_space<vmem>>, vector<128x128xbf16>
    %cst_17 = arith.constant dense<0.000000e+00> : vector<2x128xf32>
    %36 = tpu.matmul %34, %35, %cst_17 {dimension_numbers = #tpu.dot_dimension_numbers<[1], [0], [0], [1], [0, 0, 1, 1], [], []>} : vector<2x128xbf16>, vector<128x128xbf16>, vector<2x128xf32> -> vector<2x128xf32>
    %c0_18 = arith.constant 0 : index
    %c0_19 = arith.constant 0 : index
    %37 = vector.load %arg6[%c0_18, %c0_19] : memref<1x128xf32, #tpu.memory_space<vmem>>, vector<1x128xf32>
    %38 = vector.broadcast %37 : vector<1x128xf32> to vector<2x128xf32>
    %39 = arith.addf %36, %38 : vector<2x128xf32>
    %cst_20 = arith.constant 0.000000e+00 : f32
    %40 = vector.broadcast %cst_20 : f32 to vector<2x128xf32>
    %41 = arith.maximumf %39, %40 : vector<2x128xf32>
    %42 = arith.truncf %41 : vector<2x128xf32> to vector<2x128xbf16>
    %c0_21 = arith.constant 0 : index
    %c0_22 = arith.constant 0 : index
    %43 = vector.load %arg7[%c0_21, %c0_22] : memref<128x128xbf16, #tpu.memory_space<vmem>>, vector<128x128xbf16>
    %cst_23 = arith.constant dense<0.000000e+00> : vector<2x128xf32>
    %44 = tpu.matmul %42, %43, %cst_23 {dimension_numbers = #tpu.dot_dimension_numbers<[1], [0], [0], [1], [0, 0, 1, 1], [], []>} : vector<2x128xbf16>, vector<128x128xbf16>, vector<2x128xf32> -> vector<2x128xf32>
    %c0_24 = arith.constant 0 : index
    %c0_25 = arith.constant 0 : index
    %45 = vector.load %arg8[%c0_24, %c0_25] : memref<1x128xf32, #tpu.memory_space<vmem>>, vector<1x128xf32>
    %46 = vector.broadcast %45 : vector<1x128xf32> to vector<2x128xf32>
    %47 = arith.addf %44, %46 : vector<2x128xf32>
    %cst_26 = arith.constant 0.000000e+00 : f32
    %48 = vector.broadcast %cst_26 : f32 to vector<2x128xf32>
    %49 = arith.maximumf %47, %48 : vector<2x128xf32>
    %50 = arith.truncf %49 : vector<2x128xf32> to vector<2x128xbf16>
    %c0_27 = arith.constant 0 : index
    %c0_28 = arith.constant 0 : index
    %51 = vector.load %arg9[%c0_27, %c0_28] : memref<128x128xbf16, #tpu.memory_space<vmem>>, vector<128x128xbf16>
    %cst_29 = arith.constant dense<0.000000e+00> : vector<2x128xf32>
    %52 = tpu.matmul %50, %51, %cst_29 {dimension_numbers = #tpu.dot_dimension_numbers<[1], [0], [0], [1], [0, 0, 1, 1], [], []>} : vector<2x128xbf16>, vector<128x128xbf16>, vector<2x128xf32> -> vector<2x128xf32>
    %c0_30 = arith.constant 0 : index
    %c0_31 = arith.constant 0 : index
    %53 = vector.load %arg10[%c0_30, %c0_31] : memref<1x128xf32, #tpu.memory_space<vmem>>, vector<1x128xf32>
    %54 = vector.broadcast %53 : vector<1x128xf32> to vector<2x128xf32>
    %55 = arith.addf %52, %54 : vector<2x128xf32>
    %cst_32 = arith.constant 0.000000e+00 : f32
    %56 = vector.broadcast %cst_32 : f32 to vector<2x128xf32>
    %57 = arith.maximumf %55, %56 : vector<2x128xf32>
    %58 = arith.truncf %57 : vector<2x128xf32> to vector<2x128xbf16>
    %c0_33 = arith.constant 0 : index
    %c0_34 = arith.constant 0 : index
    %59 = vector.load %arg11[%c0_33, %c0_34] : memref<128x128xbf16, #tpu.memory_space<vmem>>, vector<128x128xbf16>
    %cst_35 = arith.constant dense<0.000000e+00> : vector<2x128xf32>
    %60 = tpu.matmul %58, %59, %cst_35 {dimension_numbers = #tpu.dot_dimension_numbers<[1], [0], [0], [1], [0, 0, 1, 1], [], []>} : vector<2x128xbf16>, vector<128x128xbf16>, vector<2x128xf32> -> vector<2x128xf32>
    %c0_36 = arith.constant 0 : index
    %c0_37 = arith.constant 0 : index
    %61 = vector.load %arg12[%c0_36, %c0_37] : memref<1x128xf32, #tpu.memory_space<vmem>>, vector<1x128xf32>
    %62 = vector.broadcast %61 : vector<1x128xf32> to vector<2x128xf32>
    %63 = arith.addf %60, %62 : vector<2x128xf32>
    %c0_38 = arith.constant 0 : index
    %c0_39 = arith.constant 0 : index
    %64 = vector.load %arg13[%c0_38, %c0_39] : memref<2x128xf32, #tpu.memory_space<vmem>>, vector<2x128xf32>
    tpu.vector_store %arg13[%c0_38, %c0_39], %63 {strides = array<i32>} : memref<2x128xf32, #tpu.memory_space<vmem>>, vector<2x128xf32>,
    return
  }
}

</mosaic_0001>

<bundles_post_ra>
// kernel: eden_forward.8
= control target key start
LH: loop header
LB: loop body
LE: loop exit
PB: predicated region body
PF: predicated region fallthrough
CT: control target
= control target key end

     0   :  { %s513_s12 = smov 0   ;;  %s588_s0 = inlined_call_operand.vmem [shape: bf16[16,256], index: 0, kind: input, shape index: {}]   ;;  %s589_s1 = inlined_call_operand.vmem [shape: bf16[256,128], index: 1, kind: input, shape index: {}]   ;;  %s590_s2 = inlined_call_operand.vmem [shape: f32[1,128], index: 2, kind: input, shape index: {}]   ;;  %s591_s3 = inlined_call_operand.vmem [shape: f32[16,128], index: 3, kind: output, shape index: {}]  }
   0x1 LB: > { %s407_s13 = sadd.s32 4294967295, %s491_s12   ;;  %p411_p0 = scmp.ge.s32.totalorder %s491_s12, 1  ;;  %s491_s12 = sphi %s513_s12, %s13_s12  }
   0x2   : > { %p137_p1 = scmp.lt.s32.totalorder %s491_s12, 3 }
   0x4   : > { %p138_p2 = pnand %p411_p0, %p137_p1 }
   0x5   : > { %v467_v0 = vld [vmem:[%s589_s1 + $0x40] sm:$0xff] (!%p138_p2)   ;;  %v469_v2 = vld [vmem:[%s589_s1 + $0x48] sm:$0xff] (!%p138_p2)   ;;  %p160_p3 = scmp.lt.s32.totalorder (!%p138_p2), %s407_s13, 1  ;;  %v471_v4 = vld [vmem:[%s589_s1 + $0x50] sm:$0xff] (!%p138_p2)  }
   0x6   : > { %141 = sbr.rel (%p138_p2) target bundleno = 256 (0x100), region = 32  ;;  %v468_v1 = vld [vmem:[%s589_s1] sm:$0xff] (!%p138_p2)   ;;  %437 = vmatprep.subr.bf16.mxu0 (!%p138_p2), %v467_v0  ;;  %v470_v3 = vld [vmem:[%s589_s1 + $0x8] sm:$0xff] (!%p138_p2)   ;;  %v472_v5 = vld [vmem:[%s589_s1 + $0x10] sm:$0xff] (!%p138_p2)  }
   0x7   : > { %438 = vmatpush3.bf16.msra.mxu0 (!%p138_p2), %v468_v1  ;;  %v473_v6 = vld [vmem:[%s589_s1 + $0x58] sm:$0xff] (!%p138_p2)   ;;  %v475_v8 = vld [vmem:[%s589_s1 + $0x60] sm:$0xff] (!%p138_p2)   ;;  %v477_v10 = vld [vmem:[%s589_s1 + $0x68] sm:$0xff] (!%p138_p2)  }
   0x8   : > { %439 = vmatprep.subr.bf16.mxu0 (!%p138_p2), %v469_v2  ;;  %v474_v7 = vld [vmem:[%s589_s1 + $0x18] sm:$0xff] (!%p138_p2)   ;;  %v476_v9 = vld [vmem:[%s589_s1 + $0x20] sm:$0xff] (!%p138_p2)   ;;  %v478_v13 = vld [vmem:[%s589_s1 + $0x28] sm:$0xff] (!%p138_p2)  }
   0x9   : > { %v479_v14 = vld [vmem:[%s589_s1 + $0x70] sm:$0xff] (!%p138_p2)   ;;  %v481_v16 = vld [vmem:[%s589_s1 + $0x78] sm:$0xff] (!%p138_p2)   ;;  %v415_v20 = vld [vmem:[%s590_s2] ss:$0 sm:$0xff] (!%p138_p2) }
   0xa   : > { %v480_v15 = vld [vmem:[%s589_s1 + $0x30] sm:$0xff] (!%p138_p2)   ;;  %v482_v17 = vld [vmem:[%s589_s1 + $0x38] sm:$0xff] (!%p138_p2)  }
   0xb   : > { %440 = vmatpush3.bf16.msra.mxu0 (!%p138_p2), %v470_v3 }
   0xc   : > { %441 = vmatprep.subr.bf16.mxu0 (!%p138_p2), %v471_v4 }
   0xd   : > { %s593_s13 = smov (!%p160_p3, %s407_s13), 1 }
   0xe   : > { %s436_s28 = sshll.u32 %s593_s13, 3 }
   0xf   : > { %442 = vmatpush3.bf16.msra.mxu0 %v472_v5  ;;  %s164_s8 = scalar_lea.vmem %s588_s0, %s436_s28  ;;  %s168_s30 = scalar_lea.vmem %s591_s3, %s436_s28 }
  0x10   : > { %443 = vmatprep.subr.bf16.mxu0 %v473_v6  ;;  %v170_v11 = vld [vmem:[%s164_s8] sm:$0xff] }
  0x11   : > { %v417_v12 = vcombine.high %v170_v11, %v170_v11  ;;  %v416_v18 = vcombine.low %v170_v11, %v170_v11 }
  0x13   : > { %444 = vmatpush3.bf16.msra.mxu0 %v474_v7  ;;  %345 = vmatprep.mubr.bf16.mxu0 %v417_v12 }
  0x14   : > { %445 = vmatprep.subr.bf16.mxu0 %v475_v8 }
  0x17   : > { %446 = vmatpush3.bf16.msra.mxu0 %v476_v9 }
  0x18   : > { %447 = vmatprep.subr.bf16.mxu0 %v477_v10 }
  0x1b   : > { %448 = vmatpush3.bf16.msra.mxu0 %v478_v13 }
  0x1c   : > { %449 = vmatprep.subr.bf16.mxu0 %v479_v14 }
  0x1f   : > { %450 = vmatpush3.bf16.msra.mxu0 %v480_v15 }
  0x20   : > { %451 = vmatprep.subr.bf16.mxu0 %v481_v16 }
  0x23   : > { %452 = vmatpush3.bf16.msra.mxu0 %v482_v17 }
  0x26   : > { %346 = vmatmul.mubr.bf16.vlgmr.msra.gmra.mrb[0].mxu0 %v416_v18 }
  0xf9   : > { %v453_v19 = vpop.f32.mrb[0].mxu0 }
  0xfa   : > { %v454_v21 = vpop.f32.mrb[1].mxu0 }
  0xfb   : > { %v455_v22 = vadd.f32 %v454_v21, %v453_v19  ;;  %v456_v23 = vpop.f32.mrb[2].mxu0 }
  0xfc   : > { %v457_v24 = vpop.f32.mrb[3].mxu0 }
  0xfd   : > { %v348_v25 = vadd.f32 %v455_v22, %v415_v20 }
  0xff   : > { %353 = vst [vmem:[%s168_s30] sm:$0xff] %v348_v25 }
 0x100 PF: > { %s13_s12 = sadd.s32 1, %s491_s12  }
 0x101   : > { %p10_p4 = scmp.ge.s32.totalorder %s13_s12, 4  }
 0x103   :  { %12 = sbr.rel (!%p10_p4) target bundleno = 1 (0x1), region = 62 }

// kernel: eden_forward.11
= control target key start
LH: loop header
LB: loop body
LE: loop exit
PB: predicated region body
PF: predicated region fallthrough
CT: control target
= control target key end

     0   :  { %s746_s24 = smov 0   ;;  %s815_s0 = inlined_call_operand.vmem [shape: bf16[32,32], index: 0, kind: input, shape index: {}]   ;;  %s816_s1 = inlined_call_operand.vmem [shape: f32[1,32], index: 1, kind: input, shape index: {}]   ;;  %s817_s2 = inlined_call_operand.vmem [shape: f32[1,32], index: 2, kind: input, shape index: {}]   ;;  %s818_s3 = inlined_call_operand.vmem [shape: bf16[32,64], index: 3, kind: input, shape index: {}]   ;;  %s819_s4 = inlined_call_operand.vmem [shape: f32[1,64], index: 4, kind: input, shape index: {}]   ;;  %s820_s5 = inlined_call_operand.vmem [shape: bf16[64,32], index: 5, kind: input, shape index: {}]   ;;  %s821_s6 = inlined_call_operand.vmem [shape: f32[1,32], index: 6, kind: input, shape index: {}]   ;;  %s822_s7 = inlined_call_operand.vmem [shape: bf16[32,32], index: 7, kind: output, shape index: {}]  }
   0x1 LB: > { %s607_s25 = sadd.s32 4294967295, %s701_s24   ;;  %p611_p0 = scmp.ge.s32.totalorder %s701_s24, 1  ;;  %s701_s24 = sphi %s746_s24, %s17_s24  }
   0x2   : > { %p238_p1 = scmp.lt.s32.totalorder %s701_s24, 3 }
   0x4   : > { %p239_p2 = pnand %p611_p0, %p238_p1 }
   0x5   : > { %s612_s26 = sshll.u32 (!%p239_p2), %s607_s25, 1  ;;  %vm289_vm0 = vcmask (!%p239_p2), 261120   ;;  %v677_v15 = vld [vmem:[%s818_s3] sm:$0xff] (!%p239_p2)   ;;  %v703_v16 = vmov (!%p239_p2), 0.0   ;;  %v678_v17 = vld [vmem:[%s818_s3 + $0x8] sm:$0xff] (!%p239_p2)   ;;  %vm704_vm1 = vmmov (!%p239_p2), 0  }
   0x6   : > { %242 = sbr.rel (%p239_p2) target bundleno = 824 (0x338), region = 48  ;;  %p271_p3 = scmp.lt.s32.totalorder (!%p239_p2), %s612_s26, 3  ;;  %646 = vmatprep.subr.bf16.mxu0 (!%p239_p2), %v703_v16  ;;  %654 = vmatprep.subr.bf16.mxu1 (!%p239_p2), %v703_v16  ;;  %v616_v26 = vld [vmem:[%s816_s1] ss:$0 sm:$0xff] (!%p239_p2)  ;;  %v680_v36 = vld [vmem:[%s820_s5 + $0x8] sm:$0xff] (!%p239_p2)   ;;  %v681_v37 = vld [vmem:[%s820_s5 + $0x10] sm:$0xff] (!%p239_p2)  }
   0x7   : > { %647 = vmatpush3.bf16.msra.mxu0 (!%p239_p2), %v677_v15  ;;  %650 = vmatprep.mubr.msk.bf16.mxu0 (!%p239_p2), %vm704_vm1, %v703_v16  ;;  %v617_v30 = vld [vmem:[%s817_s2] ss:$0 sm:$0xff] (!%p239_p2)  ;;  %v682_v38 = vld [vmem:[%s820_s5 + $0x18] sm:$0xff] (!%p239_p2)   ;;  %vm493_vm4 = vcmask (!%p239_p2), 523264   ;;  %vm548_vm5 = vcmask (!%p239_p2), 257024  }
   0x8   : > { %648 = vmatprep.subr.bf16.mxu0 (!%p239_p2), %v703_v16  ;;  %662 = vmatprep.mubr.msk.bf16.mxu1 (!%p239_p2), %vm704_vm1, %v703_v16  ;;  %v679_v35 = vld [vmem:[%s820_s5] sm:$0xff] (!%p239_p2)  }
   0x9   : > { %655 = vmatpush3.bf16.msra.mxu1 (!%p239_p2), %v679_v35  ;;  %v618_v39 = vld [vmem:[%s819_s4] ss:$0 sm:$0xff] (!%p239_p2) }
   0xa   : > { %656 = vmatprep.subr.bf16.mxu1 (!%p239_p2), %v703_v16 }
   0xb   : > { %649 = vmatpush3.bf16.msra.mxu0 (!%p239_p2), %v678_v17 }
   0xd   : > { %s824_s26 = smov (!%p271_p3, %s612_s26), 3  ;;  %657 = vmatpush3.bf16.msra.mxu1 %v680_v36  ;;  %v622_v36 = vld [vmem:[%s821_s6] ss:$0 sm:$0xff] }
   0xe   : > { %s613_s27 = sshll.u32 %s824_s26, 2  ;;  %658 = vmatprep.subr.bf16.mxu1 %v703_v16 }
   0xf   : > { %s274_s30 = scalar_lea.vmem %s815_s0, %s613_s27  ;;  %s280_s10 = scalar_lea.vmem %s822_s7, %s613_s27 }
  0x10   : > { %v635_v0 = vld [vmem:[%s274_s30] sm:$0xff]  }
  0x11   : > { %v762_v1 = vunpack.c.l.bf16 %v635_v0  ;;  %v764_v2 = vunpack.c.h.bf16 %v635_v0  ;;  %659 = vmatpush3.bf16.msra.mxu1 %v681_v37 }
  0x12   : > { %660 = vmatprep.subr.bf16.mxu1 %v703_v16 }
  0x13   : > { %v290_v3 = vsel %vm289_vm0, %v762_v1, 0.0  ;;  %v293_v4 = vsel %vm289_vm0, %v764_v2, 0.0 }
  0x14   : > { %291 = vadd.xlane.f32.xlu0 %v290_v3 }
  0x15   : > { %661 = vmatpush3.bf16.msra.mxu1 %v682_v38 }
  0x18   : > { %294 = vadd.xlane.f32.xlu0 %v293_v4 }
  0xa1   : > { %v292_v5 = vpop.xlane.xlu0 %291 }
  0xa2   : > { %v297_v6 = vmul.f32 0.03125, %v292_v5 }
  0xa4   : > { %v299_v7 = vsub.f32 %v762_v1, %v297_v6 }
  0xa5   : > { %v295_v8 = vpop.xlane.xlu0 %294 }
  0xa6   : > { %v298_v9 = vmul.f32 0.03125, %v295_v8  ;;  %v301_v10 = vmul.f32 %v299_v7, %v299_v7 }
  0xa8   : > { %v300_v11 = vsub.f32 %v764_v2, %v298_v9  ;;  %v303_v12 = vsel %vm289_vm0, %v301_v10, 0.0 }
  0xa9   : > { %304 = vadd.xlane.f32.xlu1 %v303_v12 }
  0xaa   : > { %v302_v13 = vmul.f32 %v300_v11, %v300_v11 }
  0xac   : > { %v306_v14 = vsel %vm289_vm0, %v302_v13, 0.0 }
  0xad   : > { %307 = vadd.xlane.f32.xlu1 %v306_v14 }
 0x136   : > { %v305_v18 = vpop.xlane.xlu1 %304 }
 0x137   : > { %v309_v19 = vmul.f32 0.03125, %v305_v18 }
 0x139   : > { %v311_v20 = vadd.f32 1e-06, %v309_v19 }
 0x13a   : > { %v308_v21 = vpop.xlane.xlu1 %307 }
 0x13b   : > { %683 = vrsqrt.f32 %v311_v20  ;;  %v310_v22 = vmul.f32 0.03125, %v308_v21 }
 0x13d   : > { %v312_v23 = vadd.f32 1e-06, %v310_v22  ;;  %v705_v22 = vmov 1.0  }
 0x13f   : > { %685 = vrsqrt.f32 %v312_v23 }
 0x145   : > { %v684_v24 = vpop.eup %683 }
 0x146   : > { %v315_v25 = vmul.f32 %v684_v24, %v299_v7 }
 0x148   : > { %v323_v29 = vmul.f32 %v616_v26, %v315_v25 }
 0x149   : > { %v686_v27 = vpop.eup %685 }
 0x14a   : > { %v316_v28 = vmul.f32 %v686_v27, %v300_v11  ;;  %v331_v32 = vadd.f32 %v617_v30, %v323_v29 }
 0x14c   : > { %v324_v31 = vmul.f32 %v616_v26, %v316_v28 }
 0x14e   : > { %v332_v33 = vadd.f32 %v617_v30, %v324_v31 }
 0x150   : > { %v333_v34 = vpack.c.bf16 %v332_v33, %v331_v32 }
 0x152   : > { %651 = vmatmul.mubr.msk.bf16.vlgmr.msra.gmra.mrb[0].mxu0 %vm289_vm0, %v333_v34 }
 0x225   : > { %v394_v40 = vpop.f32.mrb[0].mxu0 }
 0x226   : > { %v395_v41 = vadd.f32 %v618_v39, %v394_v40  ;;  %v652_v42 = vpop.f32.mrb[1].mxu0 }
 0x227   : > { %v397_v43 = vpop.f32.mrb[2].mxu0 }
 0x228   : > { %v403_v44 = vmul.f32 0.70710677, %v395_v41  ;;  %v398_v45 = vadd.f32 %v618_v39, %v397_v43  ;;  %v653_v46 = vpop.f32.mrb[3].mxu0  ;;  %v401_v30 = vmul.f32 0.5, %v395_v41 }
 0x22a   : > { %v409_v47 = vand.u32 2147483647, %v403_v44  ;;  %v404_v48 = vmul.f32 0.70710677, %v398_v45  ;;  %vm405_vm2 = vcmp.lt.f32.partialorder %v403_v44, 0.0  ;;  %v402_v31 = vmul.f32 0.5, %v398_v45 }
 0x22b   : > { %v407_v23 = vsel %vm405_vm2, -1.0, %v705_v22 }
 0x22c   : > { %v411_v49 = vmul.f32 0.3275911, %v409_v47  ;;  %v410_v50 = vand.u32 2147483647, %v404_v48  ;;  %v435_v54 = vsub.f32 0.0, %v409_v47  ;;  %vm406_vm3 = vcmp.lt.f32.partialorder %v404_v48, 0.0 }
 0x22d   : > { %v408_v27 = vsel %vm406_vm3, -1.0, %v705_v22 }
 0x22e   : > { %v413_v51 = vadd.f32 1.0, %v411_v49  ;;  %v412_v52 = vmul.f32 0.3275911, %v410_v50  ;;  %v436_v55 = vsub.f32 0.0, %v410_v50  ;;  %v437_v57 = vmul.f32 %v435_v54, %v409_v47 }
 0x230   : > { %687 = vrcp.f32 %v413_v51  ;;  %v414_v53 = vadd.f32 1.0, %v412_v52  ;;  %v438_v61 = vmul.f32 %v436_v55, %v410_v50  ;;  %v439_v62 = vmul.f32 1.442695, %v437_v57 }
 0x232   : > { %689 = vrcp.f32 %v414_v53  ;;  %v441_v5 = vmul.f32 1.442695, %v438_v61 }
 0x233   : > { %691 = vpow2.f32 %v439_v62 }
 0x234   : > { %693 = vpow2.f32 %v441_v5 }
 0x23a   : > { %v688_v56 = vpop.eup %687 }
 0x23b   : > { %v417_v58 = vmul.f32 1.0614054, %v688_v56 }
 0x23c   : > { %v690_v59 = vpop.eup %689 }
 0x23d   : > { %v419_v60 = vadd.f32 -1.4531521, %v417_v58  ;;  %v418_v63 = vmul.f32 1.0614054, %v690_v59  ;;  %v692_v16 = vpop.eup %691 }
 0x23e   : > { %v694_v20 = vpop.eup %693 }
 0x23f   : > { %v421_v0 = vmul.f32 %v688_v56, %v419_v60  ;;  %v420_v3 = vadd.f32 -1.4531521, %v418_v63 }
 0x241   : > { %v423_v4 = vadd.f32 1.4214138, %v421_v0  ;;  %v422_v6 = vmul.f32 %v690_v59, %v420_v3 }
 0x243   : > { %v425_v7 = vmul.f32 %v688_v56, %v423_v4  ;;  %v424_v8 = vadd.f32 1.4214138, %v422_v6 }
 0x245   : > { %v427_v9 = vadd.f32 -0.28449672, %v425_v7  ;;  %v426_v10 = vmul.f32 %v690_v59, %v424_v8 }
 0x247   : > { %v429_v11 = vmul.f32 %v688_v56, %v427_v9  ;;  %v428_v12 = vadd.f32 -0.28449672, %v426_v10 }
 0x249   : > { %v431_v13 = vadd.f32 0.2548296, %v429_v11  ;;  %v430_v14 = vmul.f32 %v690_v59, %v428_v12 }
 0x24b   : > { %v433_v15 = vmul.f32 %v688_v56, %v431_v13  ;;  %v432_v17 = vadd.f32 0.2548296, %v430_v14 }
 0x24d   : > { %v443_v18 = vmul.f32 %v692_v16, %v433_v15  ;;  %v434_v19 = vmul.f32 %v690_v59, %v432_v17 }
 0x24f   : > { %v445_v21 = vsub.f32 1.0, %v443_v18  ;;  %v444_v24 = vmul.f32 %v694_v20, %v434_v19 }
 0x251   : > { %v447_v25 = vmul.f32 %v445_v21, %v407_v23  ;;  %v446_v26 = vsub.f32 1.0, %v444_v24 }
 0x253   : > { %v449_v28 = vadd.f32 1.0, %v447_v25  ;;  %v448_v29 = vmul.f32 %v446_v26, %v408_v27 }
 0x255   : > { %v450_v32 = vadd.f32 1.0, %v448_v29  ;;  %v451_v33 = vmul.f32 %v449_v28, %v401_v30 }
 0x257   : > { %v452_v34 = vmul.f32 %v450_v32, %v402_v31 }
 0x259   : > { %v453_v35 = vpack.c.bf16 %v452_v34, %v451_v33 }
 0x25b   : > { %663 = vmatmul.mubr.msk.bf16.vlgmr.msra.gmra.mrb[0].mxu1 %vm493_vm4, %v453_v35 }
 0x32e   : > { %v531_v37 = vpop.f32.mrb[0].mxu1 }
 0x32f   : > { %v532_v38 = vadd.f32 %v622_v36, %v531_v37  ;;  %v664_v39 = vpop.f32.mrb[1].mxu1 }
 0x330   : > { %v534_v40 = vpop.f32.mrb[2].mxu1 }
 0x331   : > { %v538_v42 = vadd.f32 %v762_v1, %v532_v38  ;;  %v535_v43 = vadd.f32 %v622_v36, %v534_v40  ;;  %v665_v41 = vpop.f32.mrb[3].mxu1 }
 0x333   : > { %v632_v44 = vpack.c.bf16 %v538_v42, %v538_v42  ;;  %v539_v45 = vadd.f32 %v764_v2, %v535_v43 }
 0x335   : > { %549 = vst.msk [vmem:[%s280_s10] sm:$0xf] %vm548_vm5, %v632_v44  ;;  %v633_v46 = vpack.c.bf16 %v539_v45, %v539_v45 }
 0x337   : > { %550 = vst.msk [vmem:[%s280_s10 + $0x4] sm:$0xf] %vm548_vm5, %v633_v46 }
 0x338 PF: > { %s17_s24 = sadd.s32 1, %s701_s24  }
 0x339   : > { %p14_p4 = scmp.ge.s32.totalorder %s17_s24, 4  }
 0x33b   :  { %16 = sbr.rel (!%p14_p4) target bundleno = 1 (0x1), region = 78 }

// kernel: eden_forward.15
= control target key start
LH: loop header
LB: loop body
LE: loop exit
PB: predicated region body
PF: predicated region fallthrough
CT: control target
= control target key end

     0   :  { %vm50_vm0 = vcmask 254976   ;;  %s1101_s0 = inlined_call_operand.vmem [shape: bf16[2,32], index: 0, kind: input, shape index: {}]   ;;  %s1102_s1 = inlined_call_operand.vmem [shape: f32[1,32], index: 1, kind: input, shape index: {}]   ;;  %s1103_s2 = inlined_call_operand.vmem [shape: f32[1,32], index: 2, kind: input, shape index: {}]   ;;  %s1104_s3 = inlined_call_operand.vmem [shape: bf16[32,128], index: 3, kind: input, shape index: {}]   ;;  %s1105_s4 = inlined_call_operand.vmem [shape: f32[1,128], index: 4, kind: input, shape index: {}]   ;;  %s1106_s5 = inlined_call_operand.vmem [shape: bf16[128,128], index: 5, kind: input, shape index: {}]   ;;  %s1107_s6 = inlined_call_operand.vmem [shape: f32[1,128], index: 6, kind: input, shape index: {}]   ;;  %s1108_s7 = inlined_call_operand.vmem [shape: bf16[128,128], index: 7, kind: input, shape index: {}]   ;;  %s1109_s8 = inlined_call_operand.vmem [shape: f32[1,128], index: 8, kind: input, shape index: {}]   ;;  %s1110_s9 = inlined_call_operand.vmem [shape: bf16[128,128], index: 9, kind: input, shape index: {}]   ;;  %s1111_s10 = inlined_call_operand.vmem [shape: f32[1,128], index: 10, kind: input, shape index: {}]   ;;  %s1112_s11 = inlined_call_operand.vmem [shape: bf16[128,128], index: 11, kind: input, shape index: {}]   ;;  %s1113_s12 = inlined_call_operand.vmem [shape: f32[1,128], index: 12, kind: input, shape index: {}]   ;;  %s1114_s13 = inlined_call_operand.hbm [shape: f32[2,128], index: 13, kind: output, shape index: {}]  }
   0x1   :  { %v46_v0 = vld [vmem:[%s1101_s0] sm:$0x1] }
   0x2   :  { %v47_v1 = vunpack.c.l.bf16 %v46_v0 }
   0x4   :  { %v51_v2 = vsel %vm50_vm0, %v47_v1, 0.0 }
   0x5   :  { %52 = vadd.xlane.f32.xlu0 %v51_v2 }
   0x6   :  { %18 = vsyncpa [#allocation3], 0  ;;  %v786_v8 = vld [vmem:[%s1104_s3] sm:$0xff]   ;;  %v846_v9 = vmov 0.0   ;;  %v787_v10 = vld [vmem:[%s1104_s3 + $0x8] sm:$0xff]   ;;  %vm847_vm1 = vmmov 0  }
   0x7   :  { %695 = vmatprep.subr.bf16.mxu0 %v846_v9  ;;  %703 = vmatprep.subr.bf16.mxu1 %v846_v9  ;;  %v788_v11 = vld [vmem:[%s1106_s5] sm:$0xff]   ;;  %v789_v12 = vld [vmem:[%s1106_s5 + $0x8] sm:$0xff]   ;;  %v790_v13 = vld [vmem:[%s1106_s5 + $0x10] sm:$0xff]   ;;  %vm103_vm2 = vcmask 261120   ;;  %s848_s17 = smov [#allocation2]  }
   0x8   :  { %696 = vmatpush3.bf16.msra.mxu0 %v786_v8  ;;  %699 = vmatprep.mubr.msk.bf16.mxu0 %vm847_vm1, %v846_v9  ;;  %v791_v14 = vld [vmem:[%s1106_s5 + $0x18] sm:$0xff]   ;;  %v792_v15 = vld [vmem:[%s1106_s5 + $0x20] sm:$0xff]   ;;  %v793_v16 = vld [vmem:[%s1106_s5 + $0x28] sm:$0xff]   ;;  %s606_s18 = sshll.u32 %s848_s17, 4  ;;  %s607_s18 = int_to_ptr.vmem [resolvable:$true] %s606_s18 }
   0x9   :  { %697 = vmatprep.subr.bf16.mxu0 %v846_v9  ;;  %719 = vmatprep.mubr.msk.bf16.mxu1 %vm847_vm1, %v846_v9  ;;  %v614_v21 = vld [vmem:[%s1102_s1] ss:$0 sm:$0xff]  ;;  %v794_v27 = vld [vmem:[%s1106_s5 + $0x30] sm:$0xff]   ;;  %v795_v28 = vld [vmem:[%s1106_s5 + $0x38] sm:$0xff]   ;;  %p827_p1 = scmp.lt.s32.totalorder %s607_s18, %s607_s18 }
   0xa   :  { %704 = vmatpush3.bf16.msra.mxu1 %v788_v11  ;;  %v615_v23 = vld [vmem:[%s1103_s2] ss:$0 sm:$0xff]  ;;  %v797_v30 = vld [vmem:[%s1108_s7 + $0x8] sm:$0xff]   ;;  %v798_v31 = vld [vmem:[%s1108_s7 + $0x10] sm:$0xff]  }
   0xb   :  { %705 = vmatprep.subr.bf16.mxu1 %v846_v9  ;;  %v796_v29 = vld [vmem:[%s1108_s7] sm:$0xff]   ;;  %v799_v32 = vld [vmem:[%s1108_s7 + $0x18] sm:$0xff]   ;;  %v801_v34 = vld [vmem:[%s1108_s7 + $0x28] sm:$0xff]  }
   0xc   :  { %698 = vmatpush3.bf16.msra.mxu0 %v787_v10  ;;  %v800_v33 = vld [vmem:[%s1108_s7 + $0x20] sm:$0xff]   ;;  %v802_v43 = vld [vmem:[%s1108_s7 + $0x30] sm:$0xff]   ;;  %v803_v44 = vld [vmem:[%s1108_s7 + $0x38] sm:$0xff]  }
   0xd   :  { %723 = vmatprep.subr.bf16.mxu0 %v846_v9  ;;  %v616_v35 = vld [vmem:[%s1105_s4] ss:$0 sm:$0xff]  ;;  %v805_v46 = vld [vmem:[%s1110_s9 + $0x8] sm:$0xff]   ;;  %v806_v47 = vld [vmem:[%s1110_s9 + $0x10] sm:$0xff]  }
   0xe   :  { %706 = vmatpush3.bf16.msra.mxu1 %v789_v12  ;;  %v804_v45 = vld [vmem:[%s1110_s9] sm:$0xff]   ;;  %v807_v48 = vld [vmem:[%s1110_s9 + $0x18] sm:$0xff]   ;;  %v809_v50 = vld [vmem:[%s1110_s9 + $0x28] sm:$0xff]  }
   0xf   :  { %707 = vmatprep.subr.bf16.mxu1 %v846_v9  ;;  %v808_v49 = vld [vmem:[%s1110_s9 + $0x20] sm:$0xff]   ;;  %v810_v59 = vld [vmem:[%s1110_s9 + $0x30] sm:$0xff]   ;;  %v811_v60 = vld [vmem:[%s1110_s9 + $0x38] sm:$0xff]  }
  0x10   :  { %v620_v51 = vld [vmem:[%s1107_s6] ss:$0 sm:$0xff]  ;;  %v813_v62 = vld [vmem:[%s1112_s11 + $0x8] sm:$0xff]   ;;  %v814_v63 = vld [vmem:[%s1112_s11 + $0x10] sm:$0xff]  }
  0x11   :  { %v812_v61 = vld [vmem:[%s1112_s11] sm:$0xff]   ;;  %v815_v0 = vld [vmem:[%s1112_s11 + $0x18] sm:$0xff]   ;;  %v817_v2 = vld [vmem:[%s1112_s11 + $0x28] sm:$0xff]  }
  0x12   :  { %708 = vmatpush3.bf16.msra.mxu1 %v790_v13  ;;  %v818_v12 = vld [vmem:[%s1112_s11 + $0x30] sm:$0xff]   ;;  %v819_v13 = vld [vmem:[%s1112_s11 + $0x38] sm:$0xff]  }
  0x13   :  { %709 = vmatprep.subr.bf16.mxu1 %v846_v9 }
  0x16   :  { %710 = vmatpush3.bf16.msra.mxu1 %v791_v14  ;;  %v638_v14 = vld [vmem:[%s1111_s10] ss:$0 sm:$0xff]  ;;  %s822_s10 = scalar_lea.vmem %s607_s18, 32 }
  0x17   :  { %711 = vmatprep.subr.bf16.mxu1 %v846_v9  ;;  %p823_p0 = scmp.ne.s32.totalorder %s607_s18, %s822_s10  ;;  %p828_p2 = scmp.lt.s32.totalorder %s822_s10, %s822_s10 }
  0x19   :  { %p829_p3 = por %p828_p2, %p827_p1 }
  0x1a   :  { %712 = vmatpush3.bf16.msra.mxu1 %v792_v15 }
  0x1b   :  { %713 = vmatprep.subr.bf16.mxu1 %v846_v9  ;;  %p830_p4 = pnand %p829_p3, %p823_p0 }
  0x1e   :  { %714 = vmatpush3.bf16.msra.mxu1 %v793_v16 }
  0x1f   :  { %715 = vmatprep.subr.bf16.mxu1 %v846_v9 }
  0x22   :  { %716 = vmatpush3.bf16.msra.mxu1 %v794_v27 }
  0x23   :  { %717 = vmatprep.subr.bf16.mxu1 %v846_v9 }
  0x26   :  { %718 = vmatpush3.bf16.msra.mxu1 %v795_v28 }
  0x27   :  { %743 = vmatprep.subr.bf16.mxu1 %v846_v9 }
  0x92   :  { %v53_v3 = vpop.xlane.xlu0 %52 }
  0x93   :  { %v55_v4 = vmul.f32 0.03125, %v53_v3  ;;  %v629_v3 = vld [vmem:[%s1109_s8] ss:$0 sm:$0xff] }
  0x95   :  { %v56_v5 = vsub.f32 %v47_v1, %v55_v4  ;;  %v816_v1 = vld [vmem:[%s1112_s11 + $0x20] sm:$0xff]  }
  0x97   :  { %v57_v6 = vmul.f32 %v56_v5, %v56_v5 }
  0x99   :  { %v58_v7 = vsel %vm50_vm0, %v57_v6, 0.0 }
  0x9a   :  { %59 = vadd.xlane.f32.xlu0 %v58_v7 }
 0x127   :  { %v60_v17 = vpop.xlane.xlu0 %59 }
 0x128   :  { %v61_v18 = vmul.f32 0.03125, %v60_v17 }
 0x12a   :  { %v62_v19 = vadd.f32 1e-06, %v61_v18 }
 0x12c   :  { %820 = vrsqrt.f32 %v62_v19 }
 0x136   :  { %v821_v20 = vpop.eup %820 }
 0x137   :  { %v64_v22 = vmul.f32 %v821_v20, %v56_v5 }
 0x139   :  { %v71_v24 = vmul.f32 %v614_v21, %v64_v22 }
 0x13b   :  { %v78_v25 = vadd.f32 %v615_v23, %v71_v24 }
 0x13d   :  { %v79_v26 = vpack.c.bf16 %v78_v25, %v78_v25 }
 0x13f   :  { %700 = vmatmul.mubr.msk.bf16.vlgmr.msra.gmra.mrb[0].mxu0 %vm103_vm2, %v79_v26 }
 0x140   :  { %739 = vmatprep.mubr.msk.bf16.mxu0 %vm847_vm1, %v846_v9  ;;  %724 = vmatpush3.bf16.msra.mxu0 %v796_v29 }
 0x141   :  { %725 = vmatprep.subr.bf16.mxu0 %v846_v9 }
 0x144   :  { %726 = vmatpush3.bf16.msra.mxu0 %v797_v30 }
 0x145   :  { %727 = vmatprep.subr.bf16.mxu0 %v846_v9 }
 0x148   :  { %728 = vmatpush3.bf16.msra.mxu0 %v798_v31 }
 0x149   :  { %729 = vmatprep.subr.bf16.mxu0 %v846_v9 }
 0x14c   :  { %730 = vmatpush3.bf16.msra.mxu0 %v799_v32 }
 0x14d   :  { %731 = vmatprep.subr.bf16.mxu0 %v846_v9 }
 0x150   :  { %732 = vmatpush3.bf16.msra.mxu0 %v800_v33 }
 0x151   :  { %733 = vmatprep.subr.bf16.mxu0 %v846_v9 }
 0x154   :  { %734 = vmatpush3.bf16.msra.mxu0 %v801_v34 }
 0x155   :  { %735 = vmatprep.subr.bf16.mxu0 %v846_v9 }
 0x158   :  { %736 = vmatpush3.bf16.msra.mxu0 %v802_v43 }
 0x159   :  { %737 = vmatprep.subr.bf16.mxu0 %v846_v9 }
 0x15c   :  { %738 = vmatpush3.bf16.msra.mxu0 %v803_v44 }
 0x15d   :  { %763 = vmatprep.subr.bf16.mxu0 %v846_v9 }
 0x212   :  { %v141_v36 = vpop.f32.mrb[0].mxu0 }
 0x213   :  { %v142_v37 = vadd.f32 %v616_v35, %v141_v36  ;;  %v701_v38 = vpop.f32.mrb[1].mxu0 }
 0x214   :  { %v144_v39 = vpop.f32.mrb[2].mxu0 }
 0x215   :  { %v147_v40 = vmax.f32 %v142_v37, 0.0  ;;  %v702_v41 = vpop.f32.mrb[3].mxu0 }
 0x217   :  { %v148_v42 = vpack.c.bf16 %v147_v40, %v147_v40 }
 0x219   :  { %720 = vmatmul.mubr.bf16.vlgmr.msra.gmra.mrb[0].mxu1 %v148_v42 }
 0x21a   :  { %759 = vmatprep.mubr.msk.bf16.mxu1 %vm847_vm1, %v846_v9  ;;  %744 = vmatpush3.bf16.msra.mxu1 %v804_v45 }
 0x21b   :  { %745 = vmatprep.subr.bf16.mxu1 %v846_v9 }
 0x21e   :  { %746 = vmatpush3.bf16.msra.mxu1 %v805_v46 }
 0x21f   :  { %747 = vmatprep.subr.bf16.mxu1 %v846_v9 }
 0x222   :  { %748 = vmatpush3.bf16.msra.mxu1 %v806_v47 }
 0x223   :  { %749 = vmatprep.subr.bf16.mxu1 %v846_v9 }
 0x226   :  { %750 = vmatpush3.bf16.msra.mxu1 %v807_v48 }
 0x227   :  { %751 = vmatprep.subr.bf16.mxu1 %v846_v9 }
 0x22a   :  { %752 = vmatpush3.bf16.msra.mxu1 %v808_v49 }
 0x22b   :  { %753 = vmatprep.subr.bf16.mxu1 %v846_v9 }
 0x22e   :  { %754 = vmatpush3.bf16.msra.mxu1 %v809_v50 }
 0x22f   :  { %755 = vmatprep.subr.bf16.mxu1 %v846_v9 }
 0x232   :  { %756 = vmatpush3.bf16.msra.mxu1 %v810_v59 }
 0x233   :  { %757 = vmatprep.subr.bf16.mxu1 %v846_v9 }
 0x236   :  { %758 = vmatpush3.bf16.msra.mxu1 %v811_v60 }
 0x2ec   :  { %v254_v52 = vpop.f32.mrb[0].mxu1 }
 0x2ed   :  { %v255_v53 = vadd.f32 %v620_v51, %v254_v52  ;;  %v721_v54 = vpop.f32.mrb[1].mxu1 }
 0x2ee   :  { %v257_v55 = vpop.f32.mrb[2].mxu1 }
 0x2ef   :  { %v260_v56 = vmax.f32 %v255_v53, 0.0  ;;  %v722_v57 = vpop.f32.mrb[3].mxu1 }
 0x2f1   :  { %v261_v58 = vpack.c.bf16 %v260_v56, %v260_v56 }
 0x2f3   :  { %740 = vmatmul.mubr.bf16.vlgmr.msra.gmra.mrb[4].mxu0 %v261_v58 }
 0x2f4   :  { %779 = vmatprep.mubr.msk.bf16.mxu0 %vm847_vm1, %v846_v9  ;;  %764 = vmatpush3.bf16.msra.mxu0 %v812_v61 }
 0x2f5   :  { %765 = vmatprep.subr.bf16.mxu0 %v846_v9 }
 0x2f8   :  { %766 = vmatpush3.bf16.msra.mxu0 %v813_v62 }
 0x2f9   :  { %767 = vmatprep.subr.bf16.mxu0 %v846_v9 }
 0x2fc   :  { %768 = vmatpush3.bf16.msra.mxu0 %v814_v63 }
 0x2fd   :  { %769 = vmatprep.subr.bf16.mxu0 %v846_v9 }
 0x300   :  { %770 = vmatpush3.bf16.msra.mxu0 %v815_v0 }
 0x301   :  { %771 = vmatprep.subr.bf16.mxu0 %v846_v9 }
 0x304   :  { %772 = vmatpush3.bf16.msra.mxu0 %v816_v1 }
 0x305   :  { %773 = vmatprep.subr.bf16.mxu0 %v846_v9 }
 0x308   :  { %774 = vmatpush3.bf16.msra.mxu0 %v817_v2 }
 0x309   :  { %775 = vmatprep.subr.bf16.mxu0 %v846_v9 }
 0x30c   :  { %776 = vmatpush3.bf16.msra.mxu0 %v818_v12 }
 0x30d   :  { %777 = vmatprep.subr.bf16.mxu0 %v846_v9  ;;  %v647_v9 = vld [vmem:[%s1113_s12] ss:$0 sm:$0xff] }
 0x310   :  { %778 = vmatpush3.bf16.msra.mxu0 %v819_v13 }
 0x3c6   :  { %v367_v4 = vpop.f32.mrb[4].mxu0 }
 0x3c7   :  { %v368_v5 = vadd.f32 %v629_v3, %v367_v4  ;;  %v741_v6 = vpop.f32.mrb[5].mxu0 }
 0x3c8   :  { %v370_v7 = vpop.f32.mrb[6].mxu0 }
 0x3c9   :  { %v373_v8 = vmax.f32 %v368_v5, 0.0  ;;  %v742_v10 = vpop.f32.mrb[7].mxu0 }
 0x3cb   :  { %v374_v11 = vpack.c.bf16 %v373_v8, %v373_v8 }
 0x3cd   :  { %760 = vmatmul.mubr.bf16.vlgmr.msra.gmra.mrb[4].mxu1 %v374_v11 }
 0x4a0   :  { %v480_v15 = vpop.f32.mrb[4].mxu1 }
 0x4a1   :  { %v481_v16 = vadd.f32 %v638_v14, %v480_v15  ;;  %v761_v17 = vpop.f32.mrb[5].mxu1 }
 0x4a2   :  { %v483_v18 = vpop.f32.mrb[6].mxu1 }
 0x4a3   :  { %v486_v19 = vmax.f32 %v481_v16, 0.0  ;;  %v762_v20 = vpop.f32.mrb[7].mxu1 }
 0x4a5   :  { %v487_v21 = vpack.c.bf16 %v486_v19, %v486_v19 }
 0x4a7   :  { %780 = vmatmul.mubr.bf16.vlgmr.msra.gmra.mrb[8].mxu0 %v487_v21 }
 0x57a   :  { %v593_v22 = vpop.f32.mrb[8].mxu0 }
 0x57b   :  { %v594_v23 = vadd.f32 %v647_v9, %v593_v22  ;;  %v781_v24 = vpop.f32.mrb[9].mxu0 }
 0x57c   :  { %v596_v25 = vpop.f32.mrb[10].mxu0 }
 0x57d   :  { %599 = vst [vmem:[#allocation2] sm:$0x3] %v594_v23  ;;  %v782_v26 = vpop.f32.mrb[11].mxu0 }
 0x57e   :  { %833 = shalt.err (!%p830_p4)
}
 0x57f   :  { %s834_s12 = scalar_lea.hbm %s1114_s13, 32 }
 0x580   :  { %p835_p5 = scmp.ne.s32.totalorder %s1114_s13, %s834_s12  ;;  %p838_p6 = scmp.lt.u32.totalorder %s834_s12, %s1114_s13 }
 0x582   :  { %p840_p7 = pnand %p838_p6, %p835_p5 }
 0x584   :  { %843 = shalt.err (!%p840_p7)
}
 0x585   :  { %609 = dma.vmem_to_hbm [thread:$0]  %s607_s18, 32, %s1114_s13, [#allocation3]  }
 0x586   :  { %844 = dma.done.wait [#allocation3], 32  }
 0x587   :  { %845 = vsyncadd [#allocation3], 4294967264 }
 0x588   :  { %613 = vsyncpa [#allocation3], 1 }

// kernel: eden_forward.9
= control target key start
LH: loop header
LB: loop body
LE: loop exit
PB: predicated region body
PF: predicated region fallthrough
CT: control target
= control target key end

     0   :  { %s3244_s30 = smov 0   ;;  %s3649_s0 = inlined_call_operand.vmem [shape: bf16[8,2,32], index: 0, kind: input, shape index: {}]   ;;  %s3650_s1 = inlined_call_operand.vmem [shape: f32[1,32], index: 1, kind: input, shape index: {}]   ;;  %s3651_s2 = inlined_call_operand.vmem [shape: f32[1,32], index: 2, kind: input, shape index: {}]   ;;  %s3652_s3 = inlined_call_operand.vmem [shape: bf16[32,96], index: 3, kind: input, shape index: {}]   ;;  %s3653_s4 = inlined_call_operand.vmem [shape: f32[1,96], index: 4, kind: input, shape index: {}]   ;;  %s3654_s5 = inlined_call_operand.vmem [shape: bf16[32,32], index: 5, kind: input, shape index: {}]   ;;  %s3655_s6 = inlined_call_operand.vmem [shape: f32[1,32], index: 6, kind: input, shape index: {}]   ;;  %s3656_s7 = inlined_call_operand.vmem [shape: bf16[32,32], index: 7, kind: input, shape index: {}]   ;;  %s3657_s8 = inlined_call_operand.vmem [shape: f32[1,32], index: 8, kind: input, shape index: {}]   ;;  %s3658_s9 = inlined_call_operand.vmem [shape: bf16[8,2,32], index: 9, kind: output, shape index: {}]  }
   0x1 LB: > { %s2720_s10 = sadd.s32 4294967295, %s3171_s30   ;;  %p2724_p0 = scmp.ge.s32.totalorder %s3171_s30, 1  ;;  %s3171_s30 = sphi %s3244_s30, %s19_s30  }
   0x2   : > { %p287_p1 = scmp.lt.s32.totalorder %s3171_s30, 3 }
   0x4   : > { %p288_p2 = pnand %p2724_p0, %p287_p1 }
   0x5   : > { %s2725_s11 = sshll.u32 (!%p288_p2), %s2720_s10, 2  ;;  %v351_v0 = vlaneseq (!%p288_p2)  ;;  %v3173_v1 = vmov (!%p288_p2), 1983009808   ;;  %vm364_vm0 = vcmask (!%p288_p2), 261120   ;;  %v3174_v20 = vmov (!%p288_p2), 269488144  }
   0x6   : > { %291 = sbr.rel (%p288_p2) target bundleno = 3781 (0xec5), region = 56  ;;  %p322_p3 = scmp.lt.s32.totalorder (!%p288_p2), %s2725_s11, 7  ;;  %v349_v2 = vunpack.c.l.s4 (!%p288_p2), %v3173_v1  ;;  %v372_v21 = vunpack.c.l.s4 (!%p288_p2), %v3174_v20  ;;  %v3175_v22 = vmov (!%p288_p2), 842150450   ;;  %v3176_v24 = vmov (!%p288_p2), 1414812756  }
   0x7   : > { %v352_v4 = vshrl.u32 (!%p288_p2), %v351_v0, 7  ;;  %v379_v23 = vunpack.c.l.s4 (!%p288_p2), %v3175_v22  ;;  %v386_v25 = vunpack.c.l.s4 (!%p288_p2), %v3176_v24  ;;  %v3177_v26 = vmov (!%p288_p2), 1987475062   ;;  %v3093_v56 = vld [vmem:[%s3652_s3] sm:$0xff] (!%p288_p2)   ;;  %v3094_v58 = vld [vmem:[%s3652_s3 + $0x8] sm:$0xff] (!%p288_p2)   ;;  %s3180_s25 = smov (!%p288_p2), 96  }
   0x8   : > { %v350_v3 = vunpack.c.0.s8 (!%p288_p2), %v349_v2  ;;  %v393_v27 = vunpack.c.l.s4 (!%p288_p2), %v3177_v26  ;;  %v373_v28 = vunpack.c.0.s8 (!%p288_p2), %v372_v21  ;;  %v3178_v57 = vmov (!%p288_p2), 0.0   ;;  %v2727_v62 = vld [vmem:[%s3650_s1] ss:$0 sm:$0xff] (!%p288_p2)  ;;  %s3181_s26 = smov (!%p288_p2), 64   ;;  %s3182_s27 = smov (!%p288_p2), 88  }
   0x9   : > { %v380_v29 = vunpack.c.0.s8 (!%p288_p2), %v379_v23  ;;  %v387_v30 = vunpack.c.0.s8 (!%p288_p2), %v386_v25  ;;  %2848 = vmatprep.subr.bf16.mxu0 (!%p288_p2), %v3178_v57  ;;  %vm3179_vm1 = vmmov (!%p288_p2), 0   ;;  %2856 = vmatprep.subr.bf16.mxu1 (!%p288_p2), %v3178_v57  ;;  %v2728_v63 = vld [vmem:[%s3651_s2] ss:$0 sm:$0xff] (!%p288_p2)  ;;  %v481_v0 = vcombine.high (!%p288_p2), %v2727_v62, %v2727_v62  ;;  %s3183_s28 = smov (!%p288_p2), 120   ;;  %s3184_s29 = smov (!%p288_p2), 56  }
   0xa   : > { %v3258_v12 = vsub.s32 (!%p288_p2), %v350_v3, %v352_v4  ;;  %v394_v31 = vunpack.c.0.s8 (!%p288_p2), %v393_v27  ;;  %v376_v32 = vsub.s32 (!%p288_p2), %v373_v28, %v352_v4  ;;  %2852 = vmatprep.mubr.msk.bf16.mxu0 (!%p288_p2), %vm3179_vm1, %v3178_v57  ;;  %2849 = vmatpush3.bf16.msra.mxu0 (!%p288_p2), %v3093_v56  ;;  %v511_v1 = vcombine.high (!%p288_p2), %v2728_v63, %v2728_v63  ;;  %s3185_s10 = smov (!%p288_p2), 80   ;;  %s3186_s12 = smov (!%p288_p2), 112  }
   0xb   : > { %v383_v33 = vsub.s32 (!%p288_p2), %v380_v29, %v352_v4  ;;  %v390_v34 = vsub.s32 (!%p288_p2), %v387_v30, %v352_v4  ;;  %2850 = vmatprep.subr.bf16.mxu0 (!%p288_p2), %v3178_v57  ;;  %2858 = vmatprep.mubr.msk.bf16.mxu1 (!%p288_p2), %vm3179_vm1, %v3178_v57  ;;  %vm662_vm2 = vcmask (!%p288_p2), 64512   ;;  %vm856_vm3 = vcmask (!%p288_p2), 9216   ;;  %s3187_s13 = smov (!%p288_p2), 48   ;;  %s3189_s15 = smov (!%p288_p2), 104  }
   0xc   : > { %v397_v35 = vsub.s32 (!%p288_p2), %v394_v31, %v352_v4  ;;  %v488_v2 = vrot.slane (!%p288_p2), %v2727_v62, %v3258_v12  ;;  %v495_v3 = vrot.slane (!%p288_p2), %v481_v0, %v3258_v12  ;;  %v518_v4 = vrot.slane (!%p288_p2), %v2728_v63, %v3258_v12  ;;  %s3190_s16 = smov (!%p288_p2), 40   ;;  %s3191_s17 = smov (!%p288_p2), 8  }
   0xd   : > { %s3660_s11 = smov (!%p322_p3, %s2725_s11), 7  ;;  %vm911_vm4 = vcmask 1040384   ;;  %vm907_vm5 = vcmask 15360   ;;  %s3192_s18 = smov 16   ;;  %vm2475_vm6 = vcmask 130048   ;;  %vm2480_vm7 = vcmask 195584  }
   0xe   : > { %s324_s14 = scalar_lea.vmem %s3649_s0, %s3660_s11  ;;  %2851 = vmatpush3.bf16.msra.mxu0 %v3094_v58  ;;  %s3193_s19 = smov 24   ;;  %vm2668_vm8 = vcmask 253952  }
   0xf   : > { %v332_v5 = vld [vmem:[%s324_s14] sm:$0x1]  ;;  %v333_v6 = vld [vmem:[%s324_s14 + $0x1] sm:$0x1]  ;;  %v334_v7 = vld [vmem:[%s324_s14 + $0x2] sm:$0x1]  ;;  %2862 = vmatprep.subr.bf16.mxu0 %v3178_v57 }
  0x10   : > { %v335_v8 = vld [vmem:[%s324_s14 + $0x3] sm:$0x1]  ;;  %v336_v9 = vunpack.c.l.bf16 %v332_v5  ;;  %v337_v10 = vunpack.c.l.bf16 %v333_v6  ;;  %v338_v11 = vunpack.c.l.bf16 %v334_v7  ;;  %v525_v5 = vrot.slane %v511_v1, %v3258_v12  ;;  %s3188_s14 = smov 72  }
  0x11   : > { %v339_v13 = vunpack.c.l.bf16 %v335_v8  ;;  %v496_v7 = vcombine.high %v488_v2, %v488_v2  ;;  %v497_v8 = vcombine.high %v495_v3, %v495_v3 }
  0x12   : > { %v346_v14 = vcombine.low %v336_v9, %v337_v10 }
  0x13   : > { %v347_v15 = vcombine.low %v338_v11, %v339_v13 }
  0x14   : > { %v354_v16 = vrot.slane %v346_v14, %v3258_v12  ;;  %v526_v14 = vcombine.high %v518_v4, %v518_v4 }
  0x15   : > { %v361_v17 = vrot.slane %v347_v15, %v3258_v12  ;;  %v527_v15 = vcombine.high %v525_v5, %v525_v5 }
  0x17   : > { %v3262_v18 = vcombine.low %v354_v16, %v361_v17 }
  0x19   : > { %v365_v19 = vsel %vm364_vm0, %v3262_v18, 0.0 }
  0x1a   : > { %366 = vadd.xlane.f32.xlu0 %v365_v19 }
  0xa7   : > { %v367_v36 = vpop.xlane.xlu0 %366 }
  0xa8   : > { %v369_v37 = vmul.f32 0.03125, %v367_v36 }
  0xaa   : > { %v377_v38 = vrot.slane %v369_v37, %v376_v32  ;;  %v384_v39 = vrot.slane %v369_v37, %v383_v33  ;;  %v391_v40 = vrot.slane %v369_v37, %v390_v34  ;;  %v398_v41 = vrot.slane %v369_v37, %v397_v35 }
  0xac   : > { %v403_v42 = vsub.f32 %v336_v9, %v377_v38  ;;  %v404_v43 = vsub.f32 %v337_v10, %v384_v39  ;;  %v405_v44 = vsub.f32 %v338_v11, %v391_v40  ;;  %v406_v45 = vsub.f32 %v339_v13, %v398_v41 }
  0xae   : > { %v407_v46 = vmul.f32 %v403_v42, %v403_v42  ;;  %v408_v47 = vmul.f32 %v404_v43, %v404_v43  ;;  %v409_v48 = vmul.f32 %v405_v44, %v405_v44  ;;  %v410_v49 = vmul.f32 %v406_v45, %v406_v45 }
  0xb0   : > { %v415_v50 = vcombine.low %v407_v46, %v408_v47  ;;  %v416_v51 = vcombine.low %v409_v48, %v410_v49 }
  0xb2   : > { %v423_v52 = vrot.slane %v415_v50, %v3258_v12  ;;  %v430_v53 = vrot.slane %v416_v51, %v3258_v12 }
  0xb4   : > { %v431_v54 = vcombine.low %v423_v52, %v430_v53 }
  0xb6   : > { %v433_v55 = vsel %vm364_vm0, %v431_v54, 0.0 }
  0xb7   : > { %434 = vadd.xlane.f32.xlu0 %v433_v55 }
 0x144   : > { %v435_v59 = vpop.xlane.xlu0 %434 }
 0x145   : > { %v436_v60 = vmul.f32 0.03125, %v435_v59 }
 0x147   : > { %v437_v61 = vadd.f32 1e-06, %v436_v60 }
 0x149   : > { %3099 = vrsqrt.f32 %v437_v61 }
 0x153   : > { %v3100_v6 = vpop.eup %3099 }
 0x154   : > { %v446_v9 = vrot.slane %v3100_v6, %v376_v32  ;;  %v453_v10 = vrot.slane %v3100_v6, %v383_v33  ;;  %v460_v11 = vrot.slane %v3100_v6, %v390_v34  ;;  %v467_v13 = vrot.slane %v3100_v6, %v397_v35  ;;  %v2729_v35 = vld [vmem:[%s3653_s4] ss:$0 sm:$0xff] }
 0x156   : > { %v472_v16 = vmul.f32 %v446_v9, %v403_v42  ;;  %v473_v17 = vmul.f32 %v453_v10, %v404_v43  ;;  %v474_v19 = vmul.f32 %v460_v11, %v405_v44  ;;  %v475_v20 = vmul.f32 %v467_v13, %v406_v45 }
 0x158   : > { %v502_v21 = vmul.f32 %v488_v2, %v472_v16  ;;  %v503_v22 = vmul.f32 %v496_v7, %v473_v17  ;;  %v504_v23 = vmul.f32 %v495_v3, %v474_v19  ;;  %v505_v24 = vmul.f32 %v497_v8, %v475_v20 }
 0x15a   : > { %v532_v25 = vadd.f32 %v518_v4, %v502_v21  ;;  %v533_v26 = vadd.f32 %v526_v14, %v503_v22  ;;  %v534_v27 = vadd.f32 %v525_v5, %v504_v23  ;;  %v535_v28 = vadd.f32 %v527_v15, %v505_v24 }
 0x15c   : > { %v540_v29 = vcombine.low %v532_v25, %v533_v26  ;;  %v541_v30 = vcombine.low %v534_v27, %v535_v28 }
 0x15e   : > { %v548_v31 = vrot.slane %v540_v29, %v3258_v12  ;;  %v555_v32 = vrot.slane %v541_v30, %v3258_v12 }
 0x160   : > { %v556_v33 = vcombine.low %v548_v31, %v555_v32 }
 0x162   : > { %v558_v34 = vpack.c.bf16 %v556_v33, %v556_v33 }
 0x164   : > { %2853 = vmatmul.mubr.msk.bf16.vlgmr.msra.gmra.mrb[0].mxu0 %vm364_vm0, %v558_v34 }
 0x165   : > { %2864 = vmatprep.mubr.msk.bf16.mxu0 %vm3179_vm1, %v3178_v57 }
 0x237   : > { %v619_v36 = vpop.f32.mrb[0].mxu0 }
 0x238   : > { %v620_v37 = vadd.f32 %v2729_v35, %v619_v36  ;;  %v2854_v38 = vpop.f32.mrb[1].mxu0 }
 0x239   : > { %v622_v39 = vpop.f32.mrb[2].mxu0 }
 0x23a   : > { %v626_v40 = vcombine.high %v620_v37, %v620_v37  ;;  %v633_v41 = vrot.slane %v620_v37, %v3258_v12  ;;  %v2855_v42 = vpop.f32.mrb[3].mxu0 }
 0x23c   : > { %v640_v43 = vrot.slane %v626_v40, %v3258_v12  ;;  %v641_v44 = vcombine.high %v633_v41, %v633_v41  ;;  %v3303_v45 = vpack.c.bf16 %v633_v41, %v633_v41  ;;  %v647_v52 = vmul.f32 0.35355338, %v633_v41 }
 0x23e   : > { %660 = vrot.lane.b32.xlu1 %v3303_v45, %s3180_s25  ;;  %v3306_v46 = vpack.c.bf16 %v640_v43, %v640_v43  ;;  %v642_v47 = vcombine.high %v640_v43, %v640_v43  ;;  %v3308_v48 = vpack.c.bf16 %v641_v44, %v641_v44  ;;  %v648_v56 = vmul.f32 0.35355338, %v641_v44 }
 0x23f   : > { %v3318_v58 = vpack.c.bf16 %v647_v52, %v647_v52  ;;  %v649_v61 = vmul.f32 0.35355338, %v640_v43 }
 0x240   : > { %759 = vrot.lane.b32.xlu0 %v3306_v46, %s3180_s25  ;;  %v3312_v49 = vpack.c.bf16 %v642_v47, %v642_v47  ;;  %v3326_v62 = vpack.c.bf16 %v648_v56, %v648_v56  ;;  %v650_v0 = vmul.f32 0.35355338, %v642_v47 }
 0x241   : > { %v3334_v1 = vpack.c.bf16 %v649_v61, %v649_v61 }
 0x242   : > { %710 = vrot.lane.b32.xlu1 %v3308_v48, %s3180_s25  ;;  %v3341_v2 = vpack.c.bf16 %v650_v0, %v650_v0 }
 0x246   : > { %808 = vrot.lane.b32.xlu1 %v3312_v49, %s3180_s25 }
 0x2b0   : > { %v661_v50 = vpop.permute.xlu1 %660 }
 0x2b1   : > { %v667_v51 = vsel %vm662_vm2, %v661_v50, 0 }
 0x2b2   : > { %2857 = vmatpush3.bf16.xpose.msra.mxu1 %v667_v51  ;;  %v760_v55 = vpop.permute.xlu0 %759 }
 0x2b3   : > { %2868 = vmatprep.subr.bf16.mxu1 %v3178_v57  ;;  %v765_v59 = vsel %vm662_vm2, %v760_v55, 0 }
 0x2b4   : > { %v711_v53 = vpop.permute.xlu1 %710 }
 0x2b5   : > { %v716_v54 = vsel %vm662_vm2, %v711_v53, 0 }
 0x2b6   : > { %2863 = vmatpush3.bf16.xpose.msra.mxu0 %v716_v54 }
 0x2b7   : > { %2874 = vmatprep.subr.bf16.mxu0 %v3178_v57 }
 0x2b8   : > { %v809_v60 = vpop.permute.xlu1 %808 }
 0x2b9   : > { %2859 = vmatmul.mubr.msk.bf16.vlgmr.msra.gmra.mrb[0].mxu1 %vm662_vm2, %v3318_v58  ;;  %v814_v63 = vsel %vm662_vm2, %v809_v60, 0 }
 0x2ba   : > { %2869 = vmatpush3.bf16.xpose.msra.mxu1 %v765_v59  ;;  %2870 = vmatprep.mubr.msk.bf16.mxu1 %vm3179_vm1, %v3178_v57 }
 0x2bb   : > { %2880 = vmatprep.subr.bf16.mxu1 %v3178_v57 }
 0x2bd   : > { %2865 = vmatmul.mubr.msk.bf16.vlgmr.msra.gmra.mrb[4].mxu0 %vm662_vm2, %v3326_v62 }
 0x2be   : > { %2875 = vmatpush3.bf16.xpose.msra.mxu0 %v814_v63  ;;  %2876 = vmatprep.mubr.msk.bf16.mxu0 %vm3179_vm1, %v3178_v57 }
 0x2bf   : > { %2886 = vmatprep.subr.bf16.mxu0 %v3178_v57 }
 0x2c1   : > { %2871 = vmatmul.mubr.msk.bf16.vlgmr.msra.gmra.mrb[4].mxu1 %vm662_vm2, %v3334_v1 }
 0x2c2   : > { %2882 = vmatprep.mubr.msk.bf16.mxu1 %vm3179_vm1, %v3178_v57 }
 0x2c5   : > { %2877 = vmatmul.mubr.msk.bf16.vlgmr.msra.gmra.mrb[8].mxu0 %vm662_vm2, %v3341_v2 }
 0x2c6   : > { %2888 = vmatprep.mubr.msk.bf16.mxu0 %vm3179_vm1, %v3178_v57 }
 0x38c   : > { %v703_v3 = vpop.f32.mrb[0].mxu1 }
 0x38d   : > { %v2860_v4 = vpop.f32.mrb[1].mxu1  ;;  %v857_v5 = vsel %vm856_vm3, %v703_v3, -inf }
 0x38e   : > { %v706_v6 = vpop.f32.mrb[2].mxu1  ;;  %858 = vmax.xlane.f32.xlu1 %v857_v5 }
 0x38f   : > { %v2861_v7 = vpop.f32.mrb[3].mxu1 }
 0x390   : > { %v752_v8 = vpop.f32.mrb[4].mxu0 }
 0x391   : > { %v2866_v9 = vpop.f32.mrb[5].mxu0  ;;  %v860_v10 = vsel %vm856_vm3, %v752_v8, -inf }
 0x392   : > { %861 = vmax.xlane.f32.xlu0 %v860_v10  ;;  %v755_v11 = vpop.f32.mrb[6].mxu0 }
 0x393   : > { %v2867_v13 = vpop.f32.mrb[7].mxu0 }
 0x394   : > { %v801_v14 = vpop.f32.mrb[4].mxu1 }
 0x395   : > { %v2872_v15 = vpop.f32.mrb[5].mxu1  ;;  %v863_v23 = vsel %vm856_vm3, %v801_v14, -inf }
 0x396   : > { %v804_v16 = vpop.f32.mrb[6].mxu1 }
 0x397   : > { %v2873_v17 = vpop.f32.mrb[7].mxu1 }
 0x398   : > { %v850_v19 = vpop.f32.mrb[8].mxu0 }
 0x399   : > { %v2878_v20 = vpop.f32.mrb[9].mxu0  ;;  %v866_v24 = vsel %vm856_vm3, %v850_v19, -inf }
 0x39a   : > { %v853_v21 = vpop.f32.mrb[10].mxu0 }
 0x39b   : > { %v2879_v22 = vpop.f32.mrb[11].mxu0 }
 0x39f   : > { %955 = vrot.lane.b32.xlu1 %v3308_v48, %s3181_s26 }
 0x3a8   : > { %905 = vrot.lane.b32.xlu0 %v3303_v45, %s3181_s26 }
 0x3ac   : > { %1051 = vrot.lane.b32.xlu0 %v3312_v49, %s3181_s26 }
 0x3c3   : > { %864 = vmax.xlane.f32.xlu1 %v863_v23 }
 0x3c7   : > { %867 = vmax.xlane.f32.xlu1 %v866_v24 }
 0x3d8   : > { %1003 = vrot.lane.b32.xlu1 %v3306_v46, %s3181_s26 }
 0x41b   : > { %v859_v25 = vpop.xlane.xlu1 %858 }
 0x41c   : > { %v869_v26 = vsub.f32 %v703_v3, %v859_v25 }
 0x41e   : > { %v873_v27 = vmul.f32 1.442695, %v869_v26 }
 0x41f   : > { %v956_v28 = vpop.permute.xlu1 %955  ;;  %v862_v29 = vpop.xlane.xlu0 %861 }
 0x420   : > { %3101 = vpow2.f32 %v873_v27  ;;  %v961_v30 = vsel %vm911_vm4, %v956_v28, 0  ;;  %v870_v31 = vsub.f32 %v752_v8, %v862_v29 }
 0x421   : > { %2887 = vmatpush3.bf16.msra.mxu0 %v961_v30 }
 0x422   : > { %v875_v32 = vmul.f32 1.442695, %v870_v31  ;;  %2898 = vmatprep.subr.bf16.mxu0 %v3178_v57 }
 0x423   : > { %v906_v33 = vpop.permute.xlu0 %905 }
 0x424   : > { %3103 = vpow2.f32 %v875_v32  ;;  %v913_v34 = vsel %vm911_vm4, %v906_v33, 0 }
 0x425   : > { %2881 = vmatpush3.bf16.msra.mxu1 %v913_v34 }
 0x426   : > { %2892 = vmatprep.subr.bf16.mxu1 %v3178_v57 }
 0x427   : > { %v1052_v3 = vpop.permute.xlu0 %1051 }
 0x428   : > { %v1057_v5 = vsel %vm911_vm4, %v1052_v3, 0 }
 0x42a   : > { %v3102_v35 = vpop.eup %3101 }
 0x42b   : > { %v881_v36 = vsel %vm856_vm3, %v3102_v35, 0.0 }
 0x42c   : > { %882 = vadd.xlane.f32.xlu1 %v881_v36 }
 0x42e   : > { %v3104_v37 = vpop.eup %3103 }
 0x42f   : > { %v884_v38 = vsel %vm856_vm3, %v3104_v37, 0.0 }
 0x430   : > { %885 = vadd.xlane.f32.xlu1 %v884_v38 }
 0x441   : > { %1102 = vrot.lane.b32.xlu1 %v3303_v45, %s3182_s27 }
 0x450   : > { %v865_v39 = vpop.xlane.xlu1 %864 }
 0x451   : > { %v871_v40 = vsub.f32 %v801_v14, %v865_v39 }
 0x453   : > { %v877_v41 = vmul.f32 1.442695, %v871_v40 }
 0x454   : > { %v868_v42 = vpop.xlane.xlu1 %867 }
 0x455   : > { %3105 = vpow2.f32 %v877_v41  ;;  %v872_v43 = vsub.f32 %v850_v19, %v868_v42 }
 0x457   : > { %v879_v44 = vmul.f32 1.442695, %v872_v43 }
 0x458   : > { %v1004_v53 = vpop.permute.xlu1 %1003 }
 0x459   : > { %3107 = vpow2.f32 %v879_v44  ;;  %v1009_v63 = vsel %vm911_vm4, %v1004_v53, 0 }
 0x45f   : > { %v3106_v47 = vpop.eup %3105 }
 0x460   : > { %v887_v50 = vsel %vm856_vm3, %v3106_v47, 0.0 }
 0x461   : > { %888 = vadd.xlane.f32.xlu0 %v887_v50 }
 0x463   : > { %v3108_v51 = vpop.eup %3107 }
 0x464   : > { %v890_v52 = vsel %vm856_vm3, %v3108_v51, 0.0 }
 0x465   : > { %891 = vadd.xlane.f32.xlu1 %v890_v52 }
 0x476   : > { %1100 = vrot.lane.b32.xlu1 %v3318_v58, %s3183_s28 }
 0x477   : > { %1153 = vrot.lane.b32.xlu0 %v3308_v48, %s3182_s27 }
 0x47a   : > { %1204 = vrot.lane.b32.xlu1 %v3306_v46, %s3182_s27 }
 0x47b   : > { %1151 = vrot.lane.b32.xlu0 %v3326_v62, %s3183_s28 }
 0x47e   : > { %1202 = vrot.lane.b32.xlu1 %v3334_v1, %s3183_s28 }
 0x47f   : > { %1255 = vrot.lane.b32.xlu0 %v3312_v49, %s3182_s27 }
 0x483   : > { %1253 = vrot.lane.b32.xlu0 %v3341_v2, %s3183_s28 }
 0x4b9   : > { %v883_v54 = vpop.xlane.xlu1 %882 }
 0x4ba   : > { %3109 = vrcp.f32 %v883_v54 }
 0x4bd   : > { %v886_v55 = vpop.xlane.xlu1 %885 }
 0x4be   : > { %3111 = vrcp.f32 %v886_v55 }
 0x4c1   : > { %v1103_v6 = vpop.permute.xlu1 %1102 }
 0x4c2   : > { %v1108_v16 = vsel %vm662_vm2, %v1103_v6, 0 }
 0x4c4   : > { %v3110_v56 = vpop.eup %3109 }
 0x4c5   : > { %v897_v59 = vmul.f32 %v3110_v56, %v3102_v35 }
 0x4c7   : > { %v901_v60 = vpack.c.bf16 %v897_v59, %v897_v59 }
 0x4c8   : > { %v3112_v61 = vpop.eup %3111 }
 0x4c9   : > { %v898_v0 = vmul.f32 %v3112_v61, %v3104_v37  ;;  %2883 = vmatmul.mubr.msk.bf16.vlgmr.msra.gmra.mrb[8].mxu1 %vm907_vm5, %v901_v60 }
 0x4ca   : > { %2893 = vmatpush3.bf16.msra.mxu1 %v1009_v63  ;;  %2894 = vmatprep.mubr.msk.bf16.mxu1 %vm3179_vm1, %v3178_v57 }
 0x4cb   : > { %v902_v4 = vpack.c.bf16 %v898_v0, %v898_v0  ;;  %2904 = vmatprep.subr.bf16.mxu1 %v3178_v57 }
 0x4cd   : > { %2889 = vmatmul.mubr.msk.bf16.vlgmr.msra.gmra.mrb[12].mxu0 %vm907_vm5, %v902_v4 }
 0x4ce   : > { %2899 = vmatpush3.bf16.msra.mxu0 %v1057_v5  ;;  %2900 = vmatprep.mubr.msk.bf16.mxu0 %vm3179_vm1, %v3178_v57 }
 0x4cf   : > { %2910 = vmatprep.subr.bf16.mxu0 %v3178_v57 }
 0x4ee   : > { %v889_v7 = vpop.xlane.xlu0 %888 }
 0x4ef   : > { %3113 = vrcp.f32 %v889_v7 }
 0x4f2   : > { %v892_v8 = vpop.xlane.xlu1 %891  ;;  %v1154_v11 = vpop.permute.xlu0 %1153 }
 0x4f3   : > { %3115 = vrcp.f32 %v892_v8  ;;  %v1159_v21 = vsel %vm662_vm2, %v1154_v11, 0 }
 0x4f6   : > { %v1101_v15 = vpop.permute.xlu1 %1100  ;;  %v1152_v20 = vpop.permute.xlu0 %1151 }
 0x4f9   : > { %v3114_v9 = vpop.eup %3113 }
 0x4fa   : > { %v899_v10 = vmul.f32 %v3114_v9, %v3106_v47  ;;  %v1205_v22 = vpop.permute.xlu1 %1204  ;;  %v1256_v24 = vpop.permute.xlu0 %1255 }
 0x4fb   : > { %v1210_v23 = vsel %vm662_vm2, %v1205_v22, 0  ;;  %v1261_v25 = vsel %vm662_vm2, %v1256_v24, 0 }
 0x4fc   : > { %v903_v13 = vpack.c.bf16 %v899_v10, %v899_v10 }
 0x4fd   : > { %v3116_v14 = vpop.eup %3115 }
 0x4fe   : > { %v900_v17 = vmul.f32 %v3116_v14, %v3108_v51  ;;  %2895 = vmatmul.mubr.msk.bf16.vlgmr.msra.gmra.mrb[12].mxu1 %vm907_vm5, %v903_v13  ;;  %v1203_v26 = vpop.permute.xlu1 %1202  ;;  %v1254_v27 = vpop.permute.xlu0 %1253 }
 0x4ff   : > { %2905 = vmatpush3.bf16.xpose.msra.mxu1 %v1108_v16  ;;  %2906 = vmatprep.mubr.msk.bf16.mxu1 %vm3179_vm1, %v3178_v57 }
 0x500   : > { %v904_v19 = vpack.c.bf16 %v900_v17, %v900_v17  ;;  %2916 = vmatprep.subr.bf16.mxu1 %v3178_v57 }
 0x502   : > { %2901 = vmatmul.mubr.msk.bf16.vlgmr.msra.gmra.mrb[16].mxu0 %vm907_vm5, %v904_v19 }
 0x503   : > { %2911 = vmatpush3.bf16.xpose.msra.mxu0 %v1159_v21  ;;  %2912 = vmatprep.mubr.msk.bf16.mxu0 %vm3179_vm1, %v3178_v57 }
 0x504   : > { %2922 = vmatprep.subr.bf16.mxu0 %v3178_v57 }
 0x506   : > { %2907 = vmatmul.mubr.msk.bf16.vlgmr.msra.gmra.mrb[16].mxu1 %vm662_vm2, %v1101_v15 }
 0x507   : > { %2917 = vmatpush3.bf16.xpose.msra.mxu1 %v1210_v23  ;;  %2918 = vmatprep.mubr.msk.bf16.mxu1 %vm3179_vm1, %v3178_v57 }
 0x508   : > { %2928 = vmatprep.subr.bf16.mxu1 %v3178_v57 }
 0x50a   : > { %2913 = vmatmul.mubr.msk.bf16.vlgmr.msra.gmra.mrb[20].mxu0 %vm662_vm2, %v1152_v20 }
 0x50b   : > { %2923 = vmatpush3.bf16.xpose.msra.mxu0 %v1261_v25  ;;  %2924 = vmatprep.mubr.msk.bf16.mxu0 %vm3179_vm1, %v3178_v57 }
 0x50c   : > { %2934 = vmatprep.subr.bf16.mxu0 %v3178_v57 }
 0x50e   : > { %2919 = vmatmul.mubr.msk.bf16.vlgmr.msra.gmra.mrb[20].mxu1 %vm662_vm2, %v1203_v26 }
 0x50f   : > { %2930 = vmatprep.mubr.msk.bf16.mxu1 %vm3179_vm1, %v3178_v57 }
 0x512   : > { %2925 = vmatmul.mubr.msk.bf16.vlgmr.msra.gmra.mrb[24].mxu0 %vm662_vm2, %v1254_v27 }
 0x513   : > { %2936 = vmatprep.mubr.msk.bf16.mxu0 %vm3179_vm1, %v3178_v57 }
 0x59c   : > { %v3407_v28 = vpop.f32.mrb[8].mxu1 }
 0x59d   : > { %v2884_v29 = vpop.f32.mrb[9].mxu1 }
 0x59e   : > { %v952_v30 = vpop.f32.mrb[10].mxu1 }
 0x59f   : > { %v2885_v31 = vpop.f32.mrb[11].mxu1 }
 0x5a0   : > { %v3409_v32 = vpop.f32.mrb[12].mxu0 }
 0x5a1   : > { %v2890_v33 = vpop.f32.mrb[13].mxu0 }
 0x5a2   : > { %v1000_v34 = vpop.f32.mrb[14].mxu0 }
 0x5a3   : > { %v2891_v35 = vpop.f32.mrb[15].mxu0 }
 0x5d1   : > { %v3411_v36 = vpop.f32.mrb[12].mxu1 }
 0x5d2   : > { %v2896_v37 = vpop.f32.mrb[13].mxu1 }
 0x5d3   : > { %v1048_v38 = vpop.f32.mrb[14].mxu1 }
 0x5d4   : > { %v2897_v39 = vpop.f32.mrb[15].mxu1 }
 0x5d5   : > { %v3413_v40 = vpop.f32.mrb[16].mxu0 }
 0x5d6   : > { %v2902_v41 = vpop.f32.mrb[17].mxu0 }
 0x5d7   : > { %v1096_v42 = vpop.f32.mrb[18].mxu0 }
 0x5d8   : > { %v2903_v43 = vpop.f32.mrb[19].mxu0 }
 0x5d9   : > { %v1144_v44 = vpop.f32.mrb[16].mxu1 }
 0x5da   : > { %v2908_v47 = vpop.f32.mrb[17].mxu1  ;;  %v1303_v50 = vsel %vm856_vm3, %v1144_v44, -inf }
 0x5db   : > { %1304 = vmax.xlane.f32.xlu1 %v1303_v50  ;;  %v1147_v51 = vpop.f32.mrb[18].mxu1 }
 0x5dc   : > { %v2909_v52 = vpop.f32.mrb[19].mxu1 }
 0x5dd   : > { %v1195_v53 = vpop.f32.mrb[20].mxu0 }
 0x5de   : > { %v2914_v54 = vpop.f32.mrb[21].mxu0  ;;  %v1306_v55 = vsel %vm856_vm3, %v1195_v53, -inf }
 0x5df   : > { %1307 = vmax.xlane.f32.xlu0 %v1306_v55  ;;  %v1198_v56 = vpop.f32.mrb[22].mxu0 }
 0x5e0   : > { %v2915_v59 = vpop.f32.mrb[23].mxu0 }
 0x5e1   : > { %v1246_v60 = vpop.f32.mrb[20].mxu1 }
 0x5e2   : > { %v2920_v61 = vpop.f32.mrb[21].mxu1  ;;  %v1309_v63 = vsel %vm856_vm3, %v1246_v60, -inf }
 0x5e3   : > { %v1249_v0 = vpop.f32.mrb[22].mxu1  ;;  %1310 = vmax.xlane.f32.xlu0 %v1309_v63 }
 0x5e4   : > { %v2921_v3 = vpop.f32.mrb[23].mxu1 }
 0x5e5   : > { %v1297_v4 = vpop.f32.mrb[24].mxu0 }
 0x5e6   : > { %v2926_v5 = vpop.f32.mrb[25].mxu0  ;;  %v1312_v8 = vsel %vm856_vm3, %v1297_v4, -inf }
 0x5e7   : > { %v1300_v6 = vpop.f32.mrb[26].mxu0 }
 0x5e8   : > { %v2927_v7 = vpop.f32.mrb[27].mxu0 }
 0x5ec   : > { %1399 = vrot.lane.b32.xlu1 %v3308_v48, %s3184_s29 }
 0x5f9   : > { %1351 = vrot.lane.b32.xlu0 %v3303_v45, %s3184_s29 }
 0x610   : > { %1313 = vmax.xlane.f32.xlu1 %v1312_v8 }
 0x621   : > { %1447 = vrot.lane.b32.xlu1 %v3306_v46, %s3184_s29 }
 0x668   : > { %v1305_v9 = vpop.xlane.xlu1 %1304 }
 0x669   : > { %v1315_v10 = vsub.f32 %v1144_v44, %v1305_v9 }
 0x66b   : > { %v1319_v11 = vmul.f32 1.442695, %v1315_v10 }
 0x66c   : > { %v1400_v13 = vpop.permute.xlu1 %1399  ;;  %v1308_v14 = vpop.xlane.xlu0 %1307 }
 0x66d   : > { %3117 = vpow2.f32 %v1319_v11  ;;  %v1405_v15 = vsel %vm911_vm4, %v1400_v13, 0  ;;  %v1316_v16 = vsub.f32 %v1195_v53, %v1308_v14 }
 0x66e   : > { %2935 = vmatpush3.bf16.msra.mxu0 %v1405_v15 }
 0x66f   : > { %v1321_v17 = vmul.f32 1.442695, %v1316_v16  ;;  %2946 = vmatprep.subr.bf16.mxu0 %v3178_v57 }
 0x670   : > { %v1311_v19 = vpop.xlane.xlu0 %1310 }
 0x671   : > { %3119 = vpow2.f32 %v1321_v17  ;;  %v1317_v26 = vsub.f32 %v1246_v60, %v1311_v19 }
 0x673   : > { %v1323_v27 = vmul.f32 1.442695, %v1317_v26 }
 0x674   : > { %v1352_v20 = vpop.permute.xlu0 %1351 }
 0x675   : > { %v1357_v21 = vsel %vm911_vm4, %v1352_v20, 0  ;;  %3121 = vpow2.f32 %v1323_v27 }
 0x676   : > { %2929 = vmatpush3.bf16.msra.mxu1 %v1357_v21 }
 0x677   : > { %v3118_v22 = vpop.eup %3117  ;;  %2940 = vmatprep.subr.bf16.mxu1 %v3178_v57 }
 0x678   : > { %v1327_v23 = vsel %vm856_vm3, %v3118_v22, 0.0 }
 0x679   : > { %1328 = vadd.xlane.f32.xlu0 %v1327_v23 }
 0x67b   : > { %v3120_v24 = vpop.eup %3119 }
 0x67c   : > { %v1330_v25 = vsel %vm856_vm3, %v3120_v24, 0.0 }
 0x67d   : > { %1331 = vadd.xlane.f32.xlu1 %v1330_v25 }
 0x67f   : > { %v3122_v33 = vpop.eup %3121 }
 0x680   : > { %v1333_v34 = vsel %vm856_vm3, %v3122_v33, 0.0 }
 0x68e   : > { %1545 = vrot.lane.b32.xlu1 %v3303_v45, %s3185_s10 }
 0x68f   : > { %1495 = vrot.lane.b32.xlu0 %v3312_v49, %s3184_s29 }
 0x69d   : > { %v1314_v29 = vpop.xlane.xlu1 %1313 }
 0x69e   : > { %v1318_v30 = vsub.f32 %v1297_v4, %v1314_v29 }
 0x6a0   : > { %v1325_v31 = vmul.f32 1.442695, %v1318_v30 }
 0x6a1   : > { %v1448_v38 = vpop.permute.xlu1 %1447 }
 0x6a2   : > { %3123 = vpow2.f32 %v1325_v31  ;;  %v1453_v50 = vsel %vm911_vm4, %v1448_v38, 0 }
 0x6ac   : > { %v3124_v35 = vpop.eup %3123 }
 0x6ad   : > { %v1336_v37 = vsel %vm856_vm3, %v3124_v35, 0.0 }
 0x6ae   : > { %1334 = vadd.xlane.f32.xlu0 %v1333_v34 }
 0x6b2   : > { %1337 = vadd.xlane.f32.xlu1 %v1336_v37 }
 0x6c3   : > { %1543 = vrot.lane.b32.xlu1 %v3318_v58, %s3186_s12 }
 0x6c4   : > { %1595 = vrot.lane.b32.xlu0 %v3308_v48, %s3185_s10 }
 0x6c7   : > { %1645 = vrot.lane.b32.xlu1 %v3306_v46, %s3185_s10 }
 0x6c8   : > { %1593 = vrot.lane.b32.xlu0 %v3326_v62, %s3186_s12 }
 0x6cb   : > { %1643 = vrot.lane.b32.xlu1 %v3334_v1, %s3186_s12 }
 0x6cc   : > { %1695 = vrot.lane.b32.xlu0 %v3312_v49, %s3185_s10 }
 0x6d0   : > { %1693 = vrot.lane.b32.xlu0 %v3341_v2, %s3186_s12 }
 0x706   : > { %v1329_v39 = vpop.xlane.xlu0 %1328 }
 0x707   : > { %3125 = vrcp.f32 %v1329_v39 }
 0x70a   : > { %v1332_v41 = vpop.xlane.xlu1 %1331  ;;  %v1496_v52 = vpop.permute.xlu0 %1495 }
 0x70b   : > { %3127 = vrcp.f32 %v1332_v41  ;;  %v1501_v54 = vsel %vm911_vm4, %v1496_v52, 0 }
 0x70e   : > { %v1546_v55 = vpop.permute.xlu1 %1545 }
 0x70f   : > { %v1551_v5 = vsel %vm662_vm2, %v1546_v55, 0 }
 0x711   : > { %v3126_v42 = vpop.eup %3125 }
 0x712   : > { %v1343_v43 = vmul.f32 %v3126_v42, %v3118_v22 }
 0x714   : > { %v1347_v44 = vpack.c.bf16 %v1343_v43, %v1343_v43 }
 0x715   : > { %v3128_v47 = vpop.eup %3127 }
 0x716   : > { %v1344_v51 = vmul.f32 %v3128_v47, %v3120_v24  ;;  %2931 = vmatmul.mubr.msk.bf16.vlgmr.msra.gmra.mrb[24].mxu1 %vm907_vm5, %v1347_v44 }
 0x717   : > { %2941 = vmatpush3.bf16.msra.mxu1 %v1453_v50  ;;  %2942 = vmatprep.mubr.msk.bf16.mxu1 %vm3179_vm1, %v3178_v57 }
 0x718   : > { %v1348_v53 = vpack.c.bf16 %v1344_v51, %v1344_v51  ;;  %2952 = vmatprep.subr.bf16.mxu1 %v3178_v57 }
 0x71a   : > { %2937 = vmatmul.mubr.msk.bf16.vlgmr.msra.gmra.mrb[28].mxu0 %vm907_vm5, %v1348_v53 }
 0x71b   : > { %2947 = vmatpush3.bf16.msra.mxu0 %v1501_v54  ;;  %2948 = vmatprep.mubr.msk.bf16.mxu0 %vm3179_vm1, %v3178_v57 }
 0x71c   : > { %2958 = vmatprep.subr.bf16.mxu0 %v3178_v57 }
 0x73b   : > { %v1335_v56 = vpop.xlane.xlu0 %1334 }
 0x73c   : > { %3129 = vrcp.f32 %v1335_v56 }
 0x73f   : > { %v1338_v59 = vpop.xlane.xlu1 %1337  ;;  %v1596_v63 = vpop.permute.xlu0 %1595 }
 0x740   : > { %3131 = vrcp.f32 %v1338_v59  ;;  %v1601_v9 = vsel %vm662_vm2, %v1596_v63, 0 }
 0x743   : > { %v1544_v4 = vpop.permute.xlu1 %1543  ;;  %v1594_v8 = vpop.permute.xlu0 %1593 }
 0x746   : > { %v3130_v60 = vpop.eup %3129 }
 0x747   : > { %v1345_v61 = vmul.f32 %v3130_v60, %v3122_v33  ;;  %v1646_v10 = vpop.permute.xlu1 %1645  ;;  %v1696_v13 = vpop.permute.xlu0 %1695 }
 0x748   : > { %v1651_v11 = vsel %vm662_vm2, %v1646_v10, 0  ;;  %v1701_v14 = vsel %vm662_vm2, %v1696_v13, 0 }
 0x749   : > { %v1349_v0 = vpack.c.bf16 %v1345_v61, %v1345_v61 }
 0x74a   : > { %v3132_v3 = vpop.eup %3131 }
 0x74b   : > { %v1346_v6 = vmul.f32 %v3132_v3, %v3124_v35  ;;  %2943 = vmatmul.mubr.msk.bf16.vlgmr.msra.gmra.mrb[28].mxu1 %vm907_vm5, %v1349_v0  ;;  %v1644_v15 = vpop.permute.xlu1 %1643  ;;  %v1694_v16 = vpop.permute.xlu0 %1693 }
 0x74c   : > { %2953 = vmatpush3.bf16.xpose.msra.mxu1 %v1551_v5  ;;  %2954 = vmatprep.mubr.msk.bf16.mxu1 %vm3179_vm1, %v3178_v57 }
 0x74d   : > { %v1350_v7 = vpack.c.bf16 %v1346_v6, %v1346_v6  ;;  %2964 = vmatprep.subr.bf16.mxu1 %v3178_v57 }
 0x74f   : > { %2949 = vmatmul.mubr.msk.bf16.vlgmr.msra.gmra.mrb[32].mxu0 %vm907_vm5, %v1350_v7 }
 0x750   : > { %2959 = vmatpush3.bf16.xpose.msra.mxu0 %v1601_v9  ;;  %2960 = vmatprep.mubr.msk.bf16.mxu0 %vm3179_vm1, %v3178_v57 }
 0x751   : > { %2970 = vmatprep.subr.bf16.mxu0 %v3178_v57 }
 0x753   : > { %2955 = vmatmul.mubr.msk.bf16.vlgmr.msra.gmra.mrb[32].mxu1 %vm662_vm2, %v1544_v4 }
 0x754   : > { %2965 = vmatpush3.bf16.xpose.msra.mxu1 %v1651_v11  ;;  %2966 = vmatprep.mubr.msk.bf16.mxu1 %vm3179_vm1, %v3178_v57 }
 0x755   : > { %2976 = vmatprep.subr.bf16.mxu1 %v3178_v57 }
 0x757   : > { %2961 = vmatmul.mubr.msk.bf16.vlgmr.msra.gmra.mrb[36].mxu0 %vm662_vm2, %v1594_v8 }
 0x758   : > { %2971 = vmatpush3.bf16.xpose.msra.mxu0 %v1701_v14  ;;  %2972 = vmatprep.mubr.msk.bf16.mxu0 %vm3179_vm1, %v3178_v57 }
 0x759   : > { %2982 = vmatprep.subr.bf16.mxu0 %v3178_v57 }
 0x75b   : > { %2967 = vmatmul.mubr.msk.bf16.vlgmr.msra.gmra.mrb[36].mxu1 %vm662_vm2, %v1644_v15 }
 0x75c   : > { %2978 = vmatprep.mubr.msk.bf16.mxu1 %vm3179_vm1, %v3178_v57 }
 0x75f   : > { %2973 = vmatmul.mubr.msk.bf16.vlgmr.msra.gmra.mrb[40].mxu0 %vm662_vm2, %v1694_v16 }
 0x760   : > { %2984 = vmatprep.mubr.msk.bf16.mxu0 %vm3179_vm1, %v3178_v57 }
 0x7e9   : > { %v3479_v17 = vpop.f32.mrb[24].mxu1 }
 0x7ea   : > { %v2932_v19 = vpop.f32.mrb[25].mxu1 }
 0x7eb   : > { %v1396_v20 = vpop.f32.mrb[26].mxu1 }
 0x7ec   : > { %v2933_v21 = vpop.f32.mrb[27].mxu1 }
 0x7ed   : > { %v3481_v22 = vpop.f32.mrb[28].mxu0 }
 0x7ee   : > { %v2938_v23 = vpop.f32.mrb[29].mxu0 }
 0x7ef   : > { %v1444_v24 = vpop.f32.mrb[30].mxu0 }
 0x7f0   : > { %v2939_v25 = vpop.f32.mrb[31].mxu0 }
 0x81e   : > { %v3483_v26 = vpop.f32.mrb[28].mxu1 }
 0x81f   : > { %v2944_v27 = vpop.f32.mrb[29].mxu1 }
 0x820   : > { %v1492_v29 = vpop.f32.mrb[30].mxu1 }
 0x821   : > { %v2945_v30 = vpop.f32.mrb[31].mxu1 }
 0x822   : > { %v3485_v31 = vpop.f32.mrb[32].mxu0 }
 0x823   : > { %v2950_v33 = vpop.f32.mrb[33].mxu0 }
 0x824   : > { %v1540_v34 = vpop.f32.mrb[34].mxu0 }
 0x825   : > { %v2951_v35 = vpop.f32.mrb[35].mxu0 }
 0x826   : > { %v1587_v37 = vpop.f32.mrb[32].mxu1 }
 0x827   : > { %v2956_v38 = vpop.f32.mrb[33].mxu1  ;;  %v1743_v39 = vsel %vm856_vm3, %v1587_v37, -inf }
 0x828   : > { %1744 = vmax.xlane.f32.xlu1 %v1743_v39  ;;  %v1590_v41 = vpop.f32.mrb[34].mxu1 }
 0x829   : > { %v2957_v42 = vpop.f32.mrb[35].mxu1 }
 0x82a   : > { %v1637_v43 = vpop.f32.mrb[36].mxu0 }
 0x82b   : > { %v2962_v44 = vpop.f32.mrb[37].mxu0  ;;  %v1746_v47 = vsel %vm856_vm3, %v1637_v43, -inf }
 0x82c   : > { %1747 = vmax.xlane.f32.xlu0 %v1746_v47  ;;  %v1640_v50 = vpop.f32.mrb[38].mxu0 }
 0x82d   : > { %v2963_v51 = vpop.f32.mrb[39].mxu0 }
 0x82e   : > { %v1687_v52 = vpop.f32.mrb[36].mxu1 }
 0x82f   : > { %v2968_v53 = vpop.f32.mrb[37].mxu1  ;;  %v1749_v54 = vsel %vm856_vm3, %v1687_v52, -inf }
 0x830   : > { %v1690_v55 = vpop.f32.mrb[38].mxu1  ;;  %1750 = vmax.xlane.f32.xlu0 %v1749_v54 }
 0x831   : > { %v2969_v56 = vpop.f32.mrb[39].mxu1 }
 0x832   : > { %v1737_v59 = vpop.f32.mrb[40].mxu0 }
 0x833   : > { %v2974_v60 = vpop.f32.mrb[41].mxu0  ;;  %v1752_v0 = vsel %vm856_vm3, %v1737_v59, -inf }
 0x834   : > { %v1740_v61 = vpop.f32.mrb[42].mxu0 }
 0x835   : > { %v2975_v63 = vpop.f32.mrb[43].mxu0 }
 0x839   : > { %1839 = vrot.lane.b32.xlu1 %v3308_v48, %s3187_s13 }
 0x846   : > { %1791 = vrot.lane.b32.xlu0 %v3303_v45, %s3187_s13 }
 0x85d   : > { %1753 = vmax.xlane.f32.xlu1 %v1752_v0 }
 0x86e   : > { %1887 = vrot.lane.b32.xlu1 %v3306_v46, %s3187_s13 }
 0x8b5   : > { %v1745_v3 = vpop.xlane.xlu1 %1744 }
 0x8b6   : > { %v1755_v4 = vsub.f32 %v1587_v37, %v1745_v3 }
 0x8b8   : > { %v1759_v5 = vmul.f32 1.442695, %v1755_v4 }
 0x8b9   : > { %v1840_v6 = vpop.permute.xlu1 %1839  ;;  %v1748_v7 = vpop.xlane.xlu0 %1747 }
 0x8ba   : > { %3133 = vpow2.f32 %v1759_v5  ;;  %v1845_v8 = vsel %vm911_vm4, %v1840_v6, 0  ;;  %v1756_v9 = vsub.f32 %v1637_v43, %v1748_v7 }
 0x8bb   : > { %2983 = vmatpush3.bf16.msra.mxu0 %v1845_v8 }
 0x8bc   : > { %v1761_v10 = vmul.f32 1.442695, %v1756_v9  ;;  %2994 = vmatprep.subr.bf16.mxu0 %v3178_v57 }
 0x8bd   : > { %v1751_v11 = vpop.xlane.xlu0 %1750 }
 0x8be   : > { %3135 = vpow2.f32 %v1761_v10  ;;  %v1757_v21 = vsub.f32 %v1687_v52, %v1751_v11 }
 0x8c0   : > { %v1763_v23 = vmul.f32 1.442695, %v1757_v21 }
 0x8c1   : > { %v1792_v13 = vpop.permute.xlu0 %1791 }
 0x8c2   : > { %v1797_v14 = vsel %vm911_vm4, %v1792_v13, 0  ;;  %3137 = vpow2.f32 %v1763_v23 }
 0x8c3   : > { %2977 = vmatpush3.bf16.msra.mxu1 %v1797_v14 }
 0x8c4   : > { %v3134_v15 = vpop.eup %3133  ;;  %2988 = vmatprep.subr.bf16.mxu1 %v3178_v57 }
 0x8c5   : > { %v1767_v16 = vsel %vm856_vm3, %v3134_v15, 0.0 }
 0x8c6   : > { %1768 = vadd.xlane.f32.xlu0 %v1767_v16 }
 0x8c8   : > { %v3136_v19 = vpop.eup %3135 }
 0x8c9   : > { %v1770_v20 = vsel %vm856_vm3, %v3136_v19, 0.0 }
 0x8ca   : > { %1771 = vadd.xlane.f32.xlu1 %v1770_v20 }
 0x8cc   : > { %v3138_v29 = vpop.eup %3137 }
 0x8cd   : > { %v1773_v30 = vsel %vm856_vm3, %v3138_v29, 0.0 }
 0x8db   : > { %1985 = vrot.lane.b32.xlu1 %v3303_v45, %s3188_s14 }
 0x8dc   : > { %1935 = vrot.lane.b32.xlu0 %v3312_v49, %s3187_s13 }
 0x8ea   : > { %v1754_v24 = vpop.xlane.xlu1 %1753 }
 0x8eb   : > { %v1758_v25 = vsub.f32 %v1737_v59, %v1754_v24 }
 0x8ed   : > { %v1765_v27 = vmul.f32 1.442695, %v1758_v25 }
 0x8ee   : > { %v1888_v35 = vpop.permute.xlu1 %1887 }
 0x8ef   : > { %3139 = vpow2.f32 %v1765_v27  ;;  %v1893_v43 = vsel %vm911_vm4, %v1888_v35, 0 }
 0x8f9   : > { %v3140_v33 = vpop.eup %3139 }
 0x8fa   : > { %v1776_v34 = vsel %vm856_vm3, %v3140_v33, 0.0 }
 0x8fb   : > { %1774 = vadd.xlane.f32.xlu0 %v1773_v30 }
 0x8ff   : > { %1777 = vadd.xlane.f32.xlu1 %v1776_v34 }
 0x910   : > { %1983 = vrot.lane.b32.xlu1 %v3318_v58, %s3189_s15 }
 0x911   : > { %2035 = vrot.lane.b32.xlu0 %v3308_v48, %s3188_s14 }
 0x914   : > { %2085 = vrot.lane.b32.xlu1 %v3306_v46, %s3188_s14 }
 0x915   : > { %2033 = vrot.lane.b32.xlu0 %v3326_v62, %s3189_s15 }
 0x918   : > { %2083 = vrot.lane.b32.xlu1 %v3334_v1, %s3189_s15 }
 0x919   : > { %2135 = vrot.lane.b32.xlu0 %v3312_v49, %s3188_s14 }
 0x91d   : > { %2133 = vrot.lane.b32.xlu0 %v3341_v2, %s3189_s15  ;;  %s329_s15 = scalar_lea.vmem %s3658_s9, %s3660_s11 }
 0x953   : > { %v1769_v37 = vpop.xlane.xlu0 %1768 }
 0x954   : > { %3141 = vrcp.f32 %v1769_v37 }
 0x957   : > { %v1772_v38 = vpop.xlane.xlu1 %1771  ;;  %v1936_v62 = vpop.permute.xlu0 %1935 }
 0x958   : > { %3143 = vrcp.f32 %v1772_v38  ;;  %v1941_v2 = vsel %vm911_vm4, %v1936_v62, 0 }
 0x95b   : > { %v1986_v47 = vpop.permute.xlu1 %1985 }
 0x95c   : > { %v1991_v60 = vsel %vm662_vm2, %v1986_v47, 0 }
 0x95e   : > { %v3142_v39 = vpop.eup %3141 }
 0x95f   : > { %v1783_v41 = vmul.f32 %v3142_v39, %v3134_v15 }
 0x961   : > { %v1787_v58 = vpack.c.bf16 %v1783_v41, %v1783_v41 }
 0x962   : > { %v3144_v42 = vpop.eup %3143 }
 0x963   : > { %v1784_v44 = vmul.f32 %v3144_v42, %v3136_v19  ;;  %2979 = vmatmul.mubr.msk.bf16.vlgmr.msra.gmra.mrb[40].mxu1 %vm907_vm5, %v1787_v58 }
 0x964   : > { %2989 = vmatpush3.bf16.msra.mxu1 %v1893_v43  ;;  %2990 = vmatprep.mubr.msk.bf16.mxu1 %vm3179_vm1, %v3178_v57 }
 0x965   : > { %v1788_v1 = vpack.c.bf16 %v1784_v44, %v1784_v44  ;;  %3000 = vmatprep.subr.bf16.mxu1 %v3178_v57 }
 0x967   : > { %2985 = vmatmul.mubr.msk.bf16.vlgmr.msra.gmra.mrb[44].mxu0 %vm907_vm5, %v1788_v1 }
 0x968   : > { %2995 = vmatpush3.bf16.msra.mxu0 %v1941_v2  ;;  %2996 = vmatprep.mubr.msk.bf16.mxu0 %vm3179_vm1, %v3178_v57 }
 0x969   : > { %3006 = vmatprep.subr.bf16.mxu0 %v3178_v57 }
 0x988   : > { %v1775_v50 = vpop.xlane.xlu0 %1774 }
 0x989   : > { %3145 = vrcp.f32 %v1775_v50 }
 0x98c   : > { %v1778_v51 = vpop.xlane.xlu1 %1777  ;;  %v2036_v54 = vpop.permute.xlu0 %2035 }
 0x98d   : > { %3147 = vrcp.f32 %v1778_v51  ;;  %v2041_v3 = vsel %vm662_vm2, %v2036_v54, 0 }
 0x990   : > { %v1984_v59 = vpop.permute.xlu1 %1983  ;;  %v2034_v0 = vpop.permute.xlu0 %2033 }
 0x993   : > { %v3146_v52 = vpop.eup %3145 }
 0x994   : > { %v1785_v53 = vmul.f32 %v3146_v52, %v3138_v29  ;;  %v2086_v4 = vpop.permute.xlu1 %2085  ;;  %v2136_v6 = vpop.permute.xlu0 %2135 }
 0x995   : > { %v2091_v5 = vsel %vm662_vm2, %v2086_v4, 0  ;;  %v2141_v7 = vsel %vm662_vm2, %v2136_v6, 0 }
 0x996   : > { %v1789_v55 = vpack.c.bf16 %v1785_v53, %v1785_v53 }
 0x997   : > { %v3148_v56 = vpop.eup %3147 }
 0x998   : > { %v1786_v61 = vmul.f32 %v3148_v56, %v3140_v33  ;;  %2991 = vmatmul.mubr.msk.bf16.vlgmr.msra.gmra.mrb[44].mxu1 %vm907_vm5, %v1789_v55  ;;  %v2084_v8 = vpop.permute.xlu1 %2083  ;;  %v2134_v9 = vpop.permute.xlu0 %2133 }
 0x999   : > { %3001 = vmatpush3.bf16.xpose.msra.mxu1 %v1991_v60  ;;  %3002 = vmatprep.mubr.msk.bf16.mxu1 %vm3179_vm1, %v3178_v57 }
 0x99a   : > { %v1790_v63 = vpack.c.bf16 %v1786_v61, %v1786_v61  ;;  %3012 = vmatprep.subr.bf16.mxu1 %v3178_v57 }
 0x99c   : > { %2997 = vmatmul.mubr.msk.bf16.vlgmr.msra.gmra.mrb[48].mxu0 %vm907_vm5, %v1790_v63 }
 0x99d   : > { %3007 = vmatpush3.bf16.xpose.msra.mxu0 %v2041_v3  ;;  %3008 = vmatprep.mubr.msk.bf16.mxu0 %vm3179_vm1, %v3178_v57 }
 0x99e   : > { %3018 = vmatprep.subr.bf16.mxu0 %v3178_v57 }
 0x9a0   : > { %3003 = vmatmul.mubr.msk.bf16.vlgmr.msra.gmra.mrb[48].mxu1 %vm662_vm2, %v1984_v59 }
 0x9a1   : > { %3013 = vmatpush3.bf16.xpose.msra.mxu1 %v2091_v5  ;;  %3014 = vmatprep.mubr.msk.bf16.mxu1 %vm3179_vm1, %v3178_v57 }
 0x9a2   : > { %3024 = vmatprep.subr.bf16.mxu1 %v3178_v57 }
 0x9a4   : > { %3009 = vmatmul.mubr.msk.bf16.vlgmr.msra.gmra.mrb[52].mxu0 %vm662_vm2, %v2034_v0 }
 0x9a5   : > { %3019 = vmatpush3.bf16.xpose.msra.mxu0 %v2141_v7  ;;  %3020 = vmatprep.mubr.msk.bf16.mxu0 %vm3179_vm1, %v3178_v57 }
 0x9a6   : > { %3030 = vmatprep.subr.bf16.mxu0 %v3178_v57 }
 0x9a8   : > { %3015 = vmatmul.mubr.msk.bf16.vlgmr.msra.gmra.mrb[52].mxu1 %vm662_vm2, %v2084_v8 }
 0x9a9   : > { %3026 = vmatprep.mubr.msk.bf16.mxu1 %vm3179_vm1, %v3178_v57 }
 0x9ac   : > { %3021 = vmatmul.mubr.msk.bf16.vlgmr.msra.gmra.mrb[56].mxu0 %vm662_vm2, %v2134_v9 }
 0x9ad   : > { %3032 = vmatprep.mubr.msk.bf16.mxu0 %vm3179_vm1, %v3178_v57 }
 0xa36   : > { %v3551_v10 = vpop.f32.mrb[40].mxu1 }
 0xa37   : > { %v2980_v11 = vpop.f32.mrb[41].mxu1 }
 0xa38   : > { %v1836_v13 = vpop.f32.mrb[42].mxu1 }
 0xa39   : > { %v2981_v14 = vpop.f32.mrb[43].mxu1 }
 0xa3a   : > { %v3553_v15 = vpop.f32.mrb[44].mxu0 }
 0xa3b   : > { %v2986_v16 = vpop.f32.mrb[45].mxu0 }
 0xa3c   : > { %v1884_v19 = vpop.f32.mrb[46].mxu0 }
 0xa3d   : > { %v2987_v20 = vpop.f32.mrb[47].mxu0 }
 0xa6b   : > { %v3555_v21 = vpop.f32.mrb[44].mxu1 }
 0xa6c   : > { %v2992_v23 = vpop.f32.mrb[45].mxu1 }
 0xa6d   : > { %v1932_v24 = vpop.f32.mrb[46].mxu1 }
 0xa6e   : > { %v2993_v25 = vpop.f32.mrb[47].mxu1 }
 0xa6f   : > { %v3557_v27 = vpop.f32.mrb[48].mxu0 }
 0xa70   : > { %v2998_v29 = vpop.f32.mrb[49].mxu0 }
 0xa71   : > { %v1980_v30 = vpop.f32.mrb[50].mxu0 }
 0xa72   : > { %v2999_v33 = vpop.f32.mrb[51].mxu0 }
 0xa73   : > { %v2027_v34 = vpop.f32.mrb[48].mxu1 }
 0xa74   : > { %v3004_v35 = vpop.f32.mrb[49].mxu1  ;;  %v2183_v37 = vsel %vm856_vm3, %v2027_v34, -inf }
 0xa75   : > { %2184 = vmax.xlane.f32.xlu1 %v2183_v37  ;;  %v2030_v38 = vpop.f32.mrb[50].mxu1 }
 0xa76   : > { %v3005_v39 = vpop.f32.mrb[51].mxu1 }
 0xa77   : > { %v2077_v41 = vpop.f32.mrb[52].mxu0 }
 0xa78   : > { %v3010_v58 = vpop.f32.mrb[53].mxu0  ;;  %v2186_v42 = vsel %vm856_vm3, %v2077_v41, -inf }
 0xa79   : > { %2187 = vmax.xlane.f32.xlu0 %v2186_v42  ;;  %v2080_v43 = vpop.f32.mrb[54].mxu0 }
 0xa7a   : > { %v3011_v44 = vpop.f32.mrb[55].mxu0 }
 0xa7b   : > { %v2127_v62 = vpop.f32.mrb[52].mxu1  ;;  %v3095_v44 = vld [vmem:[%s3654_s5] sm:$0xff]  }
 0xa7c   : > { %v3016_v1 = vpop.f32.mrb[53].mxu1  ;;  %v2189_v2 = vsel %vm856_vm3, %v2127_v62, -inf }
 0xa7d   : > { %v2130_v47 = vpop.f32.mrb[54].mxu1  ;;  %2190 = vmax.xlane.f32.xlu0 %v2189_v2 }
 0xa7e   : > { %v3017_v50 = vpop.f32.mrb[55].mxu1 }
 0xa7f   : > { %v2177_v51 = vpop.f32.mrb[56].mxu0  ;;  %v3096_v50 = vld [vmem:[%s3654_s5 + $0x8] sm:$0xff]  }
 0xa80   : > { %v3022_v52 = vpop.f32.mrb[57].mxu0  ;;  %v2192_v53 = vsel %vm856_vm3, %v2177_v51, -inf }
 0xa81   : > { %2193 = vmax.xlane.f32.xlu1 %v2192_v53  ;;  %v2180_v54 = vpop.f32.mrb[58].mxu0 }
 0xa82   : > { %v3023_v55 = vpop.f32.mrb[59].mxu0 }
 0xa83   : > { %v3097_v55 = vld [vmem:[%s3656_s7] sm:$0xff]  }
 0xa92   : > { %2279 = vrot.lane.b32.xlu1 %v3308_v48, %s3190_s16 }
 0xa93   : > { %2231 = vrot.lane.b32.xlu0 %v3303_v45, %s3190_s16 }
 0xb02   : > { %v2185_v56 = vpop.xlane.xlu1 %2184 }
 0xb03   : > { %v2195_v59 = vsub.f32 %v2027_v34, %v2185_v56 }
 0xb05   : > { %v2199_v60 = vmul.f32 1.442695, %v2195_v59 }
 0xb06   : > { %v2188_v61 = vpop.xlane.xlu0 %2187 }
 0xb07   : > { %3149 = vpow2.f32 %v2199_v60  ;;  %v2196_v63 = vsub.f32 %v2077_v41, %v2188_v61 }
 0xb09   : > { %v2201_v0 = vmul.f32 1.442695, %v2196_v63 }
 0xb0a   : > { %v2191_v3 = vpop.xlane.xlu0 %2190 }
 0xb0b   : > { %3151 = vpow2.f32 %v2201_v0  ;;  %v2197_v4 = vsub.f32 %v2127_v62, %v2191_v3 }
 0xb0d   : > { %v2203_v5 = vmul.f32 1.442695, %v2197_v4 }
 0xb0e   : > { %v2232_v6 = vpop.permute.xlu0 %2231  ;;  %v2194_v7 = vpop.xlane.xlu1 %2193 }
 0xb0f   : > { %3153 = vpow2.f32 %v2203_v5  ;;  %v2237_v8 = vsel %vm911_vm4, %v2232_v6, 0  ;;  %v2198_v48 = vsub.f32 %v2177_v51, %v2194_v7 }
 0xb10   : > { %3025 = vmatpush3.bf16.msra.mxu1 %v2237_v8 }
 0xb11   : > { %v3150_v9 = vpop.eup %3149  ;;  %v2205_v45 = vmul.f32 1.442695, %v2198_v48  ;;  %3036 = vmatprep.subr.bf16.mxu1 %v3178_v57 }
 0xb12   : > { %v2280_v11 = vpop.permute.xlu1 %2279  ;;  %v2207_v13 = vsel %vm856_vm3, %v3150_v9, 0.0 }
 0xb13   : > { %3155 = vpow2.f32 %v2205_v45  ;;  %v2285_v14 = vsel %vm911_vm4, %v2280_v11, 0  ;;  %2208 = vadd.xlane.f32.xlu0 %v2207_v13 }
 0xb14   : > { %3031 = vmatpush3.bf16.msra.mxu0 %v2285_v14 }
 0xb15   : > { %v3152_v16 = vpop.eup %3151  ;;  %3042 = vmatprep.subr.bf16.mxu0 %v3178_v57 }
 0xb16   : > { %v2210_v19 = vsel %vm856_vm3, %v3152_v16, 0.0 }
 0xb17   : > { %2211 = vadd.xlane.f32.xlu1 %v2210_v19 }
 0xb19   : > { %v3154_v20 = vpop.eup %3153 }
 0xb1a   : > { %v2213_v23 = vsel %vm856_vm3, %v3154_v20, 0.0 }
 0xb1b   : > { %2214 = vadd.xlane.f32.xlu0 %v2213_v23 }
 0xb1d   : > { %v3156_v24 = vpop.eup %3155 }
 0xb1e   : > { %v2216_v25 = vsel %vm856_vm3, %v3156_v24, 0.0 }
 0xb1f   : > { %2217 = vadd.xlane.f32.xlu1 %v2216_v25 }
 0xb30   : > { %2327 = vrot.lane.b32.xlu1 %v3306_v46, %s3190_s16 }
 0xb31   : > { %2375 = vrot.lane.b32.xlu0 %v3312_v49, %s3190_s16 }
 0xb34   : > { %2427 = vrot.lane.b32.xlu1 %v3479_v17, %s3191_s17 }
 0xb35   : > { %2429 = vrot.lane.b32.xlu0 %v3481_v22, %s3191_s17 }
 0xb38   : > { %2431 = vrot.lane.b32.xlu1 %v3483_v26, %s3191_s17 }
 0xb39   : > { %2433 = vrot.lane.b32.xlu0 %v3485_v31, %s3191_s17 }
 0xb3c   : > { %2443 = vrot.lane.b32.xlu1 %v3551_v10, %s3192_s18 }
 0xb3d   : > { %2445 = vrot.lane.b32.xlu0 %v3553_v15, %s3192_s18 }
 0xb40   : > { %2447 = vrot.lane.b32.xlu1 %v3555_v21, %s3192_s18 }
 0xb41   : > { %2449 = vrot.lane.b32.xlu0 %v3557_v27, %s3192_s18 }
 0xba0   : > { %v2209_v46 = vpop.xlane.xlu0 %2208 }
 0xba1   : > { %3157 = vrcp.f32 %v2209_v46 }
 0xba4   : > { %v2212_v49 = vpop.xlane.xlu1 %2211 }
 0xba5   : > { %3159 = vrcp.f32 %v2212_v49 }
 0xba8   : > { %v2215_v17 = vpop.xlane.xlu0 %2214 }
 0xba9   : > { %3161 = vrcp.f32 %v2215_v17 }
 0xbab   : > { %v3158_v22 = vpop.eup %3157 }
 0xbac   : > { %v2223_v29 = vmul.f32 %v3158_v22, %v3150_v9  ;;  %v2218_v26 = vpop.xlane.xlu1 %2217  ;;  %v2376_v15 = vpop.permute.xlu0 %2375 }
 0xbad   : > { %3163 = vrcp.f32 %v2218_v26  ;;  %v2381_v37 = vsel %vm911_vm4, %v2376_v15, 0 }
 0xbae   : > { %v2227_v31 = vpack.c.bf16 %v2223_v29, %v2223_v29 }
 0xbaf   : > { %v3160_v30 = vpop.eup %3159 }
 0xbb0   : > { %v2224_v33 = vmul.f32 %v3160_v30, %v3152_v16  ;;  %3027 = vmatmul.mubr.msk.bf16.vlgmr.msra.gmra.mrb[56].mxu1 %vm907_vm5, %v2227_v31  ;;  %v2328_v10 = vpop.permute.xlu1 %2327  ;;  %v2430_v4 = vpop.permute.xlu0 %2429 }
 0xbb1   : > { %v2333_v21 = vsel %vm911_vm4, %v2328_v10, 0  ;;  %3038 = vmatprep.mubr.msk.bf16.mxu1 %vm3179_vm1, %v3178_v57  ;;  %v2472_v11 = vsel %vm662_vm2, %v3409_v32, %v2430_v4 }
 0xbb2   : > { %3037 = vmatpush3.bf16.msra.mxu1 %v2333_v21  ;;  %v2228_v27 = vpack.c.bf16 %v2224_v33, %v2224_v33 }
 0xbb3   : > { %v3162_v34 = vpop.eup %3161  ;;  %3048 = vmatprep.subr.bf16.mxu1 %v3178_v57 }
 0xbb4   : > { %v2225_v35 = vmul.f32 %v3162_v34, %v3154_v20  ;;  %3033 = vmatmul.mubr.msk.bf16.vlgmr.msra.gmra.mrb[60].mxu0 %vm907_vm5, %v2228_v27  ;;  %v2428_v3 = vpop.permute.xlu1 %2427  ;;  %v2434_v6 = vpop.permute.xlu0 %2433 }
 0xbb5   : > { %3043 = vmatpush3.bf16.msra.mxu0 %v2381_v37  ;;  %3044 = vmatprep.mubr.msk.bf16.mxu0 %vm3179_vm1, %v3178_v57  ;;  %v2474_v25 = vsel %vm662_vm2, %v3413_v40, %v2434_v6  ;;  %v2765_v40 = vld [vmem:[%s3655_s6] ss:$0 sm:$0xff] }
 0xbb6   : > { %v2229_v38 = vpack.c.bf16 %v2225_v35, %v2225_v35  ;;  %3056 = vmatprep.subr.bf16.mxu0 %v3178_v57  ;;  %v2769_v37 = vld [vmem:[%s3657_s8] ss:$0 sm:$0xff] }
 0xbb7   : > { %v3164_v39 = vpop.eup %3163 }
 0xbb8   : > { %v2226_v41 = vmul.f32 %v3164_v39, %v3156_v24  ;;  %3039 = vmatmul.mubr.msk.bf16.vlgmr.msra.gmra.mrb[60].mxu1 %vm907_vm5, %v2229_v38  ;;  %v2432_v5 = vpop.permute.xlu1 %2431  ;;  %v2446_v8 = vpop.permute.xlu0 %2445 }
 0xbb9   : > { %3052 = vmatprep.mubr.msk.bf16.mxu1 %vm3179_vm1, %v3178_v57  ;;  %3049 = vmatpush3.bf16.msra.mxu1 %v3095_v44  ;;  %v2477_v13 = vsel %vm2475_vm6, %v2472_v11, %v2446_v8  ;;  %v2473_v46 = vsel %vm662_vm2, %v3411_v36, %v2432_v5  ;;  %v3098_v36 = vld [vmem:[%s3656_s7 + $0x8] sm:$0xff]  }
 0xbba   : > { %v2230_v58 = vpack.c.bf16 %v2226_v41, %v2226_v41  ;;  %3050 = vmatprep.subr.bf16.mxu1 %v3178_v57 }
 0xbbc   : > { %3045 = vmatmul.mubr.msk.bf16.vlgmr.msra.gmra.mrb[64].mxu0 %vm907_vm5, %v2230_v58  ;;  %v2444_v7 = vpop.permute.xlu1 %2443  ;;  %v2450_v9 = vpop.permute.xlu0 %2449 }
 0xbbd   : > { %3060 = vmatprep.mubr.msk.bf16.mxu0 %vm3179_vm1, %v3178_v57  ;;  %3051 = vmatpush3.bf16.msra.mxu1 %v3096_v50  ;;  %v2479_v49 = vsel %vm2475_vm6, %v2474_v25, %v2450_v9 }
 0xbbe   : > { %3057 = vmatpush3.bf16.msra.mxu0 %v3097_v55 }
 0xbbf   : > { %3058 = vmatprep.subr.bf16.mxu0 %v3178_v57  ;;  %v2471_v57 = vsel %vm662_vm2, %v3407_v28, %v2428_v3 }
 0xbc0   : > { %v2448_v48 = vpop.permute.xlu1 %2447  ;;  %v2476_v14 = vsel %vm2475_vm6, %v2471_v57, %v2444_v7 }
 0xbc1   : > { %v2478_v32 = vsel %vm2475_vm6, %v2473_v46, %v2448_v48 }
 0xbc2   : > { %3059 = vmatpush3.bf16.msra.mxu0 %v3098_v36 }
 0xc83   : > { %v2273_v42 = vpop.f32.mrb[56].mxu1 }
 0xc84   : > { %v3028_v43 = vpop.f32.mrb[57].mxu1  ;;  %2459 = vrot.lane.b32.xlu1 %v2273_v42, %s3193_s19 }
 0xc85   : > { %v2276_v62 = vpop.f32.mrb[58].mxu1 }
 0xc86   : > { %v3029_v1 = vpop.f32.mrb[59].mxu1 }
 0xc87   : > { %v2321_v2 = vpop.f32.mrb[60].mxu0 }
 0xc88   : > { %2461 = vrot.lane.b32.xlu0 %v2321_v2, %s3193_s19  ;;  %v3034_v47 = vpop.f32.mrb[61].mxu0 }
 0xc89   : > { %v2324_v51 = vpop.f32.mrb[62].mxu0 }
 0xc8a   : > { %v3035_v52 = vpop.f32.mrb[63].mxu0 }
 0xc8b   : > { %v2369_v53 = vpop.f32.mrb[60].mxu1 }
 0xc8c   : > { %2463 = vrot.lane.b32.xlu1 %v2369_v53, %s3193_s19  ;;  %v3040_v54 = vpop.f32.mrb[61].mxu1 }
 0xc8d   : > { %v2372_v56 = vpop.f32.mrb[62].mxu1 }
 0xc8e   : > { %v3041_v59 = vpop.f32.mrb[63].mxu1 }
 0xc8f   : > { %v2417_v60 = vpop.f32.mrb[64].mxu0 }
 0xc90   : > { %2465 = vrot.lane.b32.xlu0 %v2417_v60, %s3193_s19  ;;  %v3046_v61 = vpop.f32.mrb[65].mxu0 }
 0xc91   : > { %v2420_v63 = vpop.f32.mrb[66].mxu0 }
 0xc92   : > { %v3047_v0 = vpop.f32.mrb[67].mxu0 }
 0xcf6   : > { %v2460_v45 = vpop.permute.xlu1 %2459 }
 0xcf7   : > { %v2481_v19 = vsel %vm2480_vm7, %v2476_v14, %v2460_v45 }
 0xcfa   : > { %v2462_v16 = vpop.permute.xlu0 %2461 }
 0xcfb   : > { %v2482_v20 = vsel %vm2480_vm7, %v2477_v13, %v2462_v16 }
 0xcfc   : > { %v2489_v23 = vcombine.low %v2481_v19, %v2482_v20 }
 0xcfe   : > { %v2464_v24 = vpop.permute.xlu1 %2463  ;;  %v2497_v26 = vrot.slane %v2489_v23, %v3258_v12 }
 0xcff   : > { %v2483_v28 = vsel %vm2480_vm7, %v2478_v32, %v2464_v24 }
 0xd02   : > { %v2466_v17 = vpop.permute.xlu0 %2465 }
 0xd03   : > { %v2484_v22 = vsel %vm2480_vm7, %v2479_v49, %v2466_v17 }
 0xd04   : > { %v2490_v29 = vcombine.low %v2483_v28, %v2484_v22 }
 0xd06   : > { %v2504_v31 = vrot.slane %v2490_v29, %v3258_v12 }
 0xd08   : > { %v2505_v30 = vcombine.low %v2497_v26, %v2504_v31 }
 0xd0a   : > { %v2507_v33 = vpack.c.bf16 %v2505_v30, %v2505_v30 }
 0xd0c   : > { %3053 = vmatmul.mubr.msk.bf16.vlgmr.msra.gmra.mrb[64].mxu1 %vm364_vm0, %v2507_v33 }
 0xddf   : > { %v2568_v10 = vpop.f32.mrb[64].mxu1 }
 0xde0   : > { %v2569_v15 = vadd.f32 %v2765_v40, %v2568_v10  ;;  %v3054_v21 = vpop.f32.mrb[65].mxu1 }
 0xde1   : > { %v2571_v27 = vpop.f32.mrb[66].mxu1 }
 0xde2   : > { %v2574_v34 = vpack.c.bf16 %v2569_v15, %v2569_v15  ;;  %v3055_v35 = vpop.f32.mrb[67].mxu1 }
 0xde4   : > { %3061 = vmatmul.mubr.msk.bf16.vlgmr.msra.gmra.mrb[68].mxu0 %vm364_vm0, %v2574_v34 }
 0xeb7   : > { %v2635_v38 = vpop.f32.mrb[68].mxu0 }
 0xeb8   : > { %v2636_v39 = vadd.f32 %v2769_v37, %v2635_v38  ;;  %v3062_v41 = vpop.f32.mrb[69].mxu0 }
 0xeb9   : > { %v2638_v58 = vpop.f32.mrb[70].mxu0 }
 0xeba   : > { %v2641_v42 = vadd.f32 %v2636_v39, %v3262_v18  ;;  %v3063_v43 = vpop.f32.mrb[71].mxu0 }
 0xebc   : > { %v2643_v44 = vcombine.high %v2641_v42, %v2641_v42  ;;  %v2650_v62 = vrot.slane %v2641_v42, %v3258_v12 }
 0xebe   : > { %v2657_v1 = vrot.slane %v2643_v44, %v3258_v12  ;;  %v2658_v2 = vcombine.high %v2650_v62, %v2650_v62  ;;  %v2664_v47 = vpack.c.bf16 %v2650_v62, %v2650_v62 }
 0xec0   : > { %v2659_v50 = vcombine.high %v2657_v1, %v2657_v1  ;;  %v2665_v51 = vpack.c.bf16 %v2658_v2, %v2658_v2  ;;  %v2666_v52 = vpack.c.bf16 %v2657_v1, %v2657_v1  ;;  %2669 = vst.msk [vmem:[%s329_s15] sm:$0x1] %vm2668_vm8, %v2664_v47 }
 0xec2   : > { %v2667_v53 = vpack.c.bf16 %v2659_v50, %v2659_v50  ;;  %2670 = vst.msk [vmem:[%s329_s15 + $0x1] sm:$0x1] %vm2668_vm8, %v2665_v51  ;;  %2671 = vst.msk [vmem:[%s329_s15 + $0x2] sm:$0x1] %vm2668_vm8, %v2666_v52 }
 0xec4   : > { %2672 = vst.msk [vmem:[%s329_s15 + $0x3] sm:$0x1] %vm2668_vm8, %v2667_v53 }
 0xec5 PF: > { %s19_s30 = sadd.s32 1, %s3171_s30  }
 0xec6   : > { %p16_p4 = scmp.ge.s32.totalorder %s19_s30, 4  }
 0xec8   :  { %18 = sbr.rel (!%p16_p4) target bundleno = 1 (0x1), region = 86 }

// kernel: eden_forward.10
= control target key start
LH: loop header
LB: loop body
LE: loop exit
PB: predicated region body
PF: predicated region fallthrough
CT: control target
= control target key end

     0   :  { %s2909_s24 = smov 0   ;;  %s3326_s0 = inlined_call_operand.vmem [shape: bf16[4,5,32], index: 0, kind: input, shape index: {}]   ;;  %s3327_s1 = inlined_call_operand.vmem [shape: f32[1,32], index: 1, kind: input, shape index: {}]   ;;  %s3328_s2 = inlined_call_operand.vmem [shape: f32[1,32], index: 2, kind: input, shape index: {}]   ;;  %s3329_s3 = inlined_call_operand.vmem [shape: bf16[32,96], index: 3, kind: input, shape index: {}]   ;;  %s3330_s4 = inlined_call_operand.vmem [shape: f32[1,96], index: 4, kind: input, shape index: {}]   ;;  %s3331_s5 = inlined_call_operand.vmem [shape: bf16[32,32], index: 5, kind: input, shape index: {}]   ;;  %s3332_s6 = inlined_call_operand.vmem [shape: f32[1,32], index: 6, kind: input, shape index: {}]   ;;  %s3333_s7 = inlined_call_operand.vmem [shape: bf16[4,5,32], index: 7, kind: output, shape index: {}]  }
   0x1 LB: > { %s2586_s25 = sadd.s32 4294967295, %s2849_s24   ;;  %p2590_p0 = scmp.ge.s32.totalorder %s2849_s24, 1  ;;  %s2849_s24 = sphi %s2909_s24, %s17_s24  }
   0x2   : > { %p238_p1 = scmp.lt.s32.totalorder %s2849_s24, 3 }
   0x4   : > { %p239_p2 = pnand %p2590_p0, %p238_p1 }
   0x5   : > { %s2591_s26 = sshll.u32 (!%p239_p2), %s2586_s25, 1  ;;  %v293_v0 = vlaneseq (!%p239_p2)  ;;  %v2851_v1 = vmov (!%p239_p2), 1966171168   ;;  %vm445_vm0 = vcmask (!%p239_p2), 261120   ;;  %vm449_vm1 = vcmask (!%p239_p2), 254976   ;;  %s2854_s18 = smov (!%p239_p2), 96  }
   0x6   : > { %242 = sbr.rel (%p239_p2) target bundleno = 3469 (0xd8d), region = 48  ;;  %p271_p3 = scmp.lt.s32.totalorder (!%p239_p2), %s2591_s26, 3  ;;  %v291_v2 = vunpack.c.l.s4 (!%p239_p2), %v2851_v1  ;;  %vm2853_vm2 = vmmov (!%p239_p2), 0   ;;  %vm1236_vm3 = vcmask (!%p239_p2), 64512   ;;  %vm1332_vm4 = vcmask (!%p239_p2), 36864  }
   0x7   : > { %v2917_v3 = vshrl.u32 (!%p239_p2), %v293_v0, 7  ;;  %s2855_s19 = smov (!%p239_p2), 64   ;;  %s2856_s20 = smov (!%p239_p2), 88   ;;  %vm1363_vm5 = vcmask (!%p239_p2), 1041408   ;;  %vm1364_vm6 = vcmask (!%p239_p2), 1042432   ;;  %vm1359_vm7 = vcmask (!%p239_p2), 39936  }
   0x8   : > { %v292_v4 = vunpack.c.0.s8 (!%p239_p2), %v291_v2  ;;  %s2858_s21 = smov (!%p239_p2), 120   ;;  %s2859_s22 = smov (!%p239_p2), 56   ;;  %vm2149_vm8 = vcmask (!%p239_p2), 195584   ;;  %vm2146_vm9 = vcmask (!%p239_p2), 130048   ;;  %vm2521_vm10 = vcmask (!%p239_p2), 256000  }
   0x9   : > { %v2951_v44 = vsub.s32 (!%p239_p2), 0, %v2917_v3  ;;  %v2954_v45 = vsub.s32 (!%p239_p2), 1, %v2917_v3  ;;  %v468_v46 = vsub.s32 (!%p239_p2), 2, %v2917_v3  ;;  %v472_v47 = vsub.s32 (!%p239_p2), 3, %v2917_v3  ;;  %s2860_s23 = smov (!%p239_p2), 80   ;;  %s2861_s25 = smov (!%p239_p2), 112  }
   0xa   : > { %v2928_v5 = vsub.s32 (!%p239_p2), %v292_v4, %v2917_v3  ;;  %v476_v49 = vsub.s32 (!%p239_p2), 4, %v2917_v3  ;;  %v480_v50 = vsub.s32 (!%p239_p2), 5, %v2917_v3  ;;  %v484_v51 = vsub.s32 (!%p239_p2), 6, %v2917_v3  ;;  %s2862_s28 = smov (!%p239_p2), 48   ;;  %s2863_s29 = smov (!%p239_p2), 72  }
   0xb   : > { %v488_v52 = vsub.s32 (!%p239_p2), 7, %v2917_v3  ;;  %s2865_s8 = smov (!%p239_p2), 40   ;;  %s2866_s9 = smov (!%p239_p2), 8   ;;  %vm2522_vm11 = vsmask.f32 (!%p239_p2), 2304 }
   0xc   : > { %s2867_s10 = smov (!%p239_p2), 16   ;;  %s2868_s11 = smov (!%p239_p2), 24   ;;  %vm2523_vm12 = vmand (!%p239_p2), %vm2521_vm10, %vm2522_vm11 }
   0xd   : > { %s3335_s26 = smov (!%p271_p3, %s2591_s26), 3 }
   0xe   : > { %s2592_s27 = sshll.u32 %s3335_s26, 2 }
   0xf   : > { %s274_s30 = scalar_lea.vmem %s3326_s0, %s2592_s27 }
  0x10   : > { %v283_v6 = vld [vmem:[%s274_s30] sm:$0x7]  ;;  %v284_v7 = vld [vmem:[%s274_s30 + $0x4] sm:$0x7]  ;;  %s2864_s30 = smov 104  }
  0x11   : > { %v285_v8 = vunpack.c.l.bf16 %v283_v6  ;;  %v286_v9 = vunpack.c.l.bf16 %v284_v7 }
  0x13   : > { %v289_v10 = vcombine.high %v285_v8, %v285_v8  ;;  %v296_v11 = vrot.slane %v285_v8, %v2928_v5  ;;  %v335_v12 = vrot.slane %v286_v9, %v2928_v5  ;;  %v328_v13 = vcombine.high %v286_v9, %v286_v9 }
  0x15   : > { %v303_v14 = vrot.slane %v289_v10, %v2928_v5  ;;  %v304_v15 = vcombine.high %v296_v11, %v296_v11  ;;  %v311_v16 = vrot.slane %v296_v11, %v2928_v5  ;;  %v343_v17 = vcombine.high %v335_v12, %v335_v12 }
  0x16   : > { %v350_v18 = vrot.slane %v335_v12, %v2928_v5  ;;  %v342_v19 = vrot.slane %v328_v13, %v2928_v5 }
  0x17   : > { %v318_v20 = vrot.slane %v303_v14, %v2928_v5  ;;  %v325_v21 = vrot.slane %v304_v15, %v2928_v5  ;;  %v364_v22 = vrot.slane %v343_v17, %v2928_v5  ;;  %v326_v54 = vcombine.high %v311_v16, %v311_v16 }
  0x18   : > { %v365_v23 = vcombine.high %v350_v18, %v350_v18  ;;  %v357_v24 = vrot.slane %v342_v19, %v2928_v5 }
  0x19   : > { %v379_v25 = vcombine.low %v311_v16, %v325_v21  ;;  %v2595_v26 = vcombine.high %v311_v16, %v325_v21  ;;  %v381_v27 = vcombine.low %v318_v20, %v350_v18  ;;  %v366_v28 = vcombine.high %v364_v22, %v364_v22 }
  0x1a   : > { %v382_v29 = vcombine.low %v364_v22, %v365_v23  ;;  %v327_v55 = vcombine.high %v325_v21, %v325_v21 }
  0x1b   : > { %v389_v30 = vrot.slane %v379_v25, %v2928_v5  ;;  %v396_v31 = vrot.slane %v2595_v26, %v2928_v5  ;;  %v403_v32 = vrot.slane %v381_v27, %v2928_v5  ;;  %v428_v33 = vcombine.low %v366_v28, %v357_v24 }
  0x1c   : > { %v410_v34 = vrot.slane %v382_v29, %v2928_v5 }
  0x1d   : > { %v411_v35 = vcombine.low %v389_v30, %v396_v31  ;;  %v435_v37 = vrot.slane %v428_v33, %v2928_v5 }
  0x1e   : > { %v412_v36 = vcombine.low %v403_v32, %v410_v34 }
  0x1f   : > { %v419_v38 = vrot.slane %v411_v35, %v2928_v5  ;;  %v442_v41 = vrot.slane %v435_v37, %v2928_v5 }
  0x20   : > { %v426_v39 = vrot.slane %v412_v36, %v2928_v5 }
  0x21   : > { %v450_v43 = vsel %vm449_vm1, %v442_v41, 0.0 }
  0x22   : > { %v427_v40 = vcombine.low %v419_v38, %v426_v39 }
  0x24   : > { %v446_v42 = vsel %vm445_vm0, %v427_v40, 0.0 }
  0x25   : > { %447 = vadd.xlane.f32.xlu0 %v446_v42 }
  0x29   : > { %451 = vadd.xlane.f32.xlu0 %v450_v43 }
  0xb2   : > { %v448_v48 = vpop.xlane.xlu0 %447 }
  0xb3   : > { %v454_v53 = vmul.f32 0.03125, %v448_v48  ;;  %v2803_v48 = vld [vmem:[%s3329_s3] sm:$0xff]  }
  0xb5   : > { %v461_v56 = vrot.slane %v454_v53, %v2951_v44  ;;  %v465_v57 = vrot.slane %v454_v53, %v2954_v45  ;;  %v469_v58 = vrot.slane %v454_v53, %v468_v46  ;;  %v473_v59 = vrot.slane %v454_v53, %v472_v47 }
  0xb6   : > { %v452_v60 = vpop.xlane.xlu0 %451  ;;  %v477_v61 = vrot.slane %v454_v53, %v476_v49  ;;  %v481_v62 = vrot.slane %v454_v53, %v480_v50  ;;  %v485_v63 = vrot.slane %v454_v53, %v484_v51  ;;  %v489_v0 = vrot.slane %v454_v53, %v488_v52 }
  0xb7   : > { %v455_v1 = vmul.f32 0.03125, %v452_v60  ;;  %v2976_v2 = vsub.f32 %v311_v16, %v461_v56  ;;  %v2978_v4 = vsub.f32 %v325_v21, %v465_v57  ;;  %v2980_v6 = vsub.f32 %v326_v54, %v469_v58  ;;  %v2804_v54 = vld [vmem:[%s3329_s3 + $0x8] sm:$0xff]   ;;  %v2597_v56 = vld [vmem:[%s3328_s2] ss:$0 sm:$0xff] }
  0xb8   : > { %v2982_v7 = vsub.f32 %v327_v55, %v473_v59  ;;  %v2984_v8 = vsub.f32 %v318_v20, %v477_v61  ;;  %v2986_v9 = vsub.f32 %v350_v18, %v481_v62  ;;  %v2988_v10 = vsub.f32 %v364_v22, %v485_v63  ;;  %v2596_v55 = vld [vmem:[%s3327_s1] ss:$0 sm:$0xff] }
  0xb9   : > { %v493_v11 = vrot.slane %v455_v1, %v2951_v44  ;;  %v497_v12 = vrot.slane %v455_v1, %v2954_v45  ;;  %v2992_v13 = vsub.f32 %v365_v23, %v489_v0  ;;  %v518_v14 = vmul.f32 %v2976_v2, %v2976_v2 }
  0xba   : > { %v519_v15 = vmul.f32 %v2978_v4, %v2978_v4  ;;  %v520_v16 = vmul.f32 %v2980_v6, %v2980_v6  ;;  %v521_v17 = vmul.f32 %v2982_v7, %v2982_v7  ;;  %v522_v18 = vmul.f32 %v2984_v8, %v2984_v8 }
  0xbb   : > { %v3004_v19 = vsub.f32 %v366_v28, %v493_v11  ;;  %v3006_v20 = vsub.f32 %v357_v24, %v497_v12  ;;  %v523_v21 = vmul.f32 %v2986_v9, %v2986_v9  ;;  %v524_v22 = vmul.f32 %v2988_v10, %v2988_v10 }
  0xbc   : > { %v525_v23 = vmul.f32 %v2992_v13, %v2992_v13  ;;  %v538_v25 = vcombine.low %v518_v14, %v519_v15  ;;  %v539_v26 = vcombine.low %v520_v16, %v521_v17  ;;  %v2852_v53 = vmov 0.0  }
  0xbd   : > { %v526_v27 = vmul.f32 %v3004_v19, %v3004_v19  ;;  %v527_v28 = vmul.f32 %v3006_v20, %v3006_v20  ;;  %v540_v29 = vcombine.low %v522_v18, %v523_v21  ;;  %2665 = vmatprep.subr.bf16.mxu0 %v2852_v53  ;;  %2669 = vmatprep.mubr.msk.bf16.mxu0 %vm2853_vm2, %v2852_v53 }
  0xbe   : > { %v541_v24 = vcombine.low %v524_v22, %v525_v23  ;;  %v548_v30 = vrot.slane %v538_v25, %v2928_v5  ;;  %v555_v31 = vrot.slane %v539_v26, %v2928_v5  ;;  %2666 = vmatpush3.bf16.msra.mxu0 %v2803_v48  ;;  %2673 = vmatprep.subr.bf16.mxu1 %v2852_v53 }
  0xbf   : > { %v562_v32 = vrot.slane %v540_v29, %v2928_v5  ;;  %v587_v33 = vcombine.low %v526_v27, %v527_v28  ;;  %2667 = vmatprep.subr.bf16.mxu0 %v2852_v53  ;;  %2675 = vmatprep.mubr.msk.bf16.mxu1 %vm2853_vm2, %v2852_v53  ;;  %v683_v57 = vcombine.high %v2596_v55, %v2596_v55 }
  0xc0   : > { %v569_v34 = vrot.slane %v541_v24, %v2928_v5  ;;  %v570_v35 = vcombine.low %v548_v30, %v555_v31  ;;  %v755_v58 = vcombine.high %v2597_v56, %v2597_v56  ;;  %v690_v61 = vrot.slane %v2596_v55, %v2928_v5 }
  0xc1   : > { %v594_v38 = vrot.slane %v587_v33, %v2928_v5  ;;  %v697_v62 = vrot.slane %v683_v57, %v2928_v5  ;;  %v762_v0 = vrot.slane %v2597_v56, %v2928_v5 }
  0xc2   : > { %v571_v36 = vcombine.low %v562_v32, %v569_v34  ;;  %v578_v37 = vrot.slane %v570_v35, %v2928_v5  ;;  %2668 = vmatpush3.bf16.msra.mxu0 %v2804_v54  ;;  %v769_v1 = vrot.slane %v755_v58, %v2928_v5  ;;  %v698_v14 = vcombine.high %v690_v61, %v690_v61 }
  0xc3   : > { %v601_v41 = vrot.slane %v594_v38, %v2928_v5  ;;  %2679 = vmatprep.subr.bf16.mxu0 %v2852_v53  ;;  %v699_v15 = vcombine.high %v697_v62, %v697_v62  ;;  %v770_v17 = vcombine.high %v762_v0, %v762_v0  ;;  %v706_v21 = vrot.slane %v690_v61, %v2928_v5 }
  0xc4   : > { %v585_v39 = vrot.slane %v571_v36, %v2928_v5  ;;  %v771_v18 = vcombine.high %v769_v1, %v769_v1  ;;  %v720_v22 = vrot.slane %v698_v14, %v2928_v5  ;;  %v713_v23 = vrot.slane %v697_v62, %v2928_v5 }
  0xc5   : > { %v607_v43 = vsel %vm449_vm1, %v601_v41, 0.0  ;;  %v727_v25 = vrot.slane %v699_v15, %v2928_v5  ;;  %v778_v26 = vrot.slane %v762_v0, %v2928_v5  ;;  %v785_v27 = vrot.slane %v769_v1, %v2928_v5 }
  0xc6   : > { %v586_v40 = vcombine.low %v578_v37, %v585_v39  ;;  %v792_v28 = vrot.slane %v770_v17, %v2928_v5  ;;  %v799_v29 = vrot.slane %v771_v18, %v2928_v5  ;;  %v728_v24 = vcombine.high %v706_v21, %v706_v21 }
  0xc7   : > { %v729_v30 = vcombine.high %v713_v23, %v713_v23  ;;  %v730_v31 = vcombine.high %v720_v22, %v720_v22  ;;  %v731_v32 = vcombine.high %v727_v25, %v727_v25  ;;  %v800_v34 = vcombine.high %v778_v26, %v778_v26 }
  0xc8   : > { %v604_v42 = vsel %vm445_vm0, %v586_v40, 0.0  ;;  %v801_v35 = vcombine.high %v785_v27, %v785_v27  ;;  %v802_v36 = vcombine.high %v792_v28, %v792_v28  ;;  %v803_v37 = vcombine.high %v799_v29, %v799_v29 }
  0xc9   : > { %605 = vadd.xlane.f32.xlu1 %v604_v42 }
  0xcd   : > { %608 = vadd.xlane.f32.xlu1 %v607_v43 }
 0x156   : > { %v606_v59 = vpop.xlane.xlu1 %605 }
 0x157   : > { %v610_v60 = vmul.f32 0.03125, %v606_v59 }
 0x159   : > { %v612_v63 = vadd.f32 1e-06, %v610_v60 }
 0x15a   : > { %v609_v11 = vpop.xlane.xlu1 %608 }
 0x15b   : > { %2807 = vrsqrt.f32 %v612_v63  ;;  %v611_v12 = vmul.f32 0.03125, %v609_v11 }
 0x15d   : > { %v613_v16 = vadd.f32 1e-06, %v611_v12 }
 0x15f   : > { %2809 = vrsqrt.f32 %v613_v16 }
 0x165   : > { %v2808_v33 = vpop.eup %2807 }
 0x166   : > { %v621_v38 = vrot.slane %v2808_v33, %v2951_v44  ;;  %v625_v39 = vrot.slane %v2808_v33, %v2954_v45  ;;  %v629_v40 = vrot.slane %v2808_v33, %v468_v46  ;;  %v633_v41 = vrot.slane %v2808_v33, %v472_v47 }
 0x167   : > { %v637_v42 = vrot.slane %v2808_v33, %v476_v49  ;;  %v641_v43 = vrot.slane %v2808_v33, %v480_v50  ;;  %v645_v48 = vrot.slane %v2808_v33, %v484_v51  ;;  %v649_v54 = vrot.slane %v2808_v33, %v488_v52 }
 0x168   : > { %v668_v55 = vmul.f32 %v621_v38, %v2976_v2  ;;  %v669_v56 = vmul.f32 %v625_v39, %v2978_v4  ;;  %v670_v46 = vmul.f32 %v629_v40, %v2980_v6  ;;  %v671_v47 = vmul.f32 %v633_v41, %v2982_v7 }
 0x169   : > { %v2810_v57 = vpop.eup %2809  ;;  %v672_v49 = vmul.f32 %v637_v42, %v2984_v8  ;;  %v673_v58 = vmul.f32 %v641_v43, %v2986_v9  ;;  %v674_v50 = vmul.f32 %v645_v48, %v2988_v10  ;;  %v675_v51 = vmul.f32 %v649_v54, %v2992_v13 }
 0x16a   : > { %v653_v3 = vrot.slane %v2810_v57, %v2951_v44  ;;  %v657_v52 = vrot.slane %v2810_v57, %v2954_v45  ;;  %v740_v2 = vmul.f32 %v706_v21, %v668_v55  ;;  %v741_v59 = vmul.f32 %v720_v22, %v669_v56 }
 0x16b   : > { %v742_v4 = vmul.f32 %v728_v24, %v670_v46  ;;  %v743_v60 = vmul.f32 %v730_v31, %v671_v47  ;;  %v744_v6 = vmul.f32 %v713_v23, %v672_v49  ;;  %v745_v61 = vmul.f32 %v727_v25, %v673_v58 }
 0x16c   : > { %v676_v7 = vmul.f32 %v653_v3, %v3004_v19  ;;  %v677_v8 = vmul.f32 %v657_v52, %v3006_v20  ;;  %v746_v62 = vmul.f32 %v729_v30, %v674_v50  ;;  %v747_v9 = vmul.f32 %v731_v32, %v675_v51 }
 0x16d   : > { %v812_v63 = vadd.f32 %v778_v26, %v740_v2  ;;  %v813_v10 = vadd.f32 %v792_v28, %v741_v59  ;;  %v814_v0 = vadd.f32 %v800_v34, %v742_v4  ;;  %v815_v13 = vadd.f32 %v802_v36, %v743_v60  ;;  %v2598_v34 = vld [vmem:[%s3330_s4] ss:$0 sm:$0xff] }
 0x16e   : > { %v748_v1 = vmul.f32 %v706_v21, %v676_v7  ;;  %v749_v44 = vmul.f32 %v720_v22, %v677_v8  ;;  %v816_v11 = vadd.f32 %v785_v27, %v744_v6  ;;  %v817_v45 = vadd.f32 %v799_v29, %v745_v61 }
 0x16f   : > { %v818_v12 = vadd.f32 %v801_v35, %v746_v62  ;;  %v819_v14 = vadd.f32 %v803_v37, %v747_v9  ;;  %v832_v15 = vcombine.low %v812_v63, %v813_v10  ;;  %v833_v16 = vcombine.low %v814_v0, %v815_v13 }
 0x170   : > { %v820_v17 = vadd.f32 %v778_v26, %v748_v1  ;;  %v821_v18 = vadd.f32 %v792_v28, %v749_v44  ;;  %v834_v23 = vcombine.low %v816_v11, %v817_v45 }
 0x171   : > { %v835_v19 = vcombine.low %v818_v12, %v819_v14  ;;  %v842_v20 = vrot.slane %v832_v15, %v2928_v5  ;;  %v849_v25 = vrot.slane %v833_v16, %v2928_v5 }
 0x172   : > { %v856_v24 = vrot.slane %v834_v23, %v2928_v5  ;;  %v881_v30 = vcombine.low %v820_v17, %v821_v18 }
 0x173   : > { %v863_v21 = vrot.slane %v835_v19, %v2928_v5  ;;  %v864_v22 = vcombine.low %v842_v20, %v849_v25 }
 0x174   : > { %v888_v27 = vrot.slane %v881_v30, %v2928_v5 }
 0x175   : > { %v865_v29 = vcombine.low %v856_v24, %v863_v21  ;;  %v872_v31 = vrot.slane %v864_v22, %v2928_v5 }
 0x176   : > { %v895_v28 = vrot.slane %v888_v27, %v2928_v5 }
 0x177   : > { %v879_v26 = vrot.slane %v865_v29, %v2928_v5 }
 0x179   : > { %v880_v32 = vcombine.low %v872_v31, %v879_v26 }
 0x17b   : > { %v898_v33 = vpack.c.bf16 %v895_v28, %v880_v32 }
 0x17d   : > { %2670 = vmatmul.mubr.msk.bf16.vlgmr.msra.gmra.mrb[0].mxu0 %vm445_vm0, %v898_v33 }
 0x17e   : > { %2681 = vmatprep.mubr.msk.bf16.mxu0 %vm2853_vm2, %v2852_v53 }
 0x250   : > { %v959_v35 = vpop.f32.mrb[0].mxu0 }
 0x251   : > { %v960_v36 = vadd.f32 %v2598_v34, %v959_v35  ;;  %v2671_v37 = vpop.f32.mrb[1].mxu0 }
 0x252   : > { %v962_v38 = vpop.f32.mrb[2].mxu0 }
 0x253   : > { %v968_v39 = vcombine.high %v960_v36, %v960_v36  ;;  %v975_v40 = vrot.slane %v960_v36, %v2928_v5  ;;  %v963_v41 = vadd.f32 %v2598_v34, %v962_v38  ;;  %v2672_v42 = vpop.f32.mrb[3].mxu0 }
 0x255   : > { %v982_v43 = vrot.slane %v968_v39, %v2928_v5  ;;  %v983_v48 = vcombine.high %v975_v40, %v975_v40  ;;  %v991_v54 = vrot.slane %v975_v40, %v2928_v5  ;;  %v1023_v55 = vrot.slane %v963_v41, %v2928_v5 }
 0x257   : > { %v984_v56 = vcombine.high %v982_v43, %v982_v43  ;;  %v998_v46 = vrot.slane %v982_v43, %v2928_v5  ;;  %v1005_v47 = vrot.slane %v983_v48, %v2928_v5  ;;  %v1013_v57 = vcombine.high %v991_v54, %v991_v54 }
 0x258   : > { %v1049_v49 = vmul.f32 0.35355338, %v991_v54  ;;  %v1024_v58 = vcombine.high %v1023_v55, %v1023_v55  ;;  %v1031_v50 = vrot.slane %v1023_v55, %v2928_v5 }
 0x259   : > { %v1012_v51 = vrot.slane %v984_v56, %v2928_v5  ;;  %v1014_v3 = vcombine.high %v998_v46, %v998_v46  ;;  %v1015_v52 = vcombine.high %v1005_v47, %v1005_v47  ;;  %v1050_v2 = vmul.f32 0.35355338, %v1005_v47 }
 0x25a   : > { %v1051_v59 = vmul.f32 0.35355338, %v1013_v57  ;;  %v1053_v4 = vmul.f32 0.35355338, %v998_v46  ;;  %v1151_v60 = vcombine.low %v991_v54, %v1005_v47  ;;  %v2602_v6 = vcombine.high %v991_v54, %v1005_v47 }
 0x25b   : > { %v1052_v61 = vmul.f32 0.35355338, %v1015_v52  ;;  %v1054_v7 = vmul.f32 0.35355338, %v1012_v51  ;;  %v1055_v8 = vmul.f32 0.35355338, %v1014_v3  ;;  %v1069_v62 = vcombine.low %v1049_v49, %v1050_v2 }
 0x25c   : > { %v1159_v9 = vrot.slane %v1151_v60, %v2928_v5  ;;  %v1166_v63 = vrot.slane %v2602_v6, %v2928_v5  ;;  %v1173_v10 = vrot.slane %v998_v46, %v2928_v5  ;;  %v1190_v0 = vcombine.low %v1012_v51, %v1014_v3 }
 0x25d   : > { %v1070_v13 = vcombine.low %v1051_v59, %v1052_v61  ;;  %v1108_v1 = vcombine.low %v1054_v7, %v1055_v8  ;;  %v1016_v44 = vcombine.high %v1012_v51, %v1012_v51  ;;  %v1038_v11 = vrot.slane %v1024_v58, %v2928_v5 }
 0x25e   : > { %v1174_v45 = vcombine.low %v1159_v9, %v1166_v63  ;;  %v1188_v12 = vrot.slane %v1173_v10, %v2928_v5  ;;  %v1057_v15 = vmul.f32 0.35355338, %v1031_v50  ;;  %v1198_v23 = vrot.slane %v1190_v0, %v2928_v5 }
 0x25f   : > { %v1056_v14 = vmul.f32 0.35355338, %v1016_v44  ;;  %v1058_v16 = vmul.f32 0.35355338, %v1038_v11  ;;  %v1191_v17 = vcombine.low %v1016_v44, %v1031_v50  ;;  %v1077_v19 = vrot.slane %v1069_v62, %v2928_v5 }
 0x260   : > { %v1181_v18 = vrot.slane %v1174_v45, %v2928_v5  ;;  %v1084_v20 = vrot.slane %v1070_v13, %v2928_v5  ;;  %v1212_v30 = vrot.slane %v1038_v11, %v2928_v5  ;;  %v1091_v21 = vrot.slane %v1053_v4, %v2928_v5 }
 0x261   : > { %v1109_v25 = vcombine.low %v1056_v14, %v1057_v15  ;;  %v1205_v24 = vrot.slane %v1191_v17, %v2928_v5  ;;  %v1116_v29 = vrot.slane %v1108_v1, %v2928_v5  ;;  %v1130_v26 = vrot.slane %v1058_v16, %v2928_v5 }
 0x262   : > { %v1189_v22 = vcombine.low %v1181_v18, %v1188_v12  ;;  %v1092_v27 = vcombine.low %v1077_v19, %v1084_v20  ;;  %v1106_v34 = vrot.slane %v1091_v21, %v2928_v5  ;;  %v1227_v37 = vrot.slane %v1212_v30, %v2928_v5 }
 0x263   : > { %v1123_v31 = vrot.slane %v1109_v25, %v2928_v5  ;;  %v1213_v28 = vcombine.low %v1198_v23, %v1205_v24  ;;  %v1145_v39 = vrot.slane %v1130_v26, %v2928_v5  ;;  %v2857_v60 = vmov 65535  }
 0x264   : > { %v3123_v32 = vpack.c.bf16 %v1189_v22, %v1189_v22  ;;  %v1099_v33 = vrot.slane %v1092_v27, %v2928_v5  ;;  %v1365_v6 = vsel %vm1363_vm5, 4294967295, %v2857_v60 }
 0x265   : > { %v1131_v35 = vcombine.low %v1116_v29, %v1123_v31  ;;  %v1220_v36 = vrot.slane %v1213_v28, %v2928_v5  ;;  %v3155_v8 = vsel %vm1364_vm6, %v1365_v6, 0 }
 0x266   : > { %1234 = vrot.lane.b32.xlu0 %v3123_v32, %s2854_s18  ;;  %v1107_v38 = vcombine.low %v1099_v33, %v1106_v34 }
 0x267   : > { %v1228_v40 = vcombine.low %v1220_v36, %v1227_v37  ;;  %v1138_v41 = vrot.slane %v1131_v35, %v2928_v5 }
 0x268   : > { %v3138_v46 = vpack.c.bf16 %v1107_v38, %v1107_v38 }
 0x269   : > { %v3132_v42 = vpack.c.bf16 %v1228_v40, %v1228_v40  ;;  %v1146_v43 = vcombine.low %v1138_v41, %v1145_v39 }
 0x26b   : > { %1284 = vrot.lane.b32.xlu1 %v3132_v42, %s2854_s18  ;;  %v3145_v47 = vpack.c.bf16 %v1146_v43, %v1146_v43 }
 0x2d8   : > { %v1235_v48 = vpop.permute.xlu0 %1234 }
 0x2d9   : > { %v1241_v54 = vsel %vm1236_vm3, %v1235_v48, 0 }
 0x2da   : > { %2674 = vmatpush3.bf16.xpose.msra.mxu1 %v1241_v54 }
 0x2db   : > { %2685 = vmatprep.subr.bf16.mxu1 %v2852_v53 }
 0x2dd   : > { %v1285_v55 = vpop.permute.xlu1 %1284 }
 0x2de   : > { %v1290_v56 = vsel %vm1236_vm3, %v1285_v55, 0 }
 0x2df   : > { %2680 = vmatpush3.bf16.xpose.msra.mxu0 %v1290_v56 }
 0x2e0   : > { %2691 = vmatprep.subr.bf16.mxu0 %v2852_v53 }
 0x2e1   : > { %2676 = vmatmul.mubr.msk.bf16.vlgmr.msra.gmra.mrb[0].mxu1 %vm1236_vm3, %v3138_v46 }
 0x2e2   : > { %2687 = vmatprep.mubr.msk.bf16.mxu1 %vm2853_vm2, %v2852_v53 }
 0x2e6   : > { %2682 = vmatmul.mubr.msk.bf16.vlgmr.msra.gmra.mrb[4].mxu0 %vm1236_vm3, %v3145_v47 }
 0x2e7   : > { %2693 = vmatprep.mubr.msk.bf16.mxu0 %vm2853_vm2, %v2852_v53 }
 0x3b4   : > { %v1277_v57 = vpop.f32.mrb[0].mxu1 }
 0x3b5   : > { %v2677_v49 = vpop.f32.mrb[1].mxu1  ;;  %v1333_v58 = vsel %vm1332_vm4, %v1277_v57, -inf }
 0x3b6   : > { %v1280_v50 = vpop.f32.mrb[2].mxu1  ;;  %1334 = vmax.xlane.f32.xlu1 %v1333_v58 }
 0x3b7   : > { %v2678_v51 = vpop.f32.mrb[3].mxu1 }
 0x3b9   : > { %v1326_v3 = vpop.f32.mrb[4].mxu0 }
 0x3ba   : > { %v2683_v52 = vpop.f32.mrb[5].mxu0  ;;  %v1336_v2 = vsel %vm1332_vm4, %v1326_v3, -inf }
 0x3bb   : > { %1337 = vmax.xlane.f32.xlu0 %v1336_v2  ;;  %v1329_v59 = vpop.f32.mrb[6].mxu0 }
 0x3bc   : > { %v2684_v4 = vpop.f32.mrb[7].mxu0 }
 0x3c7   : > { %1410 = vrot.lane.b32.xlu1 %v3132_v42, %s2855_s19 }
 0x3cb   : > { %1461 = vrot.lane.b32.xlu1 %v3123_v32, %s2856_s20 }
 0x443   : > { %v1335_v61 = vpop.xlane.xlu1 %1334 }
 0x444   : > { %v1339_v7 = vsub.f32 %v1277_v57, %v1335_v61 }
 0x446   : > { %v1341_v62 = vmul.f32 1.442695, %v1339_v7 }
 0x447   : > { %v1411_v9 = vpop.permute.xlu1 %1410 }
 0x448   : > { %2811 = vpow2.f32 %v1341_v62  ;;  %v1416_v63 = vand.u32 %v1411_v9, %v3155_v8  ;;  %v1338_v10 = vpop.xlane.xlu0 %1337 }
 0x449   : > { %v1340_v0 = vsub.f32 %v1326_v3, %v1338_v10 }
 0x44a   : > { %2692 = vmatpush3.bf16.msra.mxu0 %v1416_v63 }
 0x44b   : > { %v1343_v13 = vmul.f32 1.442695, %v1340_v0  ;;  %2703 = vmatprep.subr.bf16.mxu0 %v2852_v53  ;;  %v1462_v14 = vpop.permute.xlu1 %1461 }
 0x44c   : > { %v1467_v25 = vsel %vm1236_vm3, %v1462_v14, 0 }
 0x44d   : > { %2813 = vpow2.f32 %v1343_v13 }
 0x452   : > { %v2812_v1 = vpop.eup %2811 }
 0x453   : > { %v1345_v44 = vsel %vm1332_vm4, %v2812_v1, 0.0 }
 0x454   : > { %1346 = vadd.xlane.f32.xlu0 %v1345_v44 }
 0x457   : > { %v2814_v11 = vpop.eup %2813 }
 0x458   : > { %v1348_v45 = vsel %vm1332_vm4, %v2814_v11, 0.0 }
 0x459   : > { %1349 = vadd.xlane.f32.xlu1 %v1348_v45 }
 0x46a   : > { %1512 = vrot.lane.b32.xlu1 %v3132_v42, %s2856_s20  ;;  %1357 = vrot.lane.b32.xlu0 %v3123_v32, %s2855_s19  ;;  %s280_s20 = scalar_lea.vmem %s3333_s7, %s2592_s27 }
 0x46e   : > { %1510 = vrot.lane.b32.xlu1 %v3145_v47, %s2858_s21  ;;  %1459 = vrot.lane.b32.xlu0 %v3138_v46, %s2858_s21 }
 0x4e1   : > { %v1347_v12 = vpop.xlane.xlu0 %1346 }
 0x4e2   : > { %2815 = vrcp.f32 %v1347_v12 }
 0x4e5   : > { %v1358_v15 = vpop.permute.xlu0 %1357 }
 0x4e6   : > { %v1350_v16 = vpop.xlane.xlu1 %1349  ;;  %v1368_v17 = vand.u32 %v3155_v8, %v1358_v15 }
 0x4e7   : > { %2817 = vrcp.f32 %v1350_v16 }
 0x4e8   : > { %2686 = vmatpush3.bf16.msra.mxu1 %v1368_v17 }
 0x4e9   : > { %2697 = vmatprep.subr.bf16.mxu1 %v2852_v53  ;;  %v1460_v27 = vpop.permute.xlu0 %1459 }
 0x4ea   : > { %v1513_v30 = vpop.permute.xlu1 %1512 }
 0x4eb   : > { %v1518_v22 = vsel %vm1236_vm3, %v1513_v30, 0 }
 0x4ec   : > { %v2816_v18 = vpop.eup %2815 }
 0x4ed   : > { %v1353_v23 = vmul.f32 %v2816_v18, %v2812_v1 }
 0x4ee   : > { %v1511_v29 = vpop.permute.xlu1 %1510 }
 0x4ef   : > { %v1355_v19 = vpack.c.bf16 %v1353_v23, %v1353_v23 }
 0x4f1   : > { %v2818_v20 = vpop.eup %2817  ;;  %2688 = vmatmul.mubr.msk.bf16.vlgmr.msra.gmra.mrb[4].mxu1 %vm1359_vm7, %v1355_v19 }
 0x4f2   : > { %v1354_v24 = vmul.f32 %v2818_v20, %v2814_v11  ;;  %2698 = vmatpush3.bf16.xpose.msra.mxu1 %v1467_v25  ;;  %2699 = vmatprep.mubr.msk.bf16.mxu1 %vm2853_vm2, %v2852_v53 }
 0x4f3   : > { %2709 = vmatprep.subr.bf16.mxu1 %v2852_v53 }
 0x4f4   : > { %v1356_v21 = vpack.c.bf16 %v1354_v24, %v1354_v24 }
 0x4f6   : > { %2694 = vmatmul.mubr.msk.bf16.vlgmr.msra.gmra.mrb[8].mxu0 %vm1359_vm7, %v1356_v21 }
 0x4f7   : > { %2704 = vmatpush3.bf16.xpose.msra.mxu0 %v1518_v22  ;;  %2705 = vmatprep.mubr.msk.bf16.mxu0 %vm2853_vm2, %v2852_v53 }
 0x4f8   : > { %2715 = vmatprep.subr.bf16.mxu0 %v2852_v53 }
 0x4f9   : > { %2700 = vmatmul.mubr.msk.bf16.vlgmr.msra.gmra.mrb[8].mxu1 %vm1236_vm3, %v1460_v27 }
 0x4fa   : > { %2711 = vmatprep.mubr.msk.bf16.mxu1 %vm2853_vm2, %v2852_v53 }
 0x4fe   : > { %2706 = vmatmul.mubr.msk.bf16.vlgmr.msra.gmra.mrb[12].mxu0 %vm1236_vm3, %v1511_v29 }
 0x4ff   : > { %2717 = vmatprep.mubr.msk.bf16.mxu0 %vm2853_vm2, %v2852_v53 }
 0x5c4   : > { %v3183_v31 = vpop.f32.mrb[4].mxu1 }
 0x5c5   : > { %v2689_v26 = vpop.f32.mrb[5].mxu1 }
 0x5c6   : > { %v1407_v28 = vpop.f32.mrb[6].mxu1 }
 0x5c7   : > { %v2690_v33 = vpop.f32.mrb[7].mxu1 }
 0x5c9   : > { %v3185_v34 = vpop.f32.mrb[8].mxu0 }
 0x5ca   : > { %v2695_v35 = vpop.f32.mrb[9].mxu0 }
 0x5cb   : > { %v1455_v36 = vpop.f32.mrb[10].mxu0 }
 0x5cc   : > { %v2696_v37 = vpop.f32.mrb[11].mxu0  ;;  %v1503_v38 = vpop.f32.mrb[8].mxu1 }
 0x5cd   : > { %v2701_v39 = vpop.f32.mrb[9].mxu1  ;;  %v1560_v40 = vsel %vm1332_vm4, %v1503_v38, -inf }
 0x5ce   : > { %1561 = vmax.xlane.f32.xlu0 %v1560_v40  ;;  %v1506_v41 = vpop.f32.mrb[10].mxu1 }
 0x5cf   : > { %v2702_v43 = vpop.f32.mrb[11].mxu1 }
 0x5d1   : > { %v1554_v48 = vpop.f32.mrb[12].mxu0 }
 0x5d2   : > { %v2707_v54 = vpop.f32.mrb[13].mxu0  ;;  %v1563_v55 = vsel %vm1332_vm4, %v1554_v48, -inf }
 0x5d3   : > { %1564 = vmax.xlane.f32.xlu1 %v1563_v55  ;;  %v1557_v56 = vpop.f32.mrb[14].mxu0 }
 0x5d4   : > { %v2708_v57 = vpop.f32.mrb[15].mxu0 }
 0x5e4   : > { %1632 = vrot.lane.b32.xlu1 %v3132_v42, %s2859_s22 }
 0x5e8   : > { %1682 = vrot.lane.b32.xlu1 %v3123_v32, %s2860_s23 }
 0x5ec   : > { %1732 = vrot.lane.b32.xlu1 %v3132_v42, %s2860_s23 }
 0x5f0   : > { %1730 = vrot.lane.b32.xlu1 %v3145_v47, %s2861_s25 }
 0x65b   : > { %v1562_v49 = vpop.xlane.xlu0 %1561 }
 0x65c   : > { %v1566_v58 = vsub.f32 %v1503_v38, %v1562_v49 }
 0x65e   : > { %v1568_v50 = vmul.f32 1.442695, %v1566_v58 }
 0x660   : > { %2819 = vpow2.f32 %v1568_v50  ;;  %v1565_v51 = vpop.xlane.xlu1 %1564 }
 0x661   : > { %v1567_v3 = vsub.f32 %v1554_v48, %v1565_v51 }
 0x663   : > { %v1570_v52 = vmul.f32 1.442695, %v1567_v3 }
 0x664   : > { %v1633_v2 = vpop.permute.xlu1 %1632 }
 0x665   : > { %2821 = vpow2.f32 %v1570_v52  ;;  %v1638_v59 = vand.u32 %v1633_v2, %v3155_v8 }
 0x667   : > { %2716 = vmatpush3.bf16.msra.mxu0 %v1638_v59 }
 0x668   : > { %2727 = vmatprep.subr.bf16.mxu0 %v2852_v53  ;;  %v1683_v0 = vpop.permute.xlu1 %1682 }
 0x669   : > { %v1688_v14 = vsel %vm1236_vm3, %v1683_v0, 0 }
 0x66a   : > { %v2820_v4 = vpop.eup %2819 }
 0x66b   : > { %v1572_v60 = vsel %vm1332_vm4, %v2820_v4, 0.0 }
 0x66c   : > { %1573 = vadd.xlane.f32.xlu0 %v1572_v60  ;;  %v1733_v45 = vpop.permute.xlu1 %1732 }
 0x66d   : > { %v1738_v15 = vsel %vm1236_vm3, %v1733_v45, 0 }
 0x66f   : > { %v2822_v6 = vpop.eup %2821 }
 0x670   : > { %v1575_v61 = vsel %vm1332_vm4, %v2822_v6, 0.0  ;;  %v1731_v17 = vpop.permute.xlu1 %1730 }
 0x671   : > { %1576 = vadd.xlane.f32.xlu0 %v1575_v61 }
 0x687   : > { %1584 = vrot.lane.b32.xlu0 %v3123_v32, %s2859_s22 }
 0x68b   : > { %1680 = vrot.lane.b32.xlu0 %v3138_v46, %s2861_s25 }
 0x6f9   : > { %v1574_v7 = vpop.xlane.xlu0 %1573 }
 0x6fa   : > { %2823 = vrcp.f32 %v1574_v7 }
 0x6fe   : > { %v1577_v62 = vpop.xlane.xlu0 %1576 }
 0x6ff   : > { %2825 = vrcp.f32 %v1577_v62 }
 0x702   : > { %v1585_v9 = vpop.permute.xlu0 %1584 }
 0x703   : > { %v1590_v63 = vand.u32 %v1585_v9, %v3155_v8 }
 0x704   : > { %v2824_v10 = vpop.eup %2823 }
 0x705   : > { %v1580_v13 = vmul.f32 %v2824_v10, %v2820_v4  ;;  %2710 = vmatpush3.bf16.msra.mxu1 %v1590_v63 }
 0x706   : > { %2721 = vmatprep.subr.bf16.mxu1 %v2852_v53  ;;  %v1681_v16 = vpop.permute.xlu0 %1680 }
 0x707   : > { %v1582_v1 = vpack.c.bf16 %v1580_v13, %v1580_v13 }
 0x709   : > { %v2826_v44 = vpop.eup %2825  ;;  %2712 = vmatmul.mubr.msk.bf16.vlgmr.msra.gmra.mrb[12].mxu1 %vm1359_vm7, %v1582_v1 }
 0x70a   : > { %v1581_v11 = vmul.f32 %v2826_v44, %v2822_v6  ;;  %2723 = vmatprep.mubr.msk.bf16.mxu1 %vm2853_vm2, %v2852_v53 }
 0x70c   : > { %v1583_v12 = vpack.c.bf16 %v1581_v11, %v1581_v11 }
 0x70e   : > { %2718 = vmatmul.mubr.msk.bf16.vlgmr.msra.gmra.mrb[16].mxu0 %vm1359_vm7, %v1583_v12  ;;  %2722 = vmatpush3.bf16.xpose.msra.mxu1 %v1688_v14 }
 0x70f   : > { %2728 = vmatpush3.bf16.xpose.msra.mxu0 %v1738_v15  ;;  %2729 = vmatprep.mubr.msk.bf16.mxu0 %vm2853_vm2, %v2852_v53 }
 0x710   : > { %2739 = vmatprep.subr.bf16.mxu0 %v2852_v53  ;;  %2733 = vmatprep.subr.bf16.mxu1 %v2852_v53 }
 0x715   : > { %2724 = vmatmul.mubr.msk.bf16.vlgmr.msra.gmra.mrb[16].mxu1 %vm1236_vm3, %v1681_v16 }
 0x716   : > { %2730 = vmatmul.mubr.msk.bf16.vlgmr.msra.gmra.mrb[20].mxu0 %vm1236_vm3, %v1731_v17  ;;  %2735 = vmatprep.mubr.msk.bf16.mxu1 %vm2853_vm2, %v2852_v53 }
 0x717   : > { %2741 = vmatprep.mubr.msk.bf16.mxu0 %vm2853_vm2, %v2852_v53 }
 0x7dc   : > { %v3217_v18 = vpop.f32.mrb[12].mxu1 }
 0x7dd   : > { %v2713_v23 = vpop.f32.mrb[13].mxu1 }
 0x7de   : > { %v1629_v19 = vpop.f32.mrb[14].mxu1 }
 0x7df   : > { %v2714_v20 = vpop.f32.mrb[15].mxu1 }
 0x7e1   : > { %v3219_v25 = vpop.f32.mrb[16].mxu0 }
 0x7e2   : > { %v2719_v24 = vpop.f32.mrb[17].mxu0 }
 0x7e3   : > { %v1677_v30 = vpop.f32.mrb[18].mxu0 }
 0x7e4   : > { %v2720_v21 = vpop.f32.mrb[19].mxu0 }
 0x7e8   : > { %v1724_v22 = vpop.f32.mrb[16].mxu1 }
 0x7e9   : > { %v2725_v27 = vpop.f32.mrb[17].mxu1  ;;  %v1774_v29 = vpop.f32.mrb[20].mxu0  ;;  %v1780_v26 = vsel %vm1332_vm4, %v1724_v22, -inf }
 0x7ea   : > { %1781 = vmax.xlane.f32.xlu0 %v1780_v26  ;;  %v1727_v28 = vpop.f32.mrb[18].mxu1  ;;  %v2731_v33 = vpop.f32.mrb[21].mxu0  ;;  %v1783_v35 = vsel %vm1332_vm4, %v1774_v29, -inf }
 0x7eb   : > { %v2726_v36 = vpop.f32.mrb[19].mxu1  ;;  %1784 = vmax.xlane.f32.xlu1 %v1783_v35  ;;  %v1777_v37 = vpop.f32.mrb[22].mxu0 }
 0x7ec   : > { %v2732_v38 = vpop.f32.mrb[23].mxu0 }
 0x7fc   : > { %1852 = vrot.lane.b32.xlu1 %v3132_v42, %s2862_s28 }
 0x800   : > { %1902 = vrot.lane.b32.xlu1 %v3123_v32, %s2863_s29 }
 0x804   : > { %1952 = vrot.lane.b32.xlu1 %v3132_v42, %s2863_s29 }
 0x808   : > { %1950 = vrot.lane.b32.xlu1 %v3145_v47, %s2864_s30 }
 0x877   : > { %v1782_v39 = vpop.xlane.xlu0 %1781 }
 0x878   : > { %v1786_v40 = vsub.f32 %v1724_v22, %v1782_v39  ;;  %v1785_v41 = vpop.xlane.xlu1 %1784 }
 0x879   : > { %v1787_v43 = vsub.f32 %v1774_v29, %v1785_v41 }
 0x87a   : > { %v1788_v48 = vmul.f32 1.442695, %v1786_v40 }
 0x87b   : > { %v1790_v54 = vmul.f32 1.442695, %v1787_v43 }
 0x87c   : > { %2827 = vpow2.f32 %v1788_v48  ;;  %v1853_v55 = vpop.permute.xlu1 %1852 }
 0x87d   : > { %v1858_v56 = vand.u32 %v1853_v55, %v3155_v8  ;;  %2829 = vpow2.f32 %v1790_v54 }
 0x87f   : > { %2740 = vmatpush3.bf16.msra.mxu0 %v1858_v56 }
 0x880   : > { %2751 = vmatprep.subr.bf16.mxu0 %v2852_v53  ;;  %v1903_v59 = vpop.permute.xlu1 %1902 }
 0x881   : > { %v1908_v62 = vsel %vm1236_vm3, %v1903_v59, 0  ;;  %v2806_v59 = vld [vmem:[%s3331_s5 + $0x8] sm:$0xff]  }
 0x884   : > { %v1953_v7 = vpop.permute.xlu1 %1952 }
 0x885   : > { %v1958_v9 = vsel %vm1236_vm3, %v1953_v7, 0 }
 0x886   : > { %v2828_v57 = vpop.eup %2827 }
 0x887   : > { %v1792_v49 = vsel %vm1332_vm4, %v2828_v57, 0.0  ;;  %v2830_v58 = vpop.eup %2829 }
 0x888   : > { %1793 = vadd.xlane.f32.xlu0 %v1792_v49  ;;  %v1795_v47 = vsel %vm1332_vm4, %v2830_v58, 0.0  ;;  %v1951_v10 = vpop.permute.xlu1 %1950 }
 0x88c   : > { %1796 = vadd.xlane.f32.xlu0 %v1795_v47 }
 0x8a2   : > { %1804 = vrot.lane.b32.xlu0 %v3123_v32, %s2862_s28 }
 0x8a6   : > { %1900 = vrot.lane.b32.xlu0 %v3138_v46, %s2864_s30 }
 0x915   : > { %v1794_v50 = vpop.xlane.xlu0 %1793 }
 0x916   : > { %2831 = vrcp.f32 %v1794_v50 }
 0x919   : > { %v1797_v51 = vpop.xlane.xlu0 %1796 }
 0x91a   : > { %2833 = vrcp.f32 %v1797_v51 }
 0x91d   : > { %v1805_v3 = vpop.permute.xlu0 %1804 }
 0x91e   : > { %v1810_v52 = vand.u32 %v1805_v3, %v3155_v8 }
 0x920   : > { %v2832_v2 = vpop.eup %2831  ;;  %2734 = vmatpush3.bf16.msra.mxu1 %v1810_v52  ;;  %v2805_v52 = vld [vmem:[%s3331_s5] sm:$0xff]  }
 0x921   : > { %v1800_v4 = vmul.f32 %v2832_v2, %v2828_v57  ;;  %2745 = vmatprep.subr.bf16.mxu1 %v2852_v53  ;;  %v1901_v63 = vpop.permute.xlu0 %1900 }
 0x923   : > { %v1802_v60 = vpack.c.bf16 %v1800_v4, %v1800_v4 }
 0x924   : > { %v2834_v6 = vpop.eup %2833 }
 0x925   : > { %v1801_v61 = vmul.f32 %v2834_v6, %v2830_v58  ;;  %2736 = vmatmul.mubr.msk.bf16.vlgmr.msra.gmra.mrb[20].mxu1 %vm1359_vm7, %v1802_v60 }
 0x926   : > { %2747 = vmatprep.mubr.msk.bf16.mxu1 %vm2853_vm2, %v2852_v53 }
 0x927   : > { %v1803_v46 = vpack.c.bf16 %v1801_v61, %v1801_v61 }
 0x929   : > { %2742 = vmatmul.mubr.msk.bf16.vlgmr.msra.gmra.mrb[24].mxu0 %vm1359_vm7, %v1803_v46  ;;  %2746 = vmatpush3.bf16.xpose.msra.mxu1 %v1908_v62 }
 0x92a   : > { %2752 = vmatpush3.bf16.xpose.msra.mxu0 %v1958_v9  ;;  %2753 = vmatprep.mubr.msk.bf16.mxu0 %vm2853_vm2, %v2852_v53 }
 0x92b   : > { %2763 = vmatprep.subr.bf16.mxu0 %v2852_v53  ;;  %2757 = vmatprep.subr.bf16.mxu1 %v2852_v53 }
 0x930   : > { %2748 = vmatmul.mubr.msk.bf16.vlgmr.msra.gmra.mrb[24].mxu1 %vm1236_vm3, %v1901_v63 }
 0x931   : > { %2754 = vmatmul.mubr.msk.bf16.vlgmr.msra.gmra.mrb[28].mxu0 %vm1236_vm3, %v1951_v10  ;;  %2759 = vmatprep.mubr.msk.bf16.mxu1 %vm2853_vm2, %v2852_v53 }
 0x932   : > { %2765 = vmatprep.mubr.msk.bf16.mxu0 %vm2853_vm2, %v2852_v53 }
 0x9f8   : > { %v1846_v0 = vpop.f32.mrb[20].mxu1 }
 0x9f9   : > { %v2737_v13 = vpop.f32.mrb[21].mxu1 }
 0x9fa   : > { %v1849_v1 = vpop.f32.mrb[22].mxu1 }
 0x9fb   : > { %v2738_v44 = vpop.f32.mrb[23].mxu1 }
 0x9fc   : > { %v1894_v11 = vpop.f32.mrb[24].mxu0 }
 0x9fd   : > { %v2743_v45 = vpop.f32.mrb[25].mxu0 }
 0x9fe   : > { %v1897_v12 = vpop.f32.mrb[26].mxu0 }
 0x9ff   : > { %v2744_v14 = vpop.f32.mrb[27].mxu0 }
 0xa03   : > { %v1944_v15 = vpop.f32.mrb[24].mxu1 }
 0xa04   : > { %v2749_v16 = vpop.f32.mrb[25].mxu1  ;;  %v1994_v17 = vpop.f32.mrb[28].mxu0  ;;  %v2000_v23 = vsel %vm1332_vm4, %v1944_v15, -inf }
 0xa05   : > { %2001 = vmax.xlane.f32.xlu0 %v2000_v23  ;;  %v1947_v19 = vpop.f32.mrb[26].mxu1  ;;  %v2755_v20 = vpop.f32.mrb[29].mxu0  ;;  %v2003_v24 = vsel %vm1332_vm4, %v1994_v17, -inf }
 0xa06   : > { %v2750_v30 = vpop.f32.mrb[27].mxu1  ;;  %2004 = vmax.xlane.f32.xlu1 %v2003_v24  ;;  %v1997_v21 = vpop.f32.mrb[30].mxu0 }
 0xa07   : > { %v2756_v22 = vpop.f32.mrb[31].mxu0 }
 0xa17   : > { %2072 = vrot.lane.b32.xlu1 %v3132_v42, %s2865_s8 }
 0xa1b   : > { %2122 = vrot.lane.b32.xlu1 %v3217_v18, %s2866_s9 }
 0xa1f   : > { %2124 = vrot.lane.b32.xlu1 %v3219_v25, %s2866_s9 }
 0xa23   : > { %2132 = vrot.lane.b32.xlu1 %v1894_v11, %s2867_s10 }
 0xa92   : > { %v2002_v27 = vpop.xlane.xlu0 %2001 }
 0xa93   : > { %v2006_v29 = vsub.f32 %v1944_v15, %v2002_v27  ;;  %v2005_v26 = vpop.xlane.xlu1 %2004 }
 0xa94   : > { %v2007_v28 = vsub.f32 %v1994_v17, %v2005_v26 }
 0xa95   : > { %v2008_v33 = vmul.f32 1.442695, %v2006_v29 }
 0xa96   : > { %v2010_v35 = vmul.f32 1.442695, %v2007_v28 }
 0xa97   : > { %2835 = vpow2.f32 %v2008_v33  ;;  %v2073_v36 = vpop.permute.xlu1 %2072 }
 0xa98   : > { %v2078_v37 = vand.u32 %v2073_v36, %v3155_v8  ;;  %2837 = vpow2.f32 %v2010_v35 }
 0xa9a   : > { %2764 = vmatpush3.bf16.msra.mxu0 %v2078_v37 }
 0xa9b   : > { %v2123_v4 = vpop.permute.xlu1 %2122 }
 0xa9c   : > { %v2144_v61 = vsel %vm1236_vm3, %v3183_v31, %v2123_v4 }
 0xa9f   : > { %v2125_v60 = vpop.permute.xlu1 %2124 }
 0xaa1   : > { %v2836_v42 = vpop.eup %2835 }
 0xaa2   : > { %v2012_v38 = vsel %vm1332_vm4, %v2836_v42, 0.0  ;;  %v2838_v18 = vpop.eup %2837 }
 0xaa3   : > { %2013 = vadd.xlane.f32.xlu0 %v2012_v38  ;;  %v2015_v25 = vsel %vm1332_vm4, %v2838_v18, 0.0  ;;  %v2133_v7 = vpop.permute.xlu1 %2132 }
 0xaa7   : > { %2016 = vadd.xlane.f32.xlu0 %v2015_v25 }
 0xabd   : > { %2024 = vrot.lane.b32.xlu0 %v3123_v32, %s2865_s8 }
 0xac1   : > { %2130 = vrot.lane.b32.xlu0 %v1846_v0, %s2867_s10  ;;  %v2145_v0 = vsel %vm1236_vm3, %v3185_v34, %v2125_v60 }
 0xb30   : > { %v2014_v39 = vpop.xlane.xlu0 %2013 }
 0xb31   : > { %2839 = vrcp.f32 %v2014_v39 }
 0xb34   : > { %v2017_v40 = vpop.xlane.xlu0 %2016 }
 0xb35   : > { %2841 = vrcp.f32 %v2017_v40 }
 0xb38   : > { %v2025_v41 = vpop.permute.xlu0 %2024 }
 0xb39   : > { %v2030_v43 = vand.u32 %v2025_v41, %v3155_v8  ;;  %v2620_v41 = vld [vmem:[%s3332_s6] ss:$0 sm:$0xff] }
 0xb3b   : > { %v2840_v48 = vpop.eup %2839  ;;  %2758 = vmatpush3.bf16.msra.mxu1 %v2030_v43 }
 0xb3c   : > { %v2020_v54 = vmul.f32 %v2840_v48, %v2836_v42  ;;  %2769 = vmatprep.subr.bf16.mxu1 %v2852_v53  ;;  %v2131_v6 = vpop.permute.xlu0 %2130 }
 0xb3d   : > { %v2147_v46 = vsel %vm2146_vm9, %v2144_v61, %v2131_v6 }
 0xb3e   : > { %v2022_v55 = vpack.c.bf16 %v2020_v54, %v2020_v54 }
 0xb3f   : > { %v2842_v56 = vpop.eup %2841 }
 0xb40   : > { %v2021_v57 = vmul.f32 %v2842_v56, %v2838_v18  ;;  %2760 = vmatmul.mubr.msk.bf16.vlgmr.msra.gmra.mrb[28].mxu1 %vm1359_vm7, %v2022_v55 }
 0xb41   : > { %2773 = vmatprep.mubr.msk.bf16.mxu1 %vm2853_vm2, %v2852_v53  ;;  %2770 = vmatpush3.bf16.msra.mxu1 %v2805_v52 }
 0xb42   : > { %v2023_v32 = vpack.c.bf16 %v2021_v57, %v2021_v57  ;;  %2771 = vmatprep.subr.bf16.mxu1 %v2852_v53  ;;  %v2148_v53 = vsel %vm2146_vm9, %v2145_v0, %v2133_v7 }
 0xb44   : > { %2766 = vmatmul.mubr.msk.bf16.vlgmr.msra.gmra.mrb[32].mxu0 %vm1359_vm7, %v2023_v32 }
 0xb45   : > { %2772 = vmatpush3.bf16.msra.mxu1 %v2806_v59 }
 0xc13   : > { %v2066_v49 = vpop.f32.mrb[28].mxu1 }
 0xc14   : > { %2138 = vrot.lane.b32.xlu0 %v2066_v49, %s2868_s11  ;;  %v2761_v8 = vpop.f32.mrb[29].mxu1 }
 0xc15   : > { %v2069_v58 = vpop.f32.mrb[30].mxu1 }
 0xc16   : > { %v2762_v47 = vpop.f32.mrb[31].mxu1 }
 0xc17   : > { %v2114_v50 = vpop.f32.mrb[32].mxu0 }
 0xc18   : > { %2140 = vrot.lane.b32.xlu1 %v2114_v50, %s2868_s11  ;;  %v2767_v51 = vpop.f32.mrb[33].mxu0 }
 0xc19   : > { %v2117_v3 = vpop.f32.mrb[34].mxu0 }
 0xc1a   : > { %v2768_v2 = vpop.f32.mrb[35].mxu0 }
 0xc86   : > { %v2139_v62 = vpop.permute.xlu0 %2138 }
 0xc87   : > { %v2150_v9 = vsel %vm2149_vm8, %v2147_v46, %v2139_v62 }
 0xc88   : > { %v2154_v63 = vcombine.high %v2150_v9, %v2150_v9  ;;  %v2161_v10 = vrot.slane %v2150_v9, %v2928_v5 }
 0xc8a   : > { %v2169_v13 = vcombine.high %v2161_v10, %v2161_v10  ;;  %v2141_v1 = vpop.permute.xlu1 %2140  ;;  %v2168_v44 = vrot.slane %v2154_v63, %v2928_v5  ;;  %v2176_v45 = vrot.slane %v2161_v10, %v2928_v5 }
 0xc8b   : > { %v2151_v11 = vsel %vm2149_vm8, %v2148_v53, %v2141_v1 }
 0xc8c   : > { %v2190_v31 = vrot.slane %v2169_v13, %v2928_v5  ;;  %v2193_v12 = vcombine.high %v2151_v11, %v2151_v11  ;;  %v2200_v14 = vrot.slane %v2151_v11, %v2928_v5  ;;  %v2183_v34 = vrot.slane %v2168_v44, %v2928_v5 }
 0xc8e   : > { %v2232_v15 = vcombine.low %v2176_v45, %v2190_v31  ;;  %v2619_v16 = vcombine.high %v2176_v45, %v2190_v31  ;;  %v2207_v17 = vrot.slane %v2193_v12, %v2928_v5  ;;  %v2208_v23 = vcombine.high %v2200_v14, %v2200_v14 }
 0xc8f   : > { %v2215_v19 = vrot.slane %v2200_v14, %v2928_v5  ;;  %v2524_v14 = vld [vmem:[%s280_s20] sm:$0x7] }
 0xc90   : > { %v2229_v20 = vrot.slane %v2208_v23, %v2928_v5  ;;  %v2242_v24 = vrot.slane %v2232_v15, %v2928_v5  ;;  %v2249_v30 = vrot.slane %v2619_v16, %v2928_v5  ;;  %v2222_v27 = vrot.slane %v2207_v17, %v2928_v5 }
 0xc91   : > { %v2230_v21 = vcombine.high %v2215_v19, %v2215_v19  ;;  %v2234_v22 = vcombine.low %v2183_v34, %v2215_v19 }
 0xc92   : > { %v2231_v29 = vcombine.high %v2229_v20, %v2229_v20  ;;  %v2264_v33 = vcombine.low %v2242_v24, %v2249_v30 }
 0xc93   : > { %v2235_v26 = vcombine.low %v2229_v20, %v2230_v21  ;;  %v2256_v35 = vrot.slane %v2234_v22, %v2928_v5  ;;  %v2527_v20 = vld [vmem:[%s280_s20 + $0x4] sm:$0x7] }
 0xc94   : > { %v2281_v28 = vcombine.low %v2231_v29, %v2222_v27  ;;  %v2272_v38 = vrot.slane %v2264_v33, %v2928_v5 }
 0xc95   : > { %v2263_v36 = vrot.slane %v2235_v26, %v2928_v5 }
 0xc96   : > { %v2288_v42 = vrot.slane %v2281_v28, %v2928_v5 }
 0xc97   : > { %v2265_v37 = vcombine.low %v2256_v35, %v2263_v36 }
 0xc98   : > { %v2295_v25 = vrot.slane %v2288_v42, %v2928_v5 }
 0xc99   : > { %v2279_v18 = vrot.slane %v2265_v37, %v2928_v5 }
 0xc9b   : > { %v2280_v39 = vcombine.low %v2272_v38, %v2279_v18 }
 0xc9d   : > { %v2298_v40 = vpack.c.bf16 %v2295_v25, %v2280_v39 }
 0xc9f   : > { %2774 = vmatmul.mubr.msk.bf16.vlgmr.msra.gmra.mrb[32].mxu1 %vm445_vm0, %v2298_v40 }
 0xd72   : > { %v2359_v43 = vpop.f32.mrb[32].mxu1 }
 0xd73   : > { %v2360_v48 = vadd.f32 %v2620_v41, %v2359_v43  ;;  %v2775_v54 = vpop.f32.mrb[33].mxu1 }
 0xd74   : > { %v2362_v55 = vpop.f32.mrb[34].mxu1 }
 0xd75   : > { %v2368_v56 = vcombine.high %v2360_v48, %v2360_v48  ;;  %v2375_v57 = vrot.slane %v2360_v48, %v2928_v5  ;;  %v2363_v32 = vadd.f32 %v2620_v41, %v2362_v55  ;;  %v2776_v49 = vpop.f32.mrb[35].mxu1 }
 0xd77   : > { %v2382_v8 = vrot.slane %v2368_v56, %v2928_v5  ;;  %v2383_v58 = vcombine.high %v2375_v57, %v2375_v57  ;;  %v2423_v47 = vrot.slane %v2363_v32, %v2928_v5  ;;  %v2391_v50 = vrot.slane %v2375_v57, %v2928_v5 }
 0xd79   : > { %v2384_v51 = vcombine.high %v2382_v8, %v2382_v8  ;;  %v2398_v3 = vrot.slane %v2382_v8, %v2928_v5  ;;  %v2405_v52 = vrot.slane %v2383_v58, %v2928_v5  ;;  %v2424_v2 = vcombine.high %v2423_v47, %v2423_v47 }
 0xd7a   : > { %v2431_v7 = vrot.slane %v2423_v47, %v2928_v5 }
 0xd7b   : > { %v2412_v59 = vrot.slane %v2384_v51, %v2928_v5  ;;  %v2414_v4 = vcombine.high %v2398_v3, %v2398_v3  ;;  %v2439_v60 = vcombine.low %v2391_v50, %v2405_v52  ;;  %v2624_v6 = vcombine.high %v2391_v50, %v2405_v52 }
 0xd7c   : > { %v2461_v61 = vrot.slane %v2398_v3, %v2928_v5  ;;  %v2438_v46 = vrot.slane %v2424_v2, %v2928_v5 }
 0xd7d   : > { %v2447_v62 = vrot.slane %v2439_v60, %v2928_v5  ;;  %v2454_v9 = vrot.slane %v2624_v6, %v2928_v5  ;;  %v2478_v63 = vcombine.low %v2412_v59, %v2414_v4  ;;  %v2416_v10 = vcombine.high %v2412_v59, %v2412_v59 }
 0xd7e   : > { %v2476_v13 = vrot.slane %v2461_v61, %v2928_v5  ;;  %v2500_v45 = vrot.slane %v2438_v46, %v2928_v5 }
 0xd7f   : > { %v2462_v0 = vcombine.low %v2447_v62, %v2454_v9  ;;  %v2479_v53 = vcombine.low %v2416_v10, %v2431_v7  ;;  %v2486_v44 = vrot.slane %v2478_v63, %v2928_v5 }
 0xd80   : > { %v2515_v17 = vrot.slane %v2500_v45, %v2928_v5 }
 0xd81   : > { %v2469_v1 = vrot.slane %v2462_v0, %v2928_v5  ;;  %v2493_v11 = vrot.slane %v2479_v53, %v2928_v5 }
 0xd83   : > { %v2477_v31 = vcombine.low %v2469_v1, %v2476_v13  ;;  %v2501_v12 = vcombine.low %v2486_v44, %v2493_v11 }
 0xd85   : > { %v2519_v15 = vpack.c.bf16 %v2477_v31, %v2477_v31  ;;  %v2508_v16 = vrot.slane %v2501_v12, %v2928_v5 }
 0xd87   : > { %v2525_v23 = vsel %vm2523_vm12, %v2519_v15, %v2524_v14  ;;  %v2516_v34 = vcombine.low %v2508_v16, %v2515_v17 }
 0xd88   : > { %2526 = vst [vmem:[%s280_s20] sm:$0x7] %v2525_v23 }
 0xd89   : > { %v2520_v19 = vpack.c.bf16 %v2516_v34, %v2516_v34 }
 0xd8b   : > { %v2528_v24 = vsel %vm2523_vm12, %v2520_v19, %v2527_v20 }
 0xd8c   : > { %2529 = vst [vmem:[%s280_s20 + $0x4] sm:$0x7] %v2528_v24 }
 0xd8d PF: > { %s17_s24 = sadd.s32 1, %s2849_s24  }
 0xd8e   : > { %p14_p4 = scmp.ge.s32.totalorder %s17_s24, 4  }
 0xd90   :  { %16 = sbr.rel (!%p14_p4) target bundleno = 1 (0x1), region = 78 }

</bundles_post_ra>
